<compile_context>
chip_gen: v7x
topology: tpu7x:2x2x1
jax: 0.10.0
libtpu: 0.0.40
codegen_flags: <defaults>
</compile_context>

<pallas_src>
import functools
import math

import jax
import jax.numpy as jnp
from jax.experimental import pallas as pl
from jax.experimental.pallas import tpu as pltpu

VMEM = pltpu.MemorySpace.VMEM

# ------------------------- model config (small, synthetic) -------------------------
BATCH = 2
CHANNELS = 3
IMG = 16
PATCH = 8
HIDDEN = 32
NUM_HEADS = 4
HEAD_DIM = HIDDEN // NUM_HEADS
MLP_DIM = 64
NUM_LAYERS = 2
OUTPUT_DIM = 5
LN_EPS = 1e-12  # ViT config layer_norm_eps


# ------------------------- in-kernel math helpers -------------------------
def _layernorm(x, g, b, eps=LN_EPS):
    """torch.nn.LayerNorm (biased variance), row-wise over the last dim. f32 stats."""
    mean = jnp.mean(x, axis=-1, keepdims=True)
    xc = x - mean
    var = jnp.mean(xc * xc, axis=-1, keepdims=True)
    return xc * jax.lax.rsqrt(var + eps) * g + b


def _erf(x):
    # Abramowitz & Stegun 7.1.26, |abs err| <= 1.5e-7 (f32-accurate in practice).
    # Built from exp / mul / add / where so it lowers to VPU + EUP ops directly.
    pc = 0.3275911
    a1, a2, a3, a4, a5 = 0.254829592, -0.284496736, 1.421413741, -1.453152027, 1.061405429
    sgn = jnp.where(x < 0.0, -1.0, 1.0)
    z = jnp.abs(x)
    t = 1.0 / (1.0 + pc * z)
    poly = ((((a5 * t + a4) * t + a3) * t + a2) * t + a1) * t
    return sgn * (1.0 - poly * jnp.exp(-z * z))


def _gelu_exact(x):
    # torch.nn.GELU default / HF ViT "gelu" = exact erf form.
    return x * 0.5 * (1.0 + _erf(x * 0.7071067811865476))


# ------------------------- the fused forward kernel -------------------------
def _vit_forward_kernel(
    patches_ref, addpos_ref, patch_w_ref,
    ln1_g_ref, ln1_b_ref, qkv_w_ref, qkv_b_ref, o_w_ref, o_b_ref,
    ln2_g_ref, ln2_b_ref, fc1_w_ref, fc1_b_ref, fc2_w_ref, fc2_b_ref,
    lnf_g_ref, lnf_b_ref, reg_w_ref, reg_b_ref,
    out_ref, *, batch, num_layers, seq, seq_pad):
    D = HIDDEN
    Dh = HEAD_DIM
    SP = seq_pad
    scale = 1.0 / math.sqrt(Dh)

    # Mask for padded key positions (token index >= seq is pure padding).
    key_valid = jax.lax.broadcasted_iota(jnp.int32, (SP, SP), 1) < seq
    neg_big = jnp.float32(-1e30)

    # Patch-embedding conv (kernel=stride=PATCH) as a single matmul. CLS token, position
    # embeddings and the conv bias are folded into the precomputed additive term; the
    # zero rows of `patches` (CLS slot + padding) therefore come out exactly right.
    h = jnp.dot(patches_ref[...], patch_w_ref[...],
                preferred_element_type=jnp.float32) + addpos_ref[...]        # (B*SP, D)

    for l in range(num_layers):                       # statically unrolled (2 layers)
        # ---- attention block (pre-norm, like HF ViTLayer) ----
        xn = _layernorm(h, ln1_g_ref[l], ln1_b_ref[l])
        qkv = jnp.dot(xn, qkv_w_ref[l],
                      preferred_element_type=jnp.float32) + qkv_b_ref[l]     # (B*SP, 3D)

        per_batch = []
        for b in range(batch):
            rows = qkv[b * SP:(b + 1) * SP, :]                               # (SP, 3D)
            head_outs = []
            for hh in range(NUM_HEADS):
                qh = rows[:, hh * Dh:(hh + 1) * Dh]                          # (SP, Dh)
                kh = rows[:, D + hh * Dh:D + (hh + 1) * Dh]
                vh = rows[:, 2 * D + hh * Dh:2 * D + (hh + 1) * Dh]
                s = jnp.dot(qh, kh.T, preferred_element_type=jnp.float32) * scale
                s = jnp.where(key_valid, s, neg_big)
                m = jnp.max(s, axis=-1, keepdims=True)
                p = jnp.exp(s - m)
                p = p * pl.reciprocal(jnp.sum(p, axis=-1, keepdims=True), approx=True)
                head_outs.append(jnp.dot(p, vh, preferred_element_type=jnp.float32))
            per_batch.append(jnp.concatenate(head_outs, axis=-1))            # (SP, D)
        attn = jnp.concatenate(per_batch, axis=0)                            # (B*SP, D)
        attn = jnp.dot(attn, o_w_ref[l],
                       preferred_element_type=jnp.float32) + o_b_ref[l]
        h = h + attn                                                         # residual 1

        # ---- MLP block (pre-norm) ----
        xn2 = _layernorm(h, ln2_g_ref[l], ln2_b_ref[l])
        m1 = jnp.dot(xn2, fc1_w_ref[l],
                     preferred_element_type=jnp.float32) + fc1_b_ref[l]
        m1 = _gelu_exact(m1)
        m2 = jnp.dot(m1, fc2_w_ref[l],
                     preferred_element_type=jnp.float32) + fc2_b_ref[l]
        h = h + m2                                                           # residual 2

    # Final layernorm -> take CLS token of each image -> linear regressor.
    hf = _layernorm(h, lnf_g_ref[...], lnf_b_ref[...])
    cls_tokens = jnp.concatenate(
        [hf[b * SP:b * SP + 1, :] for b in range(batch)], axis=0)            # (B, D)
    out = jnp.dot(cls_tokens, reg_w_ref[...],
                  preferred_element_type=jnp.float32) + reg_b_ref[...]
    out_ref[...] = out.astype(out_ref.dtype)


# ------------------------- parameter init (synthetic, deterministic) -------------------------
def init_params(key):
    def normal(key, shape, std=0.02):
        return (std * jax.random.normal(key, shape)).astype(jnp.float32)

    keys = jax.random.split(key, 8 + NUM_LAYERS)
    num_patches = (IMG // PATCH) ** 2
    seq = num_patches + 1

    params = {
        # conv weight (HIDDEN, C, P, P) stored pre-flattened/transposed as (C*P*P, HIDDEN)
        "patch_w": normal(keys[0], (CHANNELS * PATCH * PATCH, HIDDEN)),
        "patch_b": jnp.zeros((HIDDEN,), jnp.float32),
        "cls": normal(keys[1], (1, 1, HIDDEN)),
        "pos": normal(keys[2], (1, seq, HIDDEN)),
        "lnf_g": jnp.ones((HIDDEN,), jnp.float32),
        "lnf_b": jnp.zeros((HIDDEN,), jnp.float32),
        "reg_w": normal(keys[3], (HIDDEN, OUTPUT_DIM)),
        "reg_b": jnp.zeros((OUTPUT_DIM,), jnp.float32),
        "layers": [],
    }
    for i in range(NUM_LAYERS):
        lk = jax.random.split(keys[8 + i], 6)
        params["layers"].append({
            "ln1_g": jnp.ones((HIDDEN,), jnp.float32),
            "ln1_b": jnp.zeros((HIDDEN,), jnp.float32),
            "q_w": normal(lk[0], (HIDDEN, HIDDEN)),
            "q_b": jnp.zeros((HIDDEN,), jnp.float32),
            "k_w": normal(lk[1], (HIDDEN, HIDDEN)),
            "k_b": jnp.zeros((HIDDEN,), jnp.float32),
            "v_w": normal(lk[2], (HIDDEN, HIDDEN)),
            "v_b": jnp.zeros((HIDDEN,), jnp.float32),
            "o_w": normal(lk[3], (HIDDEN, HIDDEN)),
            "o_b": jnp.zeros((HIDDEN,), jnp.float32),
            "ln2_g": jnp.ones((HIDDEN,), jnp.float32),
            "ln2_b": jnp.zeros((HIDDEN,), jnp.float32),
            "fc1_w": normal(lk[4], (HIDDEN, MLP_DIM)),
            "fc1_b": jnp.zeros((MLP_DIM,), jnp.float32),
            "fc2_w": normal(lk[5], (MLP_DIM, HIDDEN)),
            "fc2_b": jnp.zeros((HIDDEN,), jnp.float32),
        })
    return params


# ------------------------- forward pass (one pallas_call) -------------------------
def vit_regression_forward(x, params):
    # x: (B, C, H, W) NCHW float32, matching PyTorch Conv2d input.
    B, C, H, W = x.shape
    P = PATCH
    assert H % P == 0 and W % P == 0
    Hn, Wn = H // P, W // P
    N = Hn * Wn
    S = N + 1                                   # CLS + patches
    SP = ((S + 7) // 8) * 8                     # pad sequence to sublane multiple
    D = HIDDEN
    CPP = C * P * P

    # --- glue: im2col for the patch conv, padded so row 0 of each image is the CLS slot
    #     and rows S..SP-1 are zero padding (pure data layout, no compute) ---
    patches = (
        x.reshape(B, C, Hn, P, Wn, P)
        .transpose(0, 2, 4, 1, 3, 5)            # (B, Hn, Wn, C, P, P): matches conv-weight flatten
        .reshape(B, N, CPP)
    )
    patches = jnp.pad(patches, ((0, 0), (1, SP - 1 - N), (0, 0)))    # (B, SP, CPP)
    patches = patches.reshape(B * SP, CPP)

    # --- glue: fold CLS token + position embeddings + conv bias into one additive term ---
    cls = params["cls"].reshape(1, D)
    pos = params["pos"].reshape(S, D)
    addpos_one = jnp.concatenate([
        cls + pos[0:1],                                              # CLS row
        pos[1:] + params["patch_b"].reshape(1, D),                   # patch rows
        jnp.zeros((SP - S, D), jnp.float32),                         # padding rows
    ], axis=0)                                                       # (SP, D)
    addpos = jnp.tile(addpos_one, (B, 1))                            # (B*SP, D)

    # --- glue: stack per-layer weights and fuse Q/K/V into one (D, 3D) matmul ---
    L = params["layers"]
    stack = lambda f: jnp.stack([f(l) for l in L], axis=0)
    ln1_g = stack(lambda l: l["ln1_g"].reshape(1, D))
    ln1_b = stack(lambda l: l["ln1_b"].reshape(1, D))
    qkv_w = stack(lambda l: jnp.concatenate([l["q_w"], l["k_w"], l["v_w"]], axis=1))
    qkv_b = stack(lambda l: jnp.concatenate(
        [l["q_b"], l["k_b"], l["v_b"]]).reshape(1, 3 * D))
    o_w = stack(lambda l: l["o_w"])
    o_b = stack(lambda l: l["o_b"].reshape(1, D))
    ln2_g = stack(lambda l: l["ln2_g"].reshape(1, D))
    ln2_b = stack(lambda l: l["ln2_b"].reshape(1, D))
    fc1_w = stack(lambda l: l["fc1_w"])
    fc1_b = stack(lambda l: l["fc1_b"].reshape(1, MLP_DIM))
    fc2_w = stack(lambda l: l["fc2_w"])
    fc2_b = stack(lambda l: l["fc2_b"].reshape(1, D))

    args = (
        patches, addpos, params["patch_w"],
        ln1_g, ln1_b, qkv_w, qkv_b, o_w, o_b,
        ln2_g, ln2_b, fc1_w, fc1_b, fc2_w, fc2_b,
        params["lnf_g"].reshape(1, D), params["lnf_b"].reshape(1, D),
        params["reg_w"], params["reg_b"].reshape(1, OUTPUT_DIM),
    )

    kernel = functools.partial(
        _vit_forward_kernel,
        batch=B, num_layers=len(L), seq=S, seq_pad=SP)

    # Single fused kernel; total VMEM working set is ~100 KB, so no grid / tiling needed.
    # TODO(synk): at real ViT-Base scale add a "parallel" token-block grid axis (megacore),
    # bf16 matmul operands and an explicit vmem_limit_bytes budget (v7x has 64 MiB VMEM).
    return pl.pallas_call(
        kernel,
        out_shape=jax.ShapeDtypeStruct((B, OUTPUT_DIM), jnp.float32),
        in_specs=[pl.BlockSpec(memory_space=VMEM)] * len(args),
        out_specs=pl.BlockSpec(memory_space=VMEM),
    )(*args)


if __name__ == "__main__":
    key = jax.random.PRNGKey(0)
    pkey, xkey = jax.random.split(key)
    params = init_params(pkey)
    x = jax.random.normal(xkey, (BATCH, CHANNELS, IMG, IMG), dtype=jnp.float32)

    out = vit_regression_forward(x, params)
    out = jax.block_until_ready(out)
    assert out.shape == (BATCH, OUTPUT_DIM), out.shape
    assert bool(jnp.all(jnp.isfinite(out)))
    print("KERNEL_OK")
</pallas_src>

<mosaic_0001>
module attributes {stable_mosaic.version = 11 : i64} {
  func.func @_vit_forward_kernel(%arg0: memref<16x192xf32, #tpu.memory_space<vmem>>, %arg1: memref<16x32xf32, #tpu.memory_space<vmem>>, %arg2: memref<192x32xf32, #tpu.memory_space<vmem>>, %arg3: memref<2x1x32xf32, #tpu.memory_space<vmem>>, %arg4: memref<2x1x32xf32, #tpu.memory_space<vmem>>, %arg5: memref<2x32x96xf32, #tpu.memory_space<vmem>>, %arg6: memref<2x1x96xf32, #tpu.memory_space<vmem>>, %arg7: memref<2x32x32xf32, #tpu.memory_space<vmem>>, %arg8: memref<2x1x32xf32, #tpu.memory_space<vmem>>, %arg9: memref<2x1x32xf32, #tpu.memory_space<vmem>>, %arg10: memref<2x1x32xf32, #tpu.memory_space<vmem>>, %arg11: memref<2x32x64xf32, #tpu.memory_space<vmem>>, %arg12: memref<2x1x64xf32, #tpu.memory_space<vmem>>, %arg13: memref<2x64x32xf32, #tpu.memory_space<vmem>>, %arg14: memref<2x1x32xf32, #tpu.memory_space<vmem>>, %arg15: memref<1x32xf32, #tpu.memory_space<vmem>>, %arg16: memref<1x32xf32, #tpu.memory_space<vmem>>, %arg17: memref<32x5xf32, #tpu.memory_space<vmem>>, %arg18: memref<1x5xf32, #tpu.memory_space<vmem>>, %arg19: memref<2x5xf32, #tpu.memory_space<vmem>>) attributes {dimension_semantics = [], scalar_prefetch = 0 : i64, scratch_operands = 0 : i64, tpu.core_type = #tpu.core_type<tc>} {
    %0 = tpu.iota {dimensions = array<i32: 1>} : vector<8x8xi32>
    %c5_i32 = arith.constant 5 : i32
    %1 = vector.broadcast %c5_i32 : i32 to vector<8x8xi32>
    %2 = arith.cmpi slt, %0, %1 : vector<8x8xi32>
    %c0 = arith.constant 0 : index
    %c0_0 = arith.constant 0 : index
    %3 = vector.load %arg0[%c0, %c0_0] : memref<16x192xf32, #tpu.memory_space<vmem>>, vector<16x192xf32>
    %c0_1 = arith.constant 0 : index
    %c0_2 = arith.constant 0 : index
    %4 = vector.load %arg2[%c0_1, %c0_2] : memref<192x32xf32, #tpu.memory_space<vmem>>, vector<192x32xf32>
    %cst = arith.constant dense<0.000000e+00> : vector<16x32xf32>
    %5 = tpu.matmul %3, %4, %cst {dimension_numbers = #tpu.dot_dimension_numbers<[1], [0], [0], [1], [0, 0, 1, 1], [], []>} : vector<16x192xf32>, vector<192x32xf32>, vector<16x32xf32> -> vector<16x32xf32>
    %c0_3 = arith.constant 0 : index
    %c0_4 = arith.constant 0 : index
    %6 = vector.load %arg1[%c0_3, %c0_4] : memref<16x32xf32, #tpu.memory_space<vmem>>, vector<16x32xf32>
    %7 = arith.addf %5, %6 : vector<16x32xf32>
    %c0_5 = arith.constant 0 : index
    %c0_6 = arith.constant 0 : index
    %c0_7 = arith.constant 0 : index
    %8 = vector.load %arg3[%c0_5, %c0_6, %c0_7] : memref<2x1x32xf32, #tpu.memory_space<vmem>>, vector<1x1x32xf32>
    %9 = vector.shape_cast %8 : vector<1x1x32xf32> to vector<1x32xf32>
    %c0_8 = arith.constant 0 : index
    %c0_9 = arith.constant 0 : index
    %c0_10 = arith.constant 0 : index
    %10 = vector.load %arg4[%c0_8, %c0_9, %c0_10] : memref<2x1x32xf32, #tpu.memory_space<vmem>>, vector<1x1x32xf32>
    %11 = vector.shape_cast %10 : vector<1x1x32xf32> to vector<1x32xf32>
    %cst_11 = arith.constant dense<0.000000e+00> : vector<16xf32>
    %12 = vector.multi_reduction <add>, %7, %cst_11 [1] : vector<16x32xf32> to vector<16xf32>
    %13 = vector.shape_cast %12 : vector<16xf32> to vector<16x1xf32>
    %cst_12 = arith.constant 3.200000e+01 : f32
    %14 = vector.broadcast %cst_12 : f32 to vector<16x1xf32>
    %15 = arith.divf %13, %14 : vector<16x1xf32>
    %16 = vector.broadcast %15 : vector<16x1xf32> to vector<16x32xf32>
    %17 = arith.subf %7, %16 : vector<16x32xf32>
    %18 = arith.mulf %17, %17 : vector<16x32xf32>
    %cst_13 = arith.constant dense<0.000000e+00> : vector<16xf32>
    %19 = vector.multi_reduction <add>, %18, %cst_13 [1] : vector<16x32xf32> to vector<16xf32>
    %20 = vector.shape_cast %19 : vector<16xf32> to vector<16x1xf32>
    %cst_14 = arith.constant 3.200000e+01 : f32
    %21 = vector.broadcast %cst_14 : f32 to vector<16x1xf32>
    %22 = arith.divf %20, %21 : vector<16x1xf32>
    %cst_15 = arith.constant 9.99999996E-13 : f32
    %23 = vector.broadcast %cst_15 : f32 to vector<16x1xf32>
    %24 = arith.addf %22, %23 : vector<16x1xf32>
    %25 = math.rsqrt %24 : vector<16x1xf32>
    %26 = vector.broadcast %25 : vector<16x1xf32> to vector<16x32xf32>
    %27 = arith.mulf %17, %26 : vector<16x32xf32>
    %28 = vector.broadcast %9 : vector<1x32xf32> to vector<16x32xf32>
    %29 = arith.mulf %27, %28 : vector<16x32xf32>
    %30 = vector.broadcast %11 : vector<1x32xf32> to vector<16x32xf32>
    %31 = arith.addf %29, %30 : vector<16x32xf32>
    %c0_16 = arith.constant 0 : index
    %c0_17 = arith.constant 0 : index
    %c0_18 = arith.constant 0 : index
    %32 = vector.load %arg5[%c0_16, %c0_17, %c0_18] : memref<2x32x96xf32, #tpu.memory_space<vmem>>, vector<1x32x96xf32>
    %33 = vector.shape_cast %32 : vector<1x32x96xf32> to vector<32x96xf32>
    %cst_19 = arith.constant dense<0.000000e+00> : vector<16x96xf32>
    %34 = tpu.matmul %31, %33, %cst_19 {dimension_numbers = #tpu.dot_dimension_numbers<[1], [0], [0], [1], [0, 0, 1, 1], [], []>} : vector<16x32xf32>, vector<32x96xf32>, vector<16x96xf32> -> vector<16x96xf32>
    %c0_20 = arith.constant 0 : index
    %c0_21 = arith.constant 0 : index
    %c0_22 = arith.constant 0 : index
    %35 = vector.load %arg6[%c0_20, %c0_21, %c0_22] : memref<2x1x96xf32, #tpu.memory_space<vmem>>, vector<1x1x96xf32>
    %36 = vector.shape_cast %35 : vector<1x1x96xf32> to vector<1x96xf32>
    %37 = vector.broadcast %36 : vector<1x96xf32> to vector<16x96xf32>
    %38 = arith.addf %34, %37 : vector<16x96xf32>
    %39 = vector.extract_strided_slice %38 {offsets = [0, 0], sizes = [8, 96], strides = [1, 1]} : vector<16x96xf32> to vector<8x96xf32>
    %40 = vector.extract_strided_slice %39 {offsets = [0, 0], sizes = [8, 8], strides = [1, 1]} : vector<8x96xf32> to vector<8x8xf32>
    %41 = vector.extract_strided_slice %39 {offsets = [0, 32], sizes = [8, 8], strides = [1, 1]} : vector<8x96xf32> to vector<8x8xf32>
    %42 = vector.extract_strided_slice %39 {offsets = [0, 64], sizes = [8, 8], strides = [1, 1]} : vector<8x96xf32> to vector<8x8xf32>
    %43 = tpu.transpose %41, [1, 0] : vector<8x8xf32> -> vector<8x8xf32>
    %cst_23 = arith.constant dense<0.000000e+00> : vector<8x8xf32>
    %44 = tpu.matmul %40, %43, %cst_23 {dimension_numbers = #tpu.dot_dimension_numbers<[1], [0], [0], [1], [0, 0, 1, 1], [], []>} : vector<8x8xf32>, vector<8x8xf32>, vector<8x8xf32> -> vector<8x8xf32>
    %cst_24 = arith.constant 0.353553385 : f32
    %45 = vector.broadcast %cst_24 : f32 to vector<8x8xf32>
    %46 = arith.mulf %44, %45 : vector<8x8xf32>
    %cst_25 = arith.constant -1.000000e+30 : f32
    %47 = vector.broadcast %cst_25 : f32 to vector<8x8xf32>
    %48 = arith.select %2, %46, %47 : vector<8x8xi1>, vector<8x8xf32>
    %cst_26 = arith.constant dense<0xFF800000> : vector<8xf32>
    %49 = vector.multi_reduction <maximumf>, %48, %cst_26 [1] : vector<8x8xf32> to vector<8xf32>
    %50 = vector.shape_cast %49 : vector<8xf32> to vector<8x1xf32>
    %51 = vector.broadcast %50 : vector<8x1xf32> to vector<8x8xf32>
    %52 = arith.subf %48, %51 : vector<8x8xf32>
    %53 = math.exp %52 : vector<8x8xf32>
    %cst_27 = arith.constant dense<0.000000e+00> : vector<8xf32>
    %54 = vector.multi_reduction <add>, %53, %cst_27 [1] : vector<8x8xf32> to vector<8xf32>
    %55 = vector.shape_cast %54 : vector<8xf32> to vector<8x1xf32>
    %56 = tpu.reciprocal %55 {approx = true} : vector<8x1xf32> -> vector<8x1xf32>
    %57 = vector.broadcast %56 : vector<8x1xf32> to vector<8x8xf32>
    %58 = arith.mulf %53, %57 : vector<8x8xf32>
    %cst_28 = arith.constant dense<0.000000e+00> : vector<8x8xf32>
    %59 = tpu.matmul %58, %42, %cst_28 {dimension_numbers = #tpu.dot_dimension_numbers<[1], [0], [0], [1], [0, 0, 1, 1], [], []>} : vector<8x8xf32>, vector<8x8xf32>, vector<8x8xf32> -> vector<8x8xf32>
    %60 = vector.extract_strided_slice %39 {offsets = [0, 8], sizes = [8, 8], strides = [1, 1]} : vector<8x96xf32> to vector<8x8xf32>
    %61 = vector.extract_strided_slice %39 {offsets = [0, 40], sizes = [8, 8], strides = [1, 1]} : vector<8x96xf32> to vector<8x8xf32>
    %62 = vector.extract_strided_slice %39 {offsets = [0, 72], sizes = [8, 8], strides = [1, 1]} : vector<8x96xf32> to vector<8x8xf32>
    %63 = tpu.transpose %61, [1, 0] : vector<8x8xf32> -> vector<8x8xf32>
    %cst_29 = arith.constant dense<0.000000e+00> : vector<8x8xf32>
    %64 = tpu.matmul %60, %63, %cst_29 {dimension_numbers = #tpu.dot_dimension_numbers<[1], [0], [0], [1], [0, 0, 1, 1], [], []>} : vector<8x8xf32>, vector<8x8xf32>, vector<8x8xf32> -> vector<8x8xf32>
    %cst_30 = arith.constant 0.353553385 : f32
    %65 = vector.broadcast %cst_30 : f32 to vector<8x8xf32>
    %66 = arith.mulf %64, %65 : vector<8x8xf32>
    %cst_31 = arith.constant -1.000000e+30 : f32
    %67 = vector.broadcast %cst_31 : f32 to vector<8x8xf32>
    %68 = arith.select %2, %66, %67 : vector<8x8xi1>, vector<8x8xf32>
    %cst_32 = arith.constant dense<0xFF800000> : vector<8xf32>
    %69 = vector.multi_reduction <maximumf>, %68, %cst_32 [1] : vector<8x8xf32> to vector<8xf32>
    %70 = vector.shape_cast %69 : vector<8xf32> to vector<8x1xf32>
    %71 = vector.broadcast %70 : vector<8x1xf32> to vector<8x8xf32>
    %72 = arith.subf %68, %71 : vector<8x8xf32>
    %73 = math.exp %72 : vector<8x8xf32>
    %cst_33 = arith.constant dense<0.000000e+00> : vector<8xf32>
    %74 = vector.multi_reduction <add>, %73, %cst_33 [1] : vector<8x8xf32> to vector<8xf32>
    %75 = vector.shape_cast %74 : vector<8xf32> to vector<8x1xf32>
    %76 = tpu.reciprocal %75 {approx = true} : vector<8x1xf32> -> vector<8x1xf32>
    %77 = vector.broadcast %76 : vector<8x1xf32> to vector<8x8xf32>
    %78 = arith.mulf %73, %77 : vector<8x8xf32>
    %cst_34 = arith.constant dense<0.000000e+00> : vector<8x8xf32>
    %79 = tpu.matmul %78, %62, %cst_34 {dimension_numbers = #tpu.dot_dimension_numbers<[1], [0], [0], [1], [0, 0, 1, 1], [], []>} : vector<8x8xf32>, vector<8x8xf32>, vector<8x8xf32> -> vector<8x8xf32>
    %80 = vector.extract_strided_slice %39 {offsets = [0, 16], sizes = [8, 8], strides = [1, 1]} : vector<8x96xf32> to vector<8x8xf32>
    %81 = vector.extract_strided_slice %39 {offsets = [0, 48], sizes = [8, 8], strides = [1, 1]} : vector<8x96xf32> to vector<8x8xf32>
    %82 = vector.extract_strided_slice %39 {offsets = [0, 80], sizes = [8, 8], strides = [1, 1]} : vector<8x96xf32> to vector<8x8xf32>
    %83 = tpu.transpose %81, [1, 0] : vector<8x8xf32> -> vector<8x8xf32>
    %cst_35 = arith.constant dense<0.000000e+00> : vector<8x8xf32>
    %84 = tpu.matmul %80, %83, %cst_35 {dimension_numbers = #tpu.dot_dimension_numbers<[1], [0], [0], [1], [0, 0, 1, 1], [], []>} : vector<8x8xf32>, vector<8x8xf32>, vector<8x8xf32> -> vector<8x8xf32>
    %cst_36 = arith.constant 0.353553385 : f32
    %85 = vector.broadcast %cst_36 : f32 to vector<8x8xf32>
    %86 = arith.mulf %84, %85 : vector<8x8xf32>
    %cst_37 = arith.constant -1.000000e+30 : f32
    %87 = vector.broadcast %cst_37 : f32 to vector<8x8xf32>
    %88 = arith.select %2, %86, %87 : vector<8x8xi1>, vector<8x8xf32>
    %cst_38 = arith.constant dense<0xFF800000> : vector<8xf32>
    %89 = vector.multi_reduction <maximumf>, %88, %cst_38 [1] : vector<8x8xf32> to vector<8xf32>
    %90 = vector.shape_cast %89 : vector<8xf32> to vector<8x1xf32>
    %91 = vector.broadcast %90 : vector<8x1xf32> to vector<8x8xf32>
    %92 = arith.subf %88, %91 : vector<8x8xf32>
    %93 = math.exp %92 : vector<8x8xf32>
    %cst_39 = arith.constant dense<0.000000e+00> : vector<8xf32>
    %94 = vector.multi_reduction <add>, %93, %cst_39 [1] : vector<8x8xf32> to vector<8xf32>
    %95 = vector.shape_cast %94 : vector<8xf32> to vector<8x1xf32>
    %96 = tpu.reciprocal %95 {approx = true} : vector<8x1xf32> -> vector<8x1xf32>
    %97 = vector.broadcast %96 : vector<8x1xf32> to vector<8x8xf32>
    %98 = arith.mulf %93, %97 : vector<8x8xf32>
    %cst_40 = arith.constant dense<0.000000e+00> : vector<8x8xf32>
    %99 = tpu.matmul %98, %82, %cst_40 {dimension_numbers = #tpu.dot_dimension_numbers<[1], [0], [0], [1], [0, 0, 1, 1], [], []>} : vector<8x8xf32>, vector<8x8xf32>, vector<8x8xf32> -> vector<8x8xf32>
    %100 = vector.extract_strided_slice %39 {offsets = [0, 24], sizes = [8, 8], strides = [1, 1]} : vector<8x96xf32> to vector<8x8xf32>
    %101 = vector.extract_strided_slice %39 {offsets = [0, 56], sizes = [8, 8], strides = [1, 1]} : vector<8x96xf32> to vector<8x8xf32>
    %102 = vector.extract_strided_slice %39 {offsets = [0, 88], sizes = [8, 8], strides = [1, 1]} : vector<8x96xf32> to vector<8x8xf32>
    %103 = tpu.transpose %101, [1, 0] : vector<8x8xf32> -> vector<8x8xf32>
    %cst_41 = arith.constant dense<0.000000e+00> : vector<8x8xf32>
    %104 = tpu.matmul %100, %103, %cst_41 {dimension_numbers = #tpu.dot_dimension_numbers<[1], [0], [0], [1], [0, 0, 1, 1], [], []>} : vector<8x8xf32>, vector<8x8xf32>, vector<8x8xf32> -> vector<8x8xf32>
    %cst_42 = arith.constant 0.353553385 : f32
    %105 = vector.broadcast %cst_42 : f32 to vector<8x8xf32>
    %106 = arith.mulf %104, %105 : vector<8x8xf32>
    %cst_43 = arith.constant -1.000000e+30 : f32
    %107 = vector.broadcast %cst_43 : f32 to vector<8x8xf32>
    %108 = arith.select %2, %106, %107 : vector<8x8xi1>, vector<8x8xf32>
    %cst_44 = arith.constant dense<0xFF800000> : vector<8xf32>
    %109 = vector.multi_reduction <maximumf>, %108, %cst_44 [1] : vector<8x8xf32> to vector<8xf32>
    %110 = vector.shape_cast %109 : vector<8xf32> to vector<8x1xf32>
    %111 = vector.broadcast %110 : vector<8x1xf32> to vector<8x8xf32>
    %112 = arith.subf %108, %111 : vector<8x8xf32>
    %113 = math.exp %112 : vector<8x8xf32>
    %cst_45 = arith.constant dense<0.000000e+00> : vector<8xf32>
    %114 = vector.multi_reduction <add>, %113, %cst_45 [1] : vector<8x8xf32> to vector<8xf32>
    %115 = vector.shape_cast %114 : vector<8xf32> to vector<8x1xf32>
    %116 = tpu.reciprocal %115 {approx = true} : vector<8x1xf32> -> vector<8x1xf32>
    %117 = vector.broadcast %116 : vector<8x1xf32> to vector<8x8xf32>
    %118 = arith.mulf %113, %117 : vector<8x8xf32>
    %cst_46 = arith.constant dense<0.000000e+00> : vector<8x8xf32>
    %119 = tpu.matmul %118, %102, %cst_46 {dimension_numbers = #tpu.dot_dimension_numbers<[1], [0], [0], [1], [0, 0, 1, 1], [], []>} : vector<8x8xf32>, vector<8x8xf32>, vector<8x8xf32> -> vector<8x8xf32>
    %120 = tpu.concatenate %59, %79, %99, %119 in 1 : vector<8x8xf32>, vector<8x8xf32>, vector<8x8xf32>, vector<8x8xf32> -> vector<8x32xf32>
    %121 = vector.extract_strided_slice %38 {offsets = [8, 0], sizes = [8, 96], strides = [1, 1]} : vector<16x96xf32> to vector<8x96xf32>
    %122 = vector.extract_strided_slice %121 {offsets = [0, 0], sizes = [8, 8], strides = [1, 1]} : vector<8x96xf32> to vector<8x8xf32>
    %123 = vector.extract_strided_slice %121 {offsets = [0, 32], sizes = [8, 8], strides = [1, 1]} : vector<8x96xf32> to vector<8x8xf32>
    %124 = vector.extract_strided_slice %121 {offsets = [0, 64], sizes = [8, 8], strides = [1, 1]} : vector<8x96xf32> to vector<8x8xf32>
    %125 = tpu.transpose %123, [1, 0] : vector<8x8xf32> -> vector<8x8xf32>
    %cst_47 = arith.constant dense<0.000000e+00> : vector<8x8xf32>
    %126 = tpu.matmul %122, %125, %cst_47 {dimension_numbers = #tpu.dot_dimension_numbers<[1], [0], [0], [1], [0, 0, 1, 1], [], []>} : vector<8x8xf32>, vector<8x8xf32>, vector<8x8xf32> -> vector<8x8xf32>
    %cst_48 = arith.constant 0.353553385 : f32
    %127 = vector.broadcast %cst_48 : f32 to vector<8x8xf32>
    %128 = arith.mulf %126, %127 : vector<8x8xf32>
    %cst_49 = arith.constant -1.000000e+30 : f32
    %129 = vector.broadcast %cst_49 : f32 to vector<8x8xf32>
    %130 = arith.select %2, %128, %129 : vector<8x8xi1>, vector<8x8xf32>
    %cst_50 = arith.constant dense<0xFF800000> : vector<8xf32>
    %131 = vector.multi_reduction <maximumf>, %130, %cst_50 [1] : vector<8x8xf32> to vector<8xf32>
    %132 = vector.shape_cast %131 : vector<8xf32> to vector<8x1xf32>
    %133 = vector.broadcast %132 : vector<8x1xf32> to vector<8x8xf32>
    %134 = arith.subf %130, %133 : vector<8x8xf32>
    %135 = math.exp %134 : vector<8x8xf32>
    %cst_51 = arith.constant dense<0.000000e+00> : vector<8xf32>
    %136 = vector.multi_reduction <add>, %135, %cst_51 [1] : vector<8x8xf32> to vector<8xf32>
    %137 = vector.shape_cast %136 : vector<8xf32> to vector<8x1xf32>
    %138 = tpu.reciprocal %137 {approx = true} : vector<8x1xf32> -> vector<8x1xf32>
    %139 = vector.broadcast %138 : vector<8x1xf32> to vector<8x8xf32>
    %140 = arith.mulf %135, %139 : vector<8x8xf32>
    %cst_52 = arith.constant dense<0.000000e+00> : vector<8x8xf32>
    %141 = tpu.matmul %140, %124, %cst_52 {dimension_numbers = #tpu.dot_dimension_numbers<[1], [0], [0], [1], [0, 0, 1, 1], [], []>} : vector<8x8xf32>, vector<8x8xf32>, vector<8x8xf32> -> vector<8x8xf32>
    %142 = vector.extract_strided_slice %121 {offsets = [0, 8], sizes = [8, 8], strides = [1, 1]} : vector<8x96xf32> to vector<8x8xf32>
    %143 = vector.extract_strided_slice %121 {offsets = [0, 40], sizes = [8, 8], strides = [1, 1]} : vector<8x96xf32> to vector<8x8xf32>
    %144 = vector.extract_strided_slice %121 {offsets = [0, 72], sizes = [8, 8], strides = [1, 1]} : vector<8x96xf32> to vector<8x8xf32>
    %145 = tpu.transpose %143, [1, 0] : vector<8x8xf32> -> vector<8x8xf32>
    %cst_53 = arith.constant dense<0.000000e+00> : vector<8x8xf32>
    %146 = tpu.matmul %142, %145, %cst_53 {dimension_numbers = #tpu.dot_dimension_numbers<[1], [0], [0], [1], [0, 0, 1, 1], [], []>} : vector<8x8xf32>, vector<8x8xf32>, vector<8x8xf32> -> vector<8x8xf32>
    %cst_54 = arith.constant 0.353553385 : f32
    %147 = vector.broadcast %cst_54 : f32 to vector<8x8xf32>
    %148 = arith.mulf %146, %147 : vector<8x8xf32>
    %cst_55 = arith.constant -1.000000e+30 : f32
    %149 = vector.broadcast %cst_55 : f32 to vector<8x8xf32>
    %150 = arith.select %2, %148, %149 : vector<8x8xi1>, vector<8x8xf32>
    %cst_56 = arith.constant dense<0xFF800000> : vector<8xf32>
    %151 = vector.multi_reduction <maximumf>, %150, %cst_56 [1] : vector<8x8xf32> to vector<8xf32>
    %152 = vector.shape_cast %151 : vector<8xf32> to vector<8x1xf32>
    %153 = vector.broadcast %152 : vector<8x1xf32> to vector<8x8xf32>
    %154 = arith.subf %150, %153 : vector<8x8xf32>
    %155 = math.exp %154 : vector<8x8xf32>
    %cst_57 = arith.constant dense<0.000000e+00> : vector<8xf32>
    %156 = vector.multi_reduction <add>, %155, %cst_57 [1] : vector<8x8xf32> to vector<8xf32>
    %157 = vector.shape_cast %156 : vector<8xf32> to vector<8x1xf32>
    %158 = tpu.reciprocal %157 {approx = true} : vector<8x1xf32> -> vector<8x1xf32>
    %159 = vector.broadcast %158 : vector<8x1xf32> to vector<8x8xf32>
    %160 = arith.mulf %155, %159 : vector<8x8xf32>
    %cst_58 = arith.constant dense<0.000000e+00> : vector<8x8xf32>
    %161 = tpu.matmul %160, %144, %cst_58 {dimension_numbers = #tpu.dot_dimension_numbers<[1], [0], [0], [1], [0, 0, 1, 1], [], []>} : vector<8x8xf32>, vector<8x8xf32>, vector<8x8xf32> -> vector<8x8xf32>
    %162 = vector.extract_strided_slice %121 {offsets = [0, 16], sizes = [8, 8], strides = [1, 1]} : vector<8x96xf32> to vector<8x8xf32>
    %163 = vector.extract_strided_slice %121 {offsets = [0, 48], sizes = [8, 8], strides = [1, 1]} : vector<8x96xf32> to vector<8x8xf32>
    %164 = vector.extract_strided_slice %121 {offsets = [0, 80], sizes = [8, 8], strides = [1, 1]} : vector<8x96xf32> to vector<8x8xf32>
    %165 = tpu.transpose %163, [1, 0] : vector<8x8xf32> -> vector<8x8xf32>
    %cst_59 = arith.constant dense<0.000000e+00> : vector<8x8xf32>
    %166 = tpu.matmul %162, %165, %cst_59 {dimension_numbers = #tpu.dot_dimension_numbers<[1], [0], [0], [1], [0, 0, 1, 1], [], []>} : vector<8x8xf32>, vector<8x8xf32>, vector<8x8xf32> -> vector<8x8xf32>
    %cst_60 = arith.constant 0.353553385 : f32
    %167 = vector.broadcast %cst_60 : f32 to vector<8x8xf32>
    %168 = arith.mulf %166, %167 : vector<8x8xf32>
    %cst_61 = arith.constant -1.000000e+30 : f32
    %169 = vector.broadcast %cst_61 : f32 to vector<8x8xf32>
    %170 = arith.select %2, %168, %169 : vector<8x8xi1>, vector<8x8xf32>
    %cst_62 = arith.constant dense<0xFF800000> : vector<8xf32>
    %171 = vector.multi_reduction <maximumf>, %170, %cst_62 [1] : vector<8x8xf32> to vector<8xf32>
    %172 = vector.shape_cast %171 : vector<8xf32> to vector<8x1xf32>
    %173 = vector.broadcast %172 : vector<8x1xf32> to vector<8x8xf32>
    %174 = arith.subf %170, %173 : vector<8x8xf32>
    %175 = math.exp %174 : vector<8x8xf32>
    %cst_63 = arith.constant dense<0.000000e+00> : vector<8xf32>
    %176 = vector.multi_reduction <add>, %175, %cst_63 [1] : vector<8x8xf32> to vector<8xf32>
    %177 = vector.shape_cast %176 : vector<8xf32> to vector<8x1xf32>
    %178 = tpu.reciprocal %177 {approx = true} : vector<8x1xf32> -> vector<8x1xf32>
    %179 = vector.broadcast %178 : vector<8x1xf32> to vector<8x8xf32>
    %180 = arith.mulf %175, %179 : vector<8x8xf32>
    %cst_64 = arith.constant dense<0.000000e+00> : vector<8x8xf32>
    %181 = tpu.matmul %180, %164, %cst_64 {dimension_numbers = #tpu.dot_dimension_numbers<[1], [0], [0], [1], [0, 0, 1, 1], [], []>} : vector<8x8xf32>, vector<8x8xf32>, vector<8x8xf32> -> vector<8x8xf32>
    %182 = vector.extract_strided_slice %121 {offsets = [0, 24], sizes = [8, 8], strides = [1, 1]} : vector<8x96xf32> to vector<8x8xf32>
    %183 = vector.extract_strided_slice %121 {offsets = [0, 56], sizes = [8, 8], strides = [1, 1]} : vector<8x96xf32> to vector<8x8xf32>
    %184 = vector.extract_strided_slice %121 {offsets = [0, 88], sizes = [8, 8], strides = [1, 1]} : vector<8x96xf32> to vector<8x8xf32>
    %185 = tpu.transpose %183, [1, 0] : vector<8x8xf32> -> vector<8x8xf32>
    %cst_65 = arith.constant dense<0.000000e+00> : vector<8x8xf32>
    %186 = tpu.matmul %182, %185, %cst_65 {dimension_numbers = #tpu.dot_dimension_numbers<[1], [0], [0], [1], [0, 0, 1, 1], [], []>} : vector<8x8xf32>, vector<8x8xf32>, vector<8x8xf32> -> vector<8x8xf32>
    %cst_66 = arith.constant 0.353553385 : f32
    %187 = vector.broadcast %cst_66 : f32 to vector<8x8xf32>
    %188 = arith.mulf %186, %187 : vector<8x8xf32>
    %cst_67 = arith.constant -1.000000e+30 : f32
    %189 = vector.broadcast %cst_67 : f32 to vector<8x8xf32>
    %190 = arith.select %2, %188, %189 : vector<8x8xi1>, vector<8x8xf32>
    %cst_68 = arith.constant dense<0xFF800000> : vector<8xf32>
    %191 = vector.multi_reduction <maximumf>, %190, %cst_68 [1] : vector<8x8xf32> to vector<8xf32>
    %192 = vector.shape_cast %191 : vector<8xf32> to vector<8x1xf32>
    %193 = vector.broadcast %192 : vector<8x1xf32> to vector<8x8xf32>
    %194 = arith.subf %190, %193 : vector<8x8xf32>
    %195 = math.exp %194 : vector<8x8xf32>
    %cst_69 = arith.constant dense<0.000000e+00> : vector<8xf32>
    %196 = vector.multi_reduction <add>, %195, %cst_69 [1] : vector<8x8xf32> to vector<8xf32>
    %197 = vector.shape_cast %196 : vector<8xf32> to vector<8x1xf32>
    %198 = tpu.reciprocal %197 {approx = true} : vector<8x1xf32> -> vector<8x1xf32>
    %199 = vector.broadcast %198 : vector<8x1xf32> to vector<8x8xf32>
    %200 = arith.mulf %195, %199 : vector<8x8xf32>
    %cst_70 = arith.constant dense<0.000000e+00> : vector<8x8xf32>
    %201 = tpu.matmul %200, %184, %cst_70 {dimension_numbers = #tpu.dot_dimension_numbers<[1], [0], [0], [1], [0, 0, 1, 1], [], []>} : vector<8x8xf32>, vector<8x8xf32>, vector<8x8xf32> -> vector<8x8xf32>
    %202 = tpu.concatenate %141, %161, %181, %201 in 1 : vector<8x8xf32>, vector<8x8xf32>, vector<8x8xf32>, vector<8x8xf32> -> vector<8x32xf32>
    %203 = tpu.concatenate %120, %202 in 0 : vector<8x32xf32>, vector<8x32xf32> -> vector<16x32xf32>
    %c0_71 = arith.constant 0 : index
    %c0_72 = arith.constant 0 : index
    %c0_73 = arith.constant 0 : index
    %204 = vector.load %arg7[%c0_71, %c0_72, %c0_73] : memref<2x32x32xf32, #tpu.memory_space<vmem>>, vector<1x32x32xf32>
    %205 = vector.shape_cast %204 : vector<1x32x32xf32> to vector<32x32xf32>
    %cst_74 = arith.constant dense<0.000000e+00> : vector<16x32xf32>
    %206 = tpu.matmul %203, %205, %cst_74 {dimension_numbers = #tpu.dot_dimension_numbers<[1], [0], [0], [1], [0, 0, 1, 1], [], []>} : vector<16x32xf32>, vector<32x32xf32>, vector<16x32xf32> -> vector<16x32xf32>
    %c0_75 = arith.constant 0 : index
    %c0_76 = arith.constant 0 : index
    %c0_77 = arith.constant 0 : index
    %207 = vector.load %arg8[%c0_75, %c0_76, %c0_77] : memref<2x1x32xf32, #tpu.memory_space<vmem>>, vector<1x1x32xf32>
    %208 = vector.shape_cast %207 : vector<1x1x32xf32> to vector<1x32xf32>
    %209 = vector.broadcast %208 : vector<1x32xf32> to vector<16x32xf32>
    %210 = arith.addf %206, %209 : vector<16x32xf32>
    %211 = arith.addf %7, %210 : vector<16x32xf32>
    %c0_78 = arith.constant 0 : index
    %c0_79 = arith.constant 0 : index
    %c0_80 = arith.constant 0 : index
    %212 = vector.load %arg9[%c0_78, %c0_79, %c0_80] : memref<2x1x32xf32, #tpu.memory_space<vmem>>, vector<1x1x32xf32>
    %213 = vector.shape_cast %212 : vector<1x1x32xf32> to vector<1x32xf32>
    %c0_81 = arith.constant 0 : index
    %c0_82 = arith.constant 0 : index
    %c0_83 = arith.constant 0 : index
    %214 = vector.load %arg10[%c0_81, %c0_82, %c0_83] : memref<2x1x32xf32, #tpu.memory_space<vmem>>, vector<1x1x32xf32>
    %215 = vector.shape_cast %214 : vector<1x1x32xf32> to vector<1x32xf32>
    %cst_84 = arith.constant dense<0.000000e+00> : vector<16xf32>
    %216 = vector.multi_reduction <add>, %211, %cst_84 [1] : vector<16x32xf32> to vector<16xf32>
    %217 = vector.shape_cast %216 : vector<16xf32> to vector<16x1xf32>
    %cst_85 = arith.constant 3.200000e+01 : f32
    %218 = vector.broadcast %cst_85 : f32 to vector<16x1xf32>
    %219 = arith.divf %217, %218 : vector<16x1xf32>
    %220 = vector.broadcast %219 : vector<16x1xf32> to vector<16x32xf32>
    %221 = arith.subf %211, %220 : vector<16x32xf32>
    %222 = arith.mulf %221, %221 : vector<16x32xf32>
    %cst_86 = arith.constant dense<0.000000e+00> : vector<16xf32>
    %223 = vector.multi_reduction <add>, %222, %cst_86 [1] : vector<16x32xf32> to vector<16xf32>
    %224 = vector.shape_cast %223 : vector<16xf32> to vector<16x1xf32>
    %cst_87 = arith.constant 3.200000e+01 : f32
    %225 = vector.broadcast %cst_87 : f32 to vector<16x1xf32>
    %226 = arith.divf %224, %225 : vector<16x1xf32>
    %cst_88 = arith.constant 9.99999996E-13 : f32
    %227 = vector.broadcast %cst_88 : f32 to vector<16x1xf32>
    %228 = arith.addf %226, %227 : vector<16x1xf32>
    %229 = math.rsqrt %228 : vector<16x1xf32>
    %230 = vector.broadcast %229 : vector<16x1xf32> to vector<16x32xf32>
    %231 = arith.mulf %221, %230 : vector<16x32xf32>
    %232 = vector.broadcast %213 : vector<1x32xf32> to vector<16x32xf32>
    %233 = arith.mulf %231, %232 : vector<16x32xf32>
    %234 = vector.broadcast %215 : vector<1x32xf32> to vector<16x32xf32>
    %235 = arith.addf %233, %234 : vector<16x32xf32>
    %c0_89 = arith.constant 0 : index
    %c0_90 = arith.constant 0 : index
    %c0_91 = arith.constant 0 : index
    %236 = vector.load %arg11[%c0_89, %c0_90, %c0_91] : memref<2x32x64xf32, #tpu.memory_space<vmem>>, vector<1x32x64xf32>
    %237 = vector.shape_cast %236 : vector<1x32x64xf32> to vector<32x64xf32>
    %cst_92 = arith.constant dense<0.000000e+00> : vector<16x64xf32>
    %238 = tpu.matmul %235, %237, %cst_92 {dimension_numbers = #tpu.dot_dimension_numbers<[1], [0], [0], [1], [0, 0, 1, 1], [], []>} : vector<16x32xf32>, vector<32x64xf32>, vector<16x64xf32> -> vector<16x64xf32>
    %c0_93 = arith.constant 0 : index
    %c0_94 = arith.constant 0 : index
    %c0_95 = arith.constant 0 : index
    %239 = vector.load %arg12[%c0_93, %c0_94, %c0_95] : memref<2x1x64xf32, #tpu.memory_space<vmem>>, vector<1x1x64xf32>
    %240 = vector.shape_cast %239 : vector<1x1x64xf32> to vector<1x64xf32>
    %241 = vector.broadcast %240 : vector<1x64xf32> to vector<16x64xf32>
    %242 = arith.addf %238, %241 : vector<16x64xf32>
    %cst_96 = arith.constant 5.000000e-01 : f32
    %243 = vector.broadcast %cst_96 : f32 to vector<16x64xf32>
    %244 = arith.mulf %242, %243 : vector<16x64xf32>
    %cst_97 = arith.constant 0.707106769 : f32
    %245 = vector.broadcast %cst_97 : f32 to vector<16x64xf32>
    %246 = arith.mulf %242, %245 : vector<16x64xf32>
    %cst_98 = arith.constant 0.000000e+00 : f32
    %247 = vector.broadcast %cst_98 : f32 to vector<16x64xf32>
    %248 = arith.cmpf olt, %246, %247 : vector<16x64xf32>
    %cst_99 = arith.constant -1.000000e+00 : f32
    %cst_100 = arith.constant 1.000000e+00 : f32
    %249 = vector.broadcast %cst_99 : f32 to vector<16x64xf32>
    %250 = vector.broadcast %cst_100 : f32 to vector<16x64xf32>
    %251 = arith.select %248, %249, %250 : vector<16x64xi1>, vector<16x64xf32>
    %252 = math.absf %246 : vector<16x64xf32>
    %cst_101 = arith.constant 0.327591091 : f32
    %253 = vector.broadcast %cst_101 : f32 to vector<16x64xf32>
    %254 = arith.mulf %253, %252 : vector<16x64xf32>
    %cst_102 = arith.constant 1.000000e+00 : f32
    %255 = vector.broadcast %cst_102 : f32 to vector<16x64xf32>
    %256 = arith.addf %255, %254 : vector<16x64xf32>
    %cst_103 = arith.constant 1.000000e+00 : f32
    %257 = vector.broadcast %cst_103 : f32 to vector<16x64xf32>
    %258 = arith.divf %257, %256 : vector<16x64xf32>
    %cst_104 = arith.constant 1.06140542 : f32
    %259 = vector.broadcast %cst_104 : f32 to vector<16x64xf32>
    %260 = arith.mulf %259, %258 : vector<16x64xf32>
    %cst_105 = arith.constant -1.45315206 : f32
    %261 = vector.broadcast %cst_105 : f32 to vector<16x64xf32>
    %262 = arith.addf %260, %261 : vector<16x64xf32>
    %263 = arith.mulf %262, %258 : vector<16x64xf32>
    %cst_106 = arith.constant 1.42141378 : f32
    %264 = vector.broadcast %cst_106 : f32 to vector<16x64xf32>
    %265 = arith.addf %263, %264 : vector<16x64xf32>
    %266 = arith.mulf %265, %258 : vector<16x64xf32>
    %cst_107 = arith.constant -0.284496725 : f32
    %267 = vector.broadcast %cst_107 : f32 to vector<16x64xf32>
    %268 = arith.addf %266, %267 : vector<16x64xf32>
    %269 = arith.mulf %268, %258 : vector<16x64xf32>
    %cst_108 = arith.constant 0.254829586 : f32
    %270 = vector.broadcast %cst_108 : f32 to vector<16x64xf32>
    %271 = arith.addf %269, %270 : vector<16x64xf32>
    %272 = arith.mulf %271, %258 : vector<16x64xf32>
    %cst_109 = arith.constant 0.000000e+00 : f32
    %273 = vector.broadcast %cst_109 : f32 to vector<16x64xf32>
    %274 = arith.subf %273, %252 : vector<16x64xf32>
    %275 = arith.mulf %274, %252 : vector<16x64xf32>
    %276 = math.exp %275 : vector<16x64xf32>
    %277 = arith.mulf %272, %276 : vector<16x64xf32>
    %cst_110 = arith.constant 1.000000e+00 : f32
    %278 = vector.broadcast %cst_110 : f32 to vector<16x64xf32>
    %279 = arith.subf %278, %277 : vector<16x64xf32>
    %280 = arith.mulf %251, %279 : vector<16x64xf32>
    %cst_111 = arith.constant 1.000000e+00 : f32
    %281 = vector.broadcast %cst_111 : f32 to vector<16x64xf32>
    %282 = arith.addf %281, %280 : vector<16x64xf32>
    %283 = arith.mulf %244, %282 : vector<16x64xf32>
    %c0_112 = arith.constant 0 : index
    %c0_113 = arith.constant 0 : index
    %c0_114 = arith.constant 0 : index
    %284 = vector.load %arg13[%c0_112, %c0_113, %c0_114] : memref<2x64x32xf32, #tpu.memory_space<vmem>>, vector<1x64x32xf32>
    %285 = vector.shape_cast %284 : vector<1x64x32xf32> to vector<64x32xf32>
    %cst_115 = arith.constant dense<0.000000e+00> : vector<16x32xf32>
    %286 = tpu.matmul %283, %285, %cst_115 {dimension_numbers = #tpu.dot_dimension_numbers<[1], [0], [0], [1], [0, 0, 1, 1], [], []>} : vector<16x64xf32>, vector<64x32xf32>, vector<16x32xf32> -> vector<16x32xf32>
    %c0_116 = arith.constant 0 : index
    %c0_117 = arith.constant 0 : index
    %c0_118 = arith.constant 0 : index
    %287 = vector.load %arg14[%c0_116, %c0_117, %c0_118] : memref<2x1x32xf32, #tpu.memory_space<vmem>>, vector<1x1x32xf32>
    %288 = vector.shape_cast %287 : vector<1x1x32xf32> to vector<1x32xf32>
    %289 = vector.broadcast %288 : vector<1x32xf32> to vector<16x32xf32>
    %290 = arith.addf %286, %289 : vector<16x32xf32>
    %291 = arith.addf %211, %290 : vector<16x32xf32>
    %c1 = arith.constant 1 : index
    %c0_119 = arith.constant 0 : index
    %c0_120 = arith.constant 0 : index
    %292 = vector.load %arg3[%c1, %c0_119, %c0_120] : memref<2x1x32xf32, #tpu.memory_space<vmem>>, vector<1x1x32xf32>
    %293 = vector.shape_cast %292 : vector<1x1x32xf32> to vector<1x32xf32>
    %c1_121 = arith.constant 1 : index
    %c0_122 = arith.constant 0 : index
    %c0_123 = arith.constant 0 : index
    %294 = vector.load %arg4[%c1_121, %c0_122, %c0_123] : memref<2x1x32xf32, #tpu.memory_space<vmem>>, vector<1x1x32xf32>
    %295 = vector.shape_cast %294 : vector<1x1x32xf32> to vector<1x32xf32>
    %cst_124 = arith.constant dense<0.000000e+00> : vector<16xf32>
    %296 = vector.multi_reduction <add>, %291, %cst_124 [1] : vector<16x32xf32> to vector<16xf32>
    %297 = vector.shape_cast %296 : vector<16xf32> to vector<16x1xf32>
    %cst_125 = arith.constant 3.200000e+01 : f32
    %298 = vector.broadcast %cst_125 : f32 to vector<16x1xf32>
    %299 = arith.divf %297, %298 : vector<16x1xf32>
    %300 = vector.broadcast %299 : vector<16x1xf32> to vector<16x32xf32>
    %301 = arith.subf %291, %300 : vector<16x32xf32>
    %302 = arith.mulf %301, %301 : vector<16x32xf32>
    %cst_126 = arith.constant dense<0.000000e+00> : vector<16xf32>
    %303 = vector.multi_reduction <add>, %302, %cst_126 [1] : vector<16x32xf32> to vector<16xf32>
    %304 = vector.shape_cast %303 : vector<16xf32> to vector<16x1xf32>
    %cst_127 = arith.constant 3.200000e+01 : f32
    %305 = vector.broadcast %cst_127 : f32 to vector<16x1xf32>
    %306 = arith.divf %304, %305 : vector<16x1xf32>
    %cst_128 = arith.constant 9.99999996E-13 : f32
    %307 = vector.broadcast %cst_128 : f32 to vector<16x1xf32>
    %308 = arith.addf %306, %307 : vector<16x1xf32>
    %309 = math.rsqrt %308 : vector<16x1xf32>
    %310 = vector.broadcast %309 : vector<16x1xf32> to vector<16x32xf32>
    %311 = arith.mulf %301, %310 : vector<16x32xf32>
    %312 = vector.broadcast %293 : vector<1x32xf32> to vector<16x32xf32>
    %313 = arith.mulf %311, %312 : vector<16x32xf32>
    %314 = vector.broadcast %295 : vector<1x32xf32> to vector<16x32xf32>
    %315 = arith.addf %313, %314 : vector<16x32xf32>
    %c1_129 = arith.constant 1 : index
    %c0_130 = arith.constant 0 : index
    %c0_131 = arith.constant 0 : index
    %316 = vector.load %arg5[%c1_129, %c0_130, %c0_131] : memref<2x32x96xf32, #tpu.memory_space<vmem>>, vector<1x32x96xf32>
    %317 = vector.shape_cast %316 : vector<1x32x96xf32> to vector<32x96xf32>
    %cst_132 = arith.constant dense<0.000000e+00> : vector<16x96xf32>
    %318 = tpu.matmul %315, %317, %cst_132 {dimension_numbers = #tpu.dot_dimension_numbers<[1], [0], [0], [1], [0, 0, 1, 1], [], []>} : vector<16x32xf32>, vector<32x96xf32>, vector<16x96xf32> -> vector<16x96xf32>
    %c1_133 = arith.constant 1 : index
    %c0_134 = arith.constant 0 : index
    %c0_135 = arith.constant 0 : index
    %319 = vector.load %arg6[%c1_133, %c0_134, %c0_135] : memref<2x1x96xf32, #tpu.memory_space<vmem>>, vector<1x1x96xf32>
    %320 = vector.shape_cast %319 : vector<1x1x96xf32> to vector<1x96xf32>
    %321 = vector.broadcast %320 : vector<1x96xf32> to vector<16x96xf32>
    %322 = arith.addf %318, %321 : vector<16x96xf32>
    %323 = vector.extract_strided_slice %322 {offsets = [0, 0], sizes = [8, 96], strides = [1, 1]} : vector<16x96xf32> to vector<8x96xf32>
    %324 = vector.extract_strided_slice %323 {offsets = [0, 0], sizes = [8, 8], strides = [1, 1]} : vector<8x96xf32> to vector<8x8xf32>
    %325 = vector.extract_strided_slice %323 {offsets = [0, 32], sizes = [8, 8], strides = [1, 1]} : vector<8x96xf32> to vector<8x8xf32>
    %326 = vector.extract_strided_slice %323 {offsets = [0, 64], sizes = [8, 8], strides = [1, 1]} : vector<8x96xf32> to vector<8x8xf32>
    %327 = tpu.transpose %325, [1, 0] : vector<8x8xf32> -> vector<8x8xf32>
    %cst_136 = arith.constant dense<0.000000e+00> : vector<8x8xf32>
    %328 = tpu.matmul %324, %327, %cst_136 {dimension_numbers = #tpu.dot_dimension_numbers<[1], [0], [0], [1], [0, 0, 1, 1], [], []>} : vector<8x8xf32>, vector<8x8xf32>, vector<8x8xf32> -> vector<8x8xf32>
    %cst_137 = arith.constant 0.353553385 : f32
    %329 = vector.broadcast %cst_137 : f32 to vector<8x8xf32>
    %330 = arith.mulf %328, %329 : vector<8x8xf32>
    %cst_138 = arith.constant -1.000000e+30 : f32
    %331 = vector.broadcast %cst_138 : f32 to vector<8x8xf32>
    %332 = arith.select %2, %330, %331 : vector<8x8xi1>, vector<8x8xf32>
    %cst_139 = arith.constant dense<0xFF800000> : vector<8xf32>
    %333 = vector.multi_reduction <maximumf>, %332, %cst_139 [1] : vector<8x8xf32> to vector<8xf32>
    %334 = vector.shape_cast %333 : vector<8xf32> to vector<8x1xf32>
    %335 = vector.broadcast %334 : vector<8x1xf32> to vector<8x8xf32>
    %336 = arith.subf %332, %335 : vector<8x8xf32>
    %337 = math.exp %336 : vector<8x8xf32>
    %cst_140 = arith.constant dense<0.000000e+00> : vector<8xf32>
    %338 = vector.multi_reduction <add>, %337, %cst_140 [1] : vector<8x8xf32> to vector<8xf32>
    %339 = vector.shape_cast %338 : vector<8xf32> to vector<8x1xf32>
    %340 = tpu.reciprocal %339 {approx = true} : vector<8x1xf32> -> vector<8x1xf32>
    %341 = vector.broadcast %340 : vector<8x1xf32> to vector<8x8xf32>
    %342 = arith.mulf %337, %341 : vector<8x8xf32>
    %cst_141 = arith.constant dense<0.000000e+00> : vector<8x8xf32>
    %343 = tpu.matmul %342, %326, %cst_141 {dimension_numbers = #tpu.dot_dimension_numbers<[1], [0], [0], [1], [0, 0, 1, 1], [], []>} : vector<8x8xf32>, vector<8x8xf32>, vector<8x8xf32> -> vector<8x8xf32>
    %344 = vector.extract_strided_slice %323 {offsets = [0, 8], sizes = [8, 8], strides = [1, 1]} : vector<8x96xf32> to vector<8x8xf32>
    %345 = vector.extract_strided_slice %323 {offsets = [0, 40], sizes = [8, 8], strides = [1, 1]} : vector<8x96xf32> to vector<8x8xf32>
    %346 = vector.extract_strided_slice %323 {offsets = [0, 72], sizes = [8, 8], strides = [1, 1]} : vector<8x96xf32> to vector<8x8xf32>
    %347 = tpu.transpose %345, [1, 0] : vector<8x8xf32> -> vector<8x8xf32>
    %cst_142 = arith.constant dense<0.000000e+00> : vector<8x8xf32>
    %348 = tpu.matmul %344, %347, %cst_142 {dimension_numbers = #tpu.dot_dimension_numbers<[1], [0], [0], [1], [0, 0, 1, 1], [], []>} : vector<8x8xf32>, vector<8x8xf32>, vector<8x8xf32> -> vector<8x8xf32>
    %cst_143 = arith.constant 0.353553385 : f32
    %349 = vector.broadcast %cst_143 : f32 to vector<8x8xf32>
    %350 = arith.mulf %348, %349 : vector<8x8xf32>
    %cst_144 = arith.constant -1.000000e+30 : f32
    %351 = vector.broadcast %cst_144 : f32 to vector<8x8xf32>
    %352 = arith.select %2, %350, %351 : vector<8x8xi1>, vector<8x8xf32>
    %cst_145 = arith.constant dense<0xFF800000> : vector<8xf32>
    %353 = vector.multi_reduction <maximumf>, %352, %cst_145 [1] : vector<8x8xf32> to vector<8xf32>
    %354 = vector.shape_cast %353 : vector<8xf32> to vector<8x1xf32>
    %355 = vector.broadcast %354 : vector<8x1xf32> to vector<8x8xf32>
    %356 = arith.subf %352, %355 : vector<8x8xf32>
    %357 = math.exp %356 : vector<8x8xf32>
    %cst_146 = arith.constant dense<0.000000e+00> : vector<8xf32>
    %358 = vector.multi_reduction <add>, %357, %cst_146 [1] : vector<8x8xf32> to vector<8xf32>
    %359 = vector.shape_cast %358 : vector<8xf32> to vector<8x1xf32>
    %360 = tpu.reciprocal %359 {approx = true} : vector<8x1xf32> -> vector<8x1xf32>
    %361 = vector.broadcast %360 : vector<8x1xf32> to vector<8x8xf32>
    %362 = arith.mulf %357, %361 : vector<8x8xf32>
    %cst_147 = arith.constant dense<0.000000e+00> : vector<8x8xf32>
    %363 = tpu.matmul %362, %346, %cst_147 {dimension_numbers = #tpu.dot_dimension_numbers<[1], [0], [0], [1], [0, 0, 1, 1], [], []>} : vector<8x8xf32>, vector<8x8xf32>, vector<8x8xf32> -> vector<8x8xf32>
    %364 = vector.extract_strided_slice %323 {offsets = [0, 16], sizes = [8, 8], strides = [1, 1]} : vector<8x96xf32> to vector<8x8xf32>
    %365 = vector.extract_strided_slice %323 {offsets = [0, 48], sizes = [8, 8], strides = [1, 1]} : vector<8x96xf32> to vector<8x8xf32>
    %366 = vector.extract_strided_slice %323 {offsets = [0, 80], sizes = [8, 8], strides = [1, 1]} : vector<8x96xf32> to vector<8x8xf32>
    %367 = tpu.transpose %365, [1, 0] : vector<8x8xf32> -> vector<8x8xf32>
    %cst_148 = arith.constant dense<0.000000e+00> : vector<8x8xf32>
    %368 = tpu.matmul %364, %367, %cst_148 {dimension_numbers = #tpu.dot_dimension_numbers<[1], [0], [0], [1], [0, 0, 1, 1], [], []>} : vector<8x8xf32>, vector<8x8xf32>, vector<8x8xf32> -> vector<8x8xf32>
    %cst_149 = arith.constant 0.353553385 : f32
    %369 = vector.broadcast %cst_149 : f32 to vector<8x8xf32>
    %370 = arith.mulf %368, %369 : vector<8x8xf32>
    %cst_150 = arith.constant -1.000000e+30 : f32
    %371 = vector.broadcast %cst_150 : f32 to vector<8x8xf32>
    %372 = arith.select %2, %370, %371 : vector<8x8xi1>, vector<8x8xf32>
    %cst_151 = arith.constant dense<0xFF800000> : vector<8xf32>
    %373 = vector.multi_reduction <maximumf>, %372, %cst_151 [1] : vector<8x8xf32> to vector<8xf32>
    %374 = vector.shape_cast %373 : vector<8xf32> to vector<8x1xf32>
    %375 = vector.broadcast %374 : vector<8x1xf32> to vector<8x8xf32>
    %376 = arith.subf %372, %375 : vector<8x8xf32>
    %377 = math.exp %376 : vector<8x8xf32>
    %cst_152 = arith.constant dense<0.000000e+00> : vector<8xf32>
    %378 = vector.multi_reduction <add>, %377, %cst_152 [1] : vector<8x8xf32> to vector<8xf32>
    %379 = vector.shape_cast %378 : vector<8xf32> to vector<8x1xf32>
    %380 = tpu.reciprocal %379 {approx = true} : vector<8x1xf32> -> vector<8x1xf32>
    %381 = vector.broadcast %380 : vector<8x1xf32> to vector<8x8xf32>
    %382 = arith.mulf %377, %381 : vector<8x8xf32>
    %cst_153 = arith.constant dense<0.000000e+00> : vector<8x8xf32>
    %383 = tpu.matmul %382, %366, %cst_153 {dimension_numbers = #tpu.dot_dimension_numbers<[1], [0], [0], [1], [0, 0, 1, 1], [], []>} : vector<8x8xf32>, vector<8x8xf32>, vector<8x8xf32> -> vector<8x8xf32>
    %384 = vector.extract_strided_slice %323 {offsets = [0, 24], sizes = [8, 8], strides = [1, 1]} : vector<8x96xf32> to vector<8x8xf32>
    %385 = vector.extract_strided_slice %323 {offsets = [0, 56], sizes = [8, 8], strides = [1, 1]} : vector<8x96xf32> to vector<8x8xf32>
    %386 = vector.extract_strided_slice %323 {offsets = [0, 88], sizes = [8, 8], strides = [1, 1]} : vector<8x96xf32> to vector<8x8xf32>
    %387 = tpu.transpose %385, [1, 0] : vector<8x8xf32> -> vector<8x8xf32>
    %cst_154 = arith.constant dense<0.000000e+00> : vector<8x8xf32>
    %388 = tpu.matmul %384, %387, %cst_154 {dimension_numbers = #tpu.dot_dimension_numbers<[1], [0], [0], [1], [0, 0, 1, 1], [], []>} : vector<8x8xf32>, vector<8x8xf32>, vector<8x8xf32> -> vector<8x8xf32>
    %cst_155 = arith.constant 0.353553385 : f32
    %389 = vector.broadcast %cst_155 : f32 to vector<8x8xf32>
    %390 = arith.mulf %388, %389 : vector<8x8xf32>
    %cst_156 = arith.constant -1.000000e+30 : f32
    %391 = vector.broadcast %cst_156 : f32 to vector<8x8xf32>
    %392 = arith.select %2, %390, %391 : vector<8x8xi1>, vector<8x8xf32>
    %cst_157 = arith.constant dense<0xFF800000> : vector<8xf32>
    %393 = vector.multi_reduction <maximumf>, %392, %cst_157 [1] : vector<8x8xf32> to vector<8xf32>
    %394 = vector.shape_cast %393 : vector<8xf32> to vector<8x1xf32>
    %395 = vector.broadcast %394 : vector<8x1xf32> to vector<8x8xf32>
    %396 = arith.subf %392, %395 : vector<8x8xf32>
    %397 = math.exp %396 : vector<8x8xf32>
    %cst_158 = arith.constant dense<0.000000e+00> : vector<8xf32>
    %398 = vector.multi_reduction <add>, %397, %cst_158 [1] : vector<8x8xf32> to vector<8xf32>
    %399 = vector.shape_cast %398 : vector<8xf32> to vector<8x1xf32>
    %400 = tpu.reciprocal %399 {approx = true} : vector<8x1xf32> -> vector<8x1xf32>
    %401 = vector.broadcast %400 : vector<8x1xf32> to vector<8x8xf32>
    %402 = arith.mulf %397, %401 : vector<8x8xf32>
    %cst_159 = arith.constant dense<0.000000e+00> : vector<8x8xf32>
    %403 = tpu.matmul %402, %386, %cst_159 {dimension_numbers = #tpu.dot_dimension_numbers<[1], [0], [0], [1], [0, 0, 1, 1], [], []>} : vector<8x8xf32>, vector<8x8xf32>, vector<8x8xf32> -> vector<8x8xf32>
    %404 = tpu.concatenate %343, %363, %383, %403 in 1 : vector<8x8xf32>, vector<8x8xf32>, vector<8x8xf32>, vector<8x8xf32> -> vector<8x32xf32>
    %405 = vector.extract_strided_slice %322 {offsets = [8, 0], sizes = [8, 96], strides = [1, 1]} : vector<16x96xf32> to vector<8x96xf32>
    %406 = vector.extract_strided_slice %405 {offsets = [0, 0], sizes = [8, 8], strides = [1, 1]} : vector<8x96xf32> to vector<8x8xf32>
    %407 = vector.extract_strided_slice %405 {offsets = [0, 32], sizes = [8, 8], strides = [1, 1]} : vector<8x96xf32> to vector<8x8xf32>
    %408 = vector.extract_strided_slice %405 {offsets = [0, 64], sizes = [8, 8], strides = [1, 1]} : vector<8x96xf32> to vector<8x8xf32>
    %409 = tpu.transpose %407, [1, 0] : vector<8x8xf32> -> vector<8x8xf32>
    %cst_160 = arith.constant dense<0.000000e+00> : vector<8x8xf32>
    %410 = tpu.matmul %406, %409, %cst_160 {dimension_numbers = #tpu.dot_dimension_numbers<[1], [0], [0], [1], [0, 0, 1, 1], [], []>} : vector<8x8xf32>, vector<8x8xf32>, vector<8x8xf32> -> vector<8x8xf32>
    %cst_161 = arith.constant 0.353553385 : f32
    %411 = vector.broadcast %cst_161 : f32 to vector<8x8xf32>
    %412 = arith.mulf %410, %411 : vector<8x8xf32>
    %cst_162 = arith.constant -1.000000e+30 : f32
    %413 = vector.broadcast %cst_162 : f32 to vector<8x8xf32>
    %414 = arith.select %2, %412, %413 : vector<8x8xi1>, vector<8x8xf32>
    %cst_163 = arith.constant dense<0xFF800000> : vector<8xf32>
    %415 = vector.multi_reduction <maximumf>, %414, %cst_163 [1] : vector<8x8xf32> to vector<8xf32>
    %416 = vector.shape_cast %415 : vector<8xf32> to vector<8x1xf32>
    %417 = vector.broadcast %416 : vector<8x1xf32> to vector<8x8xf32>
    %418 = arith.subf %414, %417 : vector<8x8xf32>
    %419 = math.exp %418 : vector<8x8xf32>
    %cst_164 = arith.constant dense<0.000000e+00> : vector<8xf32>
    %420 = vector.multi_reduction <add>, %419, %cst_164 [1] : vector<8x8xf32> to vector<8xf32>
    %421 = vector.shape_cast %420 : vector<8xf32> to vector<8x1xf32>
    %422 = tpu.reciprocal %421 {approx = true} : vector<8x1xf32> -> vector<8x1xf32>
    %423 = vector.broadcast %422 : vector<8x1xf32> to vector<8x8xf32>
    %424 = arith.mulf %419, %423 : vector<8x8xf32>
    %cst_165 = arith.constant dense<0.000000e+00> : vector<8x8xf32>
    %425 = tpu.matmul %424, %408, %cst_165 {dimension_numbers = #tpu.dot_dimension_numbers<[1], [0], [0], [1], [0, 0, 1, 1], [], []>} : vector<8x8xf32>, vector<8x8xf32>, vector<8x8xf32> -> vector<8x8xf32>
    %426 = vector.extract_strided_slice %405 {offsets = [0, 8], sizes = [8, 8], strides = [1, 1]} : vector<8x96xf32> to vector<8x8xf32>
    %427 = vector.extract_strided_slice %405 {offsets = [0, 40], sizes = [8, 8], strides = [1, 1]} : vector<8x96xf32> to vector<8x8xf32>
    %428 = vector.extract_strided_slice %405 {offsets = [0, 72], sizes = [8, 8], strides = [1, 1]} : vector<8x96xf32> to vector<8x8xf32>
    %429 = tpu.transpose %427, [1, 0] : vector<8x8xf32> -> vector<8x8xf32>
    %cst_166 = arith.constant dense<0.000000e+00> : vector<8x8xf32>
    %430 = tpu.matmul %426, %429, %cst_166 {dimension_numbers = #tpu.dot_dimension_numbers<[1], [0], [0], [1], [0, 0, 1, 1], [], []>} : vector<8x8xf32>, vector<8x8xf32>, vector<8x8xf32> -> vector<8x8xf32>
    %cst_167 = arith.constant 0.353553385 : f32
    %431 = vector.broadcast %cst_167 : f32 to vector<8x8xf32>
    %432 = arith.mulf %430, %431 : vector<8x8xf32>
    %cst_168 = arith.constant -1.000000e+30 : f32
    %433 = vector.broadcast %cst_168 : f32 to vector<8x8xf32>
    %434 = arith.select %2, %432, %433 : vector<8x8xi1>, vector<8x8xf32>
    %cst_169 = arith.constant dense<0xFF800000> : vector<8xf32>
    %435 = vector.multi_reduction <maximumf>, %434, %cst_169 [1] : vector<8x8xf32> to vector<8xf32>
    %436 = vector.shape_cast %435 : vector<8xf32> to vector<8x1xf32>
    %437 = vector.broadcast %436 : vector<8x1xf32> to vector<8x8xf32>
    %438 = arith.subf %434, %437 : vector<8x8xf32>
    %439 = math.exp %438 : vector<8x8xf32>
    %cst_170 = arith.constant dense<0.000000e+00> : vector<8xf32>
    %440 = vector.multi_reduction <add>, %439, %cst_170 [1] : vector<8x8xf32> to vector<8xf32>
    %441 = vector.shape_cast %440 : vector<8xf32> to vector<8x1xf32>
    %442 = tpu.reciprocal %441 {approx = true} : vector<8x1xf32> -> vector<8x1xf32>
    %443 = vector.broadcast %442 : vector<8x1xf32> to vector<8x8xf32>
    %444 = arith.mulf %439, %443 : vector<8x8xf32>
    %cst_171 = arith.constant dense<0.000000e+00> : vector<8x8xf32>
    %445 = tpu.matmul %444, %428, %cst_171 {dimension_numbers = #tpu.dot_dimension_numbers<[1], [0], [0], [1], [0, 0, 1, 1], [], []>} : vector<8x8xf32>, vector<8x8xf32>, vector<8x8xf32> -> vector<8x8xf32>
    %446 = vector.extract_strided_slice %405 {offsets = [0, 16], sizes = [8, 8], strides = [1, 1]} : vector<8x96xf32> to vector<8x8xf32>
    %447 = vector.extract_strided_slice %405 {offsets = [0, 48], sizes = [8, 8], strides = [1, 1]} : vector<8x96xf32> to vector<8x8xf32>
    %448 = vector.extract_strided_slice %405 {offsets = [0, 80], sizes = [8, 8], strides = [1, 1]} : vector<8x96xf32> to vector<8x8xf32>
    %449 = tpu.transpose %447, [1, 0] : vector<8x8xf32> -> vector<8x8xf32>
    %cst_172 = arith.constant dense<0.000000e+00> : vector<8x8xf32>
    %450 = tpu.matmul %446, %449, %cst_172 {dimension_numbers = #tpu.dot_dimension_numbers<[1], [0], [0], [1], [0, 0, 1, 1], [], []>} : vector<8x8xf32>, vector<8x8xf32>, vector<8x8xf32> -> vector<8x8xf32>
    %cst_173 = arith.constant 0.353553385 : f32
    %451 = vector.broadcast %cst_173 : f32 to vector<8x8xf32>
    %452 = arith.mulf %450, %451 : vector<8x8xf32>
    %cst_174 = arith.constant -1.000000e+30 : f32
    %453 = vector.broadcast %cst_174 : f32 to vector<8x8xf32>
    %454 = arith.select %2, %452, %453 : vector<8x8xi1>, vector<8x8xf32>
    %cst_175 = arith.constant dense<0xFF800000> : vector<8xf32>
    %455 = vector.multi_reduction <maximumf>, %454, %cst_175 [1] : vector<8x8xf32> to vector<8xf32>
    %456 = vector.shape_cast %455 : vector<8xf32> to vector<8x1xf32>
    %457 = vector.broadcast %456 : vector<8x1xf32> to vector<8x8xf32>
    %458 = arith.subf %454, %457 : vector<8x8xf32>
    %459 = math.exp %458 : vector<8x8xf32>
    %cst_176 = arith.constant dense<0.000000e+00> : vector<8xf32>
    %460 = vector.multi_reduction <add>, %459, %cst_176 [1] : vector<8x8xf32> to vector<8xf32>
    %461 = vector.shape_cast %460 : vector<8xf32> to vector<8x1xf32>
    %462 = tpu.reciprocal %461 {approx = true} : vector<8x1xf32> -> vector<8x1xf32>
    %463 = vector.broadcast %462 : vector<8x1xf32> to vector<8x8xf32>
    %464 = arith.mulf %459, %463 : vector<8x8xf32>
    %cst_177 = arith.constant dense<0.000000e+00> : vector<8x8xf32>
    %465 = tpu.matmul %464, %448, %cst_177 {dimension_numbers = #tpu.dot_dimension_numbers<[1], [0], [0], [1], [0, 0, 1, 1], [], []>} : vector<8x8xf32>, vector<8x8xf32>, vector<8x8xf32> -> vector<8x8xf32>
    %466 = vector.extract_strided_slice %405 {offsets = [0, 24], sizes = [8, 8], strides = [1, 1]} : vector<8x96xf32> to vector<8x8xf32>
    %467 = vector.extract_strided_slice %405 {offsets = [0, 56], sizes = [8, 8], strides = [1, 1]} : vector<8x96xf32> to vector<8x8xf32>
    %468 = vector.extract_strided_slice %405 {offsets = [0, 88], sizes = [8, 8], strides = [1, 1]} : vector<8x96xf32> to vector<8x8xf32>
    %469 = tpu.transpose %467, [1, 0] : vector<8x8xf32> -> vector<8x8xf32>
    %cst_178 = arith.constant dense<0.000000e+00> : vector<8x8xf32>
    %470 = tpu.matmul %466, %469, %cst_178 {dimension_numbers = #tpu.dot_dimension_numbers<[1], [0], [0], [1], [0, 0, 1, 1], [], []>} : vector<8x8xf32>, vector<8x8xf32>, vector<8x8xf32> -> vector<8x8xf32>
    %cst_179 = arith.constant 0.353553385 : f32
    %471 = vector.broadcast %cst_179 : f32 to vector<8x8xf32>
    %472 = arith.mulf %470, %471 : vector<8x8xf32>
    %cst_180 = arith.constant -1.000000e+30 : f32
    %473 = vector.broadcast %cst_180 : f32 to vector<8x8xf32>
    %474 = arith.select %2, %472, %473 : vector<8x8xi1>, vector<8x8xf32>
    %cst_181 = arith.constant dense<0xFF800000> : vector<8xf32>
    %475 = vector.multi_reduction <maximumf>, %474, %cst_181 [1] : vector<8x8xf32> to vector<8xf32>
    %476 = vector.shape_cast %475 : vector<8xf32> to vector<8x1xf32>
    %477 = vector.broadcast %476 : vector<8x1xf32> to vector<8x8xf32>
    %478 = arith.subf %474, %477 : vector<8x8xf32>
    %479 = math.exp %478 : vector<8x8xf32>
    %cst_182 = arith.constant dense<0.000000e+00> : vector<8xf32>
    %480 = vector.multi_reduction <add>, %479, %cst_182 [1] : vector<8x8xf32> to vector<8xf32>
    %481 = vector.shape_cast %480 : vector<8xf32> to vector<8x1xf32>
    %482 = tpu.reciprocal %481 {approx = true} : vector<8x1xf32> -> vector<8x1xf32>
    %483 = vector.broadcast %482 : vector<8x1xf32> to vector<8x8xf32>
    %484 = arith.mulf %479, %483 : vector<8x8xf32>
    %cst_183 = arith.constant dense<0.000000e+00> : vector<8x8xf32>
    %485 = tpu.matmul %484, %468, %cst_183 {dimension_numbers = #tpu.dot_dimension_numbers<[1], [0], [0], [1], [0, 0, 1, 1], [], []>} : vector<8x8xf32>, vector<8x8xf32>, vector<8x8xf32> -> vector<8x8xf32>
    %486 = tpu.concatenate %425, %445, %465, %485 in 1 : vector<8x8xf32>, vector<8x8xf32>, vector<8x8xf32>, vector<8x8xf32> -> vector<8x32xf32>
    %487 = tpu.concatenate %404, %486 in 0 : vector<8x32xf32>, vector<8x32xf32> -> vector<16x32xf32>
    %c1_184 = arith.constant 1 : index
    %c0_185 = arith.constant 0 : index
    %c0_186 = arith.constant 0 : index
    %488 = vector.load %arg7[%c1_184, %c0_185, %c0_186] : memref<2x32x32xf32, #tpu.memory_space<vmem>>, vector<1x32x32xf32>
    %489 = vector.shape_cast %488 : vector<1x32x32xf32> to vector<32x32xf32>
    %cst_187 = arith.constant dense<0.000000e+00> : vector<16x32xf32>
    %490 = tpu.matmul %487, %489, %cst_187 {dimension_numbers = #tpu.dot_dimension_numbers<[1], [0], [0], [1], [0, 0, 1, 1], [], []>} : vector<16x32xf32>, vector<32x32xf32>, vector<16x32xf32> -> vector<16x32xf32>
    %c1_188 = arith.constant 1 : index
    %c0_189 = arith.constant 0 : index
    %c0_190 = arith.constant 0 : index
    %491 = vector.load %arg8[%c1_188, %c0_189, %c0_190] : memref<2x1x32xf32, #tpu.memory_space<vmem>>, vector<1x1x32xf32>
    %492 = vector.shape_cast %491 : vector<1x1x32xf32> to vector<1x32xf32>
    %493 = vector.broadcast %492 : vector<1x32xf32> to vector<16x32xf32>
    %494 = arith.addf %490, %493 : vector<16x32xf32>
    %495 = arith.addf %291, %494 : vector<16x32xf32>
    %c1_191 = arith.constant 1 : index
    %c0_192 = arith.constant 0 : index
    %c0_193 = arith.constant 0 : index
    %496 = vector.load %arg9[%c1_191, %c0_192, %c0_193] : memref<2x1x32xf32, #tpu.memory_space<vmem>>, vector<1x1x32xf32>
    %497 = vector.shape_cast %496 : vector<1x1x32xf32> to vector<1x32xf32>
    %c1_194 = arith.constant 1 : index
    %c0_195 = arith.constant 0 : index
    %c0_196 = arith.constant 0 : index
    %498 = vector.load %arg10[%c1_194, %c0_195, %c0_196] : memref<2x1x32xf32, #tpu.memory_space<vmem>>, vector<1x1x32xf32>
    %499 = vector.shape_cast %498 : vector<1x1x32xf32> to vector<1x32xf32>
    %cst_197 = arith.constant dense<0.000000e+00> : vector<16xf32>
    %500 = vector.multi_reduction <add>, %495, %cst_197 [1] : vector<16x32xf32> to vector<16xf32>
    %501 = vector.shape_cast %500 : vector<16xf32> to vector<16x1xf32>
    %cst_198 = arith.constant 3.200000e+01 : f32
    %502 = vector.broadcast %cst_198 : f32 to vector<16x1xf32>
    %503 = arith.divf %501, %502 : vector<16x1xf32>
    %504 = vector.broadcast %503 : vector<16x1xf32> to vector<16x32xf32>
    %505 = arith.subf %495, %504 : vector<16x32xf32>
    %506 = arith.mulf %505, %505 : vector<16x32xf32>
    %cst_199 = arith.constant dense<0.000000e+00> : vector<16xf32>
    %507 = vector.multi_reduction <add>, %506, %cst_199 [1] : vector<16x32xf32> to vector<16xf32>
    %508 = vector.shape_cast %507 : vector<16xf32> to vector<16x1xf32>
    %cst_200 = arith.constant 3.200000e+01 : f32
    %509 = vector.broadcast %cst_200 : f32 to vector<16x1xf32>
    %510 = arith.divf %508, %509 : vector<16x1xf32>
    %cst_201 = arith.constant 9.99999996E-13 : f32
    %511 = vector.broadcast %cst_201 : f32 to vector<16x1xf32>
    %512 = arith.addf %510, %511 : vector<16x1xf32>
    %513 = math.rsqrt %512 : vector<16x1xf32>
    %514 = vector.broadcast %513 : vector<16x1xf32> to vector<16x32xf32>
    %515 = arith.mulf %505, %514 : vector<16x32xf32>
    %516 = vector.broadcast %497 : vector<1x32xf32> to vector<16x32xf32>
    %517 = arith.mulf %515, %516 : vector<16x32xf32>
    %518 = vector.broadcast %499 : vector<1x32xf32> to vector<16x32xf32>
    %519 = arith.addf %517, %518 : vector<16x32xf32>
    %c1_202 = arith.constant 1 : index
    %c0_203 = arith.constant 0 : index
    %c0_204 = arith.constant 0 : index
    %520 = vector.load %arg11[%c1_202, %c0_203, %c0_204] : memref<2x32x64xf32, #tpu.memory_space<vmem>>, vector<1x32x64xf32>
    %521 = vector.shape_cast %520 : vector<1x32x64xf32> to vector<32x64xf32>
    %cst_205 = arith.constant dense<0.000000e+00> : vector<16x64xf32>
    %522 = tpu.matmul %519, %521, %cst_205 {dimension_numbers = #tpu.dot_dimension_numbers<[1], [0], [0], [1], [0, 0, 1, 1], [], []>} : vector<16x32xf32>, vector<32x64xf32>, vector<16x64xf32> -> vector<16x64xf32>
    %c1_206 = arith.constant 1 : index
    %c0_207 = arith.constant 0 : index
    %c0_208 = arith.constant 0 : index
    %523 = vector.load %arg12[%c1_206, %c0_207, %c0_208] : memref<2x1x64xf32, #tpu.memory_space<vmem>>, vector<1x1x64xf32>
    %524 = vector.shape_cast %523 : vector<1x1x64xf32> to vector<1x64xf32>
    %525 = vector.broadcast %524 : vector<1x64xf32> to vector<16x64xf32>
    %526 = arith.addf %522, %525 : vector<16x64xf32>
    %cst_209 = arith.constant 5.000000e-01 : f32
    %527 = vector.broadcast %cst_209 : f32 to vector<16x64xf32>
    %528 = arith.mulf %526, %527 : vector<16x64xf32>
    %cst_210 = arith.constant 0.707106769 : f32
    %529 = vector.broadcast %cst_210 : f32 to vector<16x64xf32>
    %530 = arith.mulf %526, %529 : vector<16x64xf32>
    %cst_211 = arith.constant 0.000000e+00 : f32
    %531 = vector.broadcast %cst_211 : f32 to vector<16x64xf32>
    %532 = arith.cmpf olt, %530, %531 : vector<16x64xf32>
    %cst_212 = arith.constant -1.000000e+00 : f32
    %cst_213 = arith.constant 1.000000e+00 : f32
    %533 = vector.broadcast %cst_212 : f32 to vector<16x64xf32>
    %534 = vector.broadcast %cst_213 : f32 to vector<16x64xf32>
    %535 = arith.select %532, %533, %534 : vector<16x64xi1>, vector<16x64xf32>
    %536 = math.absf %530 : vector<16x64xf32>
    %cst_214 = arith.constant 0.327591091 : f32
    %537 = vector.broadcast %cst_214 : f32 to vector<16x64xf32>
    %538 = arith.mulf %537, %536 : vector<16x64xf32>
    %cst_215 = arith.constant 1.000000e+00 : f32
    %539 = vector.broadcast %cst_215 : f32 to vector<16x64xf32>
    %540 = arith.addf %539, %538 : vector<16x64xf32>
    %cst_216 = arith.constant 1.000000e+00 : f32
    %541 = vector.broadcast %cst_216 : f32 to vector<16x64xf32>
    %542 = arith.divf %541, %540 : vector<16x64xf32>
    %cst_217 = arith.constant 1.06140542 : f32
    %543 = vector.broadcast %cst_217 : f32 to vector<16x64xf32>
    %544 = arith.mulf %543, %542 : vector<16x64xf32>
    %cst_218 = arith.constant -1.45315206 : f32
    %545 = vector.broadcast %cst_218 : f32 to vector<16x64xf32>
    %546 = arith.addf %544, %545 : vector<16x64xf32>
    %547 = arith.mulf %546, %542 : vector<16x64xf32>
    %cst_219 = arith.constant 1.42141378 : f32
    %548 = vector.broadcast %cst_219 : f32 to vector<16x64xf32>
    %549 = arith.addf %547, %548 : vector<16x64xf32>
    %550 = arith.mulf %549, %542 : vector<16x64xf32>
    %cst_220 = arith.constant -0.284496725 : f32
    %551 = vector.broadcast %cst_220 : f32 to vector<16x64xf32>
    %552 = arith.addf %550, %551 : vector<16x64xf32>
    %553 = arith.mulf %552, %542 : vector<16x64xf32>
    %cst_221 = arith.constant 0.254829586 : f32
    %554 = vector.broadcast %cst_221 : f32 to vector<16x64xf32>
    %555 = arith.addf %553, %554 : vector<16x64xf32>
    %556 = arith.mulf %555, %542 : vector<16x64xf32>
    %cst_222 = arith.constant 0.000000e+00 : f32
    %557 = vector.broadcast %cst_222 : f32 to vector<16x64xf32>
    %558 = arith.subf %557, %536 : vector<16x64xf32>
    %559 = arith.mulf %558, %536 : vector<16x64xf32>
    %560 = math.exp %559 : vector<16x64xf32>
    %561 = arith.mulf %556, %560 : vector<16x64xf32>
    %cst_223 = arith.constant 1.000000e+00 : f32
    %562 = vector.broadcast %cst_223 : f32 to vector<16x64xf32>
    %563 = arith.subf %562, %561 : vector<16x64xf32>
    %564 = arith.mulf %535, %563 : vector<16x64xf32>
    %cst_224 = arith.constant 1.000000e+00 : f32
    %565 = vector.broadcast %cst_224 : f32 to vector<16x64xf32>
    %566 = arith.addf %565, %564 : vector<16x64xf32>
    %567 = arith.mulf %528, %566 : vector<16x64xf32>
    %c1_225 = arith.constant 1 : index
    %c0_226 = arith.constant 0 : index
    %c0_227 = arith.constant 0 : index
    %568 = vector.load %arg13[%c1_225, %c0_226, %c0_227] : memref<2x64x32xf32, #tpu.memory_space<vmem>>, vector<1x64x32xf32>
    %569 = vector.shape_cast %568 : vector<1x64x32xf32> to vector<64x32xf32>
    %cst_228 = arith.constant dense<0.000000e+00> : vector<16x32xf32>
    %570 = tpu.matmul %567, %569, %cst_228 {dimension_numbers = #tpu.dot_dimension_numbers<[1], [0], [0], [1], [0, 0, 1, 1], [], []>} : vector<16x64xf32>, vector<64x32xf32>, vector<16x32xf32> -> vector<16x32xf32>
    %c1_229 = arith.constant 1 : index
    %c0_230 = arith.constant 0 : index
    %c0_231 = arith.constant 0 : index
    %571 = vector.load %arg14[%c1_229, %c0_230, %c0_231] : memref<2x1x32xf32, #tpu.memory_space<vmem>>, vector<1x1x32xf32>
    %572 = vector.shape_cast %571 : vector<1x1x32xf32> to vector<1x32xf32>
    %573 = vector.broadcast %572 : vector<1x32xf32> to vector<16x32xf32>
    %574 = arith.addf %570, %573 : vector<16x32xf32>
    %575 = arith.addf %495, %574 : vector<16x32xf32>
    %c0_232 = arith.constant 0 : index
    %c0_233 = arith.constant 0 : index
    %576 = vector.load %arg15[%c0_232, %c0_233] : memref<1x32xf32, #tpu.memory_space<vmem>>, vector<1x32xf32>
    %c0_234 = arith.constant 0 : index
    %c0_235 = arith.constant 0 : index
    %577 = vector.load %arg16[%c0_234, %c0_235] : memref<1x32xf32, #tpu.memory_space<vmem>>, vector<1x32xf32>
    %cst_236 = arith.constant dense<0.000000e+00> : vector<16xf32>
    %578 = vector.multi_reduction <add>, %575, %cst_236 [1] : vector<16x32xf32> to vector<16xf32>
    %579 = vector.shape_cast %578 : vector<16xf32> to vector<16x1xf32>
    %cst_237 = arith.constant 3.200000e+01 : f32
    %580 = vector.broadcast %cst_237 : f32 to vector<16x1xf32>
    %581 = arith.divf %579, %580 : vector<16x1xf32>
    %582 = vector.broadcast %581 : vector<16x1xf32> to vector<16x32xf32>
    %583 = arith.subf %575, %582 : vector<16x32xf32>
    %584 = arith.mulf %583, %583 : vector<16x32xf32>
    %cst_238 = arith.constant dense<0.000000e+00> : vector<16xf32>
    %585 = vector.multi_reduction <add>, %584, %cst_238 [1] : vector<16x32xf32> to vector<16xf32>
    %586 = vector.shape_cast %585 : vector<16xf32> to vector<16x1xf32>
    %cst_239 = arith.constant 3.200000e+01 : f32
    %587 = vector.broadcast %cst_239 : f32 to vector<16x1xf32>
    %588 = arith.divf %586, %587 : vector<16x1xf32>
    %cst_240 = arith.constant 9.99999996E-13 : f32
    %589 = vector.broadcast %cst_240 : f32 to vector<16x1xf32>
    %590 = arith.addf %588, %589 : vector<16x1xf32>
    %591 = math.rsqrt %590 : vector<16x1xf32>
    %592 = vector.broadcast %591 : vector<16x1xf32> to vector<16x32xf32>
    %593 = arith.mulf %583, %592 : vector<16x32xf32>
    %594 = vector.broadcast %576 : vector<1x32xf32> to vector<16x32xf32>
    %595 = arith.mulf %593, %594 : vector<16x32xf32>
    %596 = vector.broadcast %577 : vector<1x32xf32> to vector<16x32xf32>
    %597 = arith.addf %595, %596 : vector<16x32xf32>
    %598 = vector.extract_strided_slice %597 {offsets = [0, 0], sizes = [1, 32], strides = [1, 1]} : vector<16x32xf32> to vector<1x32xf32>
    %599 = vector.extract_strided_slice %597 {offsets = [8, 0], sizes = [1, 32], strides = [1, 1]} : vector<16x32xf32> to vector<1x32xf32>
    %600 = tpu.concatenate %598, %599 in 0 : vector<1x32xf32>, vector<1x32xf32> -> vector<2x32xf32>
    %c0_241 = arith.constant 0 : index
    %c0_242 = arith.constant 0 : index
    %601 = vector.load %arg17[%c0_241, %c0_242] : memref<32x5xf32, #tpu.memory_space<vmem>>, vector<32x5xf32>
    %cst_243 = arith.constant dense<0.000000e+00> : vector<2x5xf32>
    %602 = tpu.matmul %600, %601, %cst_243 {dimension_numbers = #tpu.dot_dimension_numbers<[1], [0], [0], [1], [0, 0, 1, 1], [], []>} : vector<2x32xf32>, vector<32x5xf32>, vector<2x5xf32> -> vector<2x5xf32>
    %c0_244 = arith.constant 0 : index
    %c0_245 = arith.constant 0 : index
    %603 = vector.load %arg18[%c0_244, %c0_245] : memref<1x5xf32, #tpu.memory_space<vmem>>, vector<1x5xf32>
    %604 = vector.broadcast %603 : vector<1x5xf32> to vector<2x5xf32>
    %605 = arith.addf %602, %604 : vector<2x5xf32>
    %c0_246 = arith.constant 0 : index
    %c0_247 = arith.constant 0 : index
    %606 = vector.load %arg19[%c0_246, %c0_247] : memref<2x5xf32, #tpu.memory_space<vmem>>, vector<2x5xf32>
    tpu.vector_store %arg19[%c0_246, %c0_247], %605 {strides = array<i32>} : memref<2x5xf32, #tpu.memory_space<vmem>>, vector<2x5xf32>,
    return
  }
}

</mosaic_0001>

<bundles_post_ra>
// kernel: tpu_custom_call.1
= control target key start
LH: loop header
LB: loop body
LE: loop exit
PB: predicated region body
PF: predicated region fallthrough
CT: control target
= control target key end

     0   :  { %s5766_s0 = inlined_call_operand.vmem [shape: f32[16,192], index: 0, kind: input, shape index: {}]   ;;  %s5767_s1 = inlined_call_operand.vmem [shape: f32[16,32], index: 1, kind: input, shape index: {}]   ;;  %s5768_s2 = inlined_call_operand.vmem [shape: f32[192,32], index: 2, kind: input, shape index: {}]   ;;  %s5769_s3 = inlined_call_operand.vmem [shape: f32[2,1,32], index: 3, kind: input, shape index: {}]   ;;  %s5770_s4 = inlined_call_operand.vmem [shape: f32[2,1,32], index: 4, kind: input, shape index: {}]   ;;  %s5771_s5 = inlined_call_operand.vmem [shape: f32[2,32,96], index: 5, kind: input, shape index: {}]   ;;  %s5772_s6 = inlined_call_operand.vmem [shape: f32[2,1,96], index: 6, kind: input, shape index: {}]   ;;  %s5773_s7 = inlined_call_operand.vmem [shape: f32[2,32,32], index: 7, kind: input, shape index: {}]   ;;  %s5774_s8 = inlined_call_operand.vmem [shape: f32[2,1,32], index: 8, kind: input, shape index: {}]   ;;  %s5775_s9 = inlined_call_operand.vmem [shape: f32[2,1,32], index: 9, kind: input, shape index: {}]   ;;  %s5776_s10 = inlined_call_operand.vmem [shape: f32[2,1,32], index: 10, kind: input, shape index: {}]   ;;  %s5777_s11 = inlined_call_operand.vmem [shape: f32[2,32,64], index: 11, kind: input, shape index: {}]   ;;  %s5778_s12 = inlined_call_operand.vmem [shape: f32[2,1,64], index: 12, kind: input, shape index: {}]   ;;  %s5779_s13 = inlined_call_operand.vmem [shape: f32[2,64,32], index: 13, kind: input, shape index: {}]   ;;  %s5780_s14 = inlined_call_operand.vmem [shape: f32[2,1,32], index: 14, kind: input, shape index: {}]   ;;  %s5781_s15 = inlined_call_operand.vmem [shape: f32[1,32], index: 15, kind: input, shape index: {}]   ;;  %s5782_s16 = inlined_call_operand.vmem [shape: f32[1,32], index: 16, kind: input, shape index: {}]   ;;  %s5783_s17 = inlined_call_operand.vmem [shape: f32[32,5], index: 17, kind: input, shape index: {}]   ;;  %s5784_s18 = inlined_call_operand.vmem [shape: f32[1,5], index: 18, kind: input, shape index: {}]   ;;  %s5785_s19 = inlined_call_operand.hbm [shape: f32[2,5], index: 19, kind: output, shape index: {}]  }
   0x1   :  { %5806 = sst [smem:[#allocation5_spill]] %s5766_s0 }
   0x2   :  { %5807 = sst [smem:[#allocation6_spill]] %s5767_s1 }
   0x3   :  { %5808 = sst [smem:[#allocation7_spill]] %s5768_s2 }
   0x4   :  { %5809 = sst [smem:[#allocation8_spill]] %s5769_s3 }
   0x5   :  { %s5810_s20 = sld [smem:[#allocation7_spill]]  ;;  %v4887_v3 = vmov 0.0|0.0   ;;  %vm96_vm0 = vcmask 523264   ;;  %s5811_s22 = sld [smem:[#allocation5_spill]] }
   0x6   :  { %4622 = vmatprep.subr.bf16.mxu0 %v4887_v3 }
   0xb   :  { %v70_v0 = vld [vmem:[%s5810_s20] sm:$0xff]  ;;  %v71_v1 = vld [vmem:[%s5810_s20 + $0x8] sm:$0xff]  ;;  %v72_v2 = vld [vmem:[%s5810_s20 + $0x10] sm:$0xff] }
   0xc   :  { %v4623_v4 = vpack.c.bf16 %v71_v1, %v70_v0  ;;  %v73_v5 = vld [vmem:[%s5810_s20 + $0x18] sm:$0xff]  ;;  %v74_v7 = vld [vmem:[%s5810_s20 + $0x20] sm:$0xff]  ;;  %v75_v8 = vld [vmem:[%s5810_s20 + $0x28] sm:$0xff] }
   0xd   :  { %v4626_v6 = vpack.c.bf16 %v73_v5, %v72_v2  ;;  %v4629_v9 = vpack.c.bf16 %v75_v8, %v74_v7  ;;  %v76_v10 = vld [vmem:[%s5810_s20 + $0x30] sm:$0xff]  ;;  %v77_v11 = vld [vmem:[%s5810_s20 + $0x38] sm:$0xff]  ;;  %v67_v12 = vld [vmem:[%s5811_s22 + $0x8] sm:$0xff] }
   0xe   :  { %4624 = vmatpush1.bf16.msra.mxu0 %v4623_v4  ;;  %4108 = vmatprep.mubr.msk.f32.mxu0 %vm96_vm0, %v67_v12 }
   0xf   :  { %4625 = vmatprep.subr.bf16.mxu0 %v4887_v3 }
  0x12   :  { %4627 = vmatpush1.bf16.msra.mxu0 %v4626_v6 }
  0x13   :  { %4628 = vmatprep.subr.bf16.mxu0 %v4887_v3 }
  0x14   :  { %24 = vsyncpa [#allocation3], 0  ;;  %v4632_v13 = vpack.c.bf16 %v77_v11, %v76_v10  ;;  %v78_v14 = vld [vmem:[%s5810_s20 + $0x40] sm:$0xff]  ;;  %v79_v15 = vld [vmem:[%s5810_s20 + $0x48] sm:$0xff]  ;;  %s5812_s2 = sld [smem:[#allocation6_spill]]  ;;  %vm180_vm1 = vcmask 261120  }
  0x15   :  { %v4635_v16 = vpack.c.bf16 %v79_v15, %v78_v14  ;;  %v80_v17 = vld [vmem:[%s5810_s20 + $0x50] sm:$0xff]  ;;  %v81_v18 = vld [vmem:[%s5810_s20 + $0x58] sm:$0xff]  ;;  %v82_v20 = vld [vmem:[%s5810_s20 + $0x60] sm:$0xff]  ;;  %vm4889_vm2 = vmmov 0   ;;  %s4891_s25 = smov 88   ;;  %vm319_vm3 = vcmask 64512  }
  0x16   :  { %4630 = vmatpush1.bf16.msra.mxu0 %v4629_v9  ;;  %v4638_v19 = vpack.c.bf16 %v81_v18, %v80_v17  ;;  %v83_v21 = vld [vmem:[%s5810_s20 + $0x68] sm:$0xff]  ;;  %v84_v23 = vld [vmem:[%s5810_s20 + $0x70] sm:$0xff]  ;;  %v85_v24 = vld [vmem:[%s5810_s20 + $0x78] sm:$0xff]  ;;  %s5796_s3 = smov 64   ;;  %s4893_s26 = smov 120   ;;  %vm997_vm5 = vcmask 130048  }
  0x17   :  { %4631 = vmatprep.subr.bf16.mxu0 %v4887_v3  ;;  %v4641_v22 = vpack.c.bf16 %v83_v21, %v82_v20  ;;  %v4644_v25 = vpack.c.bf16 %v85_v24, %v84_v23  ;;  %v86_v26 = vld [vmem:[%s5810_s20 + $0x80] sm:$0xff]  ;;  %v87_v27 = vld [vmem:[%s5810_s20 + $0x88] sm:$0xff]  ;;  %v88_v29 = vld [vmem:[%s5810_s20 + $0x90] sm:$0xff]  ;;  %v4888_v20 = vmov 0.0   ;;  %s5790_s27 = smov 56   ;;  %s5804_s28 = smov 112  }
  0x18   :  { %v4647_v28 = vpack.c.bf16 %v87_v27, %v86_v26  ;;  %v89_v30 = vld [vmem:[%s5810_s20 + $0x98] sm:$0xff]  ;;  %v90_v32 = vld [vmem:[%s5810_s20 + $0xa0] sm:$0xff]  ;;  %v91_v33 = vld [vmem:[%s5810_s20 + $0xa8] sm:$0xff]  ;;  %v63_v27 = vlaneseq  ;;  %s5802_s29 = smov 80   ;;  %s5798_s0 = smov 72   ;;  %vm999_vm6 = vcmask 195584  }
  0x19   :  { %v4650_v31 = vpack.c.bf16 %v89_v30, %v88_v29  ;;  %v4653_v34 = vpack.c.bf16 %v91_v33, %v90_v32  ;;  %v92_v35 = vld [vmem:[%s5810_s20 + $0xb0] sm:$0xff]  ;;  %v93_v36 = vld [vmem:[%s5810_s20 + $0xb8] sm:$0xff]  ;;  %v66_v38 = vld [vmem:[%s5811_s22] sm:$0xff]  ;;  %s5813_s20 = sld [smem:[#allocation8_spill]]  ;;  %s5800_s30 = smov 104   ;;  %vm4006_vm11 = vcmask 1040384  }
  0x1a   :  { %4633 = vmatpush1.bf16.msra.mxu0 %v4632_v13  ;;  %v4656_v37 = vpack.c.bf16 %v93_v36, %v92_v35  ;;  %v69_v39 = vld [vmem:[%s5811_s22 + $0x18] sm:$0xff]  ;;  %v68_v40 = vld [vmem:[%s5811_s22 + $0x10] sm:$0xff]  ;;  %v94_v41 = vld [vmem:[%s5812_s2] sm:$0xff]  ;;  %s4890_s22 = smov 96   ;;  %s5794_s21 = smov 48   ;;  %vm4092_vm12 = vcmask 33792  }
  0x1b   :  { %4634 = vmatprep.subr.bf16.mxu0 %v4887_v3  ;;  %v95_v45 = vld [vmem:[%s5812_s2 + $0x8] sm:$0xff]  ;;  %v224_v61 = vld [vmem:[%s5771_s5] sm:$0xff]  ;;  %v226_v63 = vld [vmem:[%s5771_s5 + $0x10] sm:$0xff]  ;;  %s5792_s1 = smov 40   ;;  %s4901_s2 = smov 8  }
  0x1c   :  { %v225_v62 = vld [vmem:[%s5771_s5 + $0x8] sm:$0xff]  ;;  %v227_v1 = vld [vmem:[%s5771_s5 + $0x18] sm:$0xff]  ;;  %v4111_v13 = vld [vmem:[%s5770_s4] ss:$0 sm:$0xff]  ;;  %s4902_s23 = smov 16   ;;  %s4903_s24 = smov 24  }
  0x1d   :  { %v4658_v0 = vpack.c.bf16 %v225_v62, %v224_v61  ;;  %v4662_v2 = vpack.c.bf16 %v227_v1, %v226_v63  ;;  %v4112_v21 = vld [vmem:[%s5772_s6] ss:$0 sm:$0xff] }
  0x1e   :  { %4636 = vmatpush1.bf16.msra.mxu0 %v4635_v16 }
  0x1f   :  { %4637 = vmatprep.subr.bf16.mxu0 %v4887_v3  ;;  %4659 = vmatprep.subr.bf16.mxu1 %v4658_v0  ;;  %v4110_v11 = vld [vmem:[%s5813_s20] ss:$0 sm:$0xff] }
  0x20   :  { %4661 = vmatpush3.bf16.msra.mxu1 %v4658_v0 }
  0x21   :  { %4663 = vmatprep.subr.bf16.mxu1 %v4662_v2 }
  0x22   :  { %4639 = vmatpush1.bf16.msra.mxu0 %v4638_v19 }
  0x23   :  { %4640 = vmatprep.subr.bf16.mxu0 %v4887_v3 }
  0x24   :  { %4665 = vmatpush3.bf16.msra.mxu1 %v4662_v2 }
  0x25   :  { %4358 = vmatprep.subr.mxu1 %v4888_v20 }
  0x26   :  { %4642 = vmatpush1.bf16.msra.mxu0 %v4641_v22 }
  0x27   :  { %4643 = vmatprep.subr.bf16.mxu0 %v4887_v3 }
  0x2a   :  { %4645 = vmatpush1.bf16.msra.mxu0 %v4644_v25 }
  0x2b   :  { %4646 = vmatprep.subr.bf16.mxu0 %v4887_v3 }
  0x2e   :  { %4648 = vmatpush1.bf16.msra.mxu0 %v4647_v28  ;;  %v5165_v28 = vand.u32 127, %v63_v27 }
  0x2f   :  { %4649 = vmatprep.subr.bf16.mxu0 %v4887_v3 }
  0x30   :  { %vm65_vm4 = vcmp.lt.s32.totalorder %v5165_v28, 5 }
  0x32   :  { %4651 = vmatpush1.bf16.msra.mxu0 %v4650_v31 }
  0x33   :  { %4652 = vmatprep.subr.bf16.mxu0 %v4887_v3 }
  0x36   :  { %4654 = vmatpush1.bf16.msra.mxu0 %v4653_v34 }
  0x37   :  { %4655 = vmatprep.subr.bf16.mxu0 %v4887_v3 }
  0x3a   :  { %4657 = vmatpush1.bf16.msra.mxu0 %v4656_v37 }
  0x3b   :  { %4413 = vmatprep.subr.mxu0 %v4888_v20 }
  0x3d   :  { %168 = vmatmul.mubr.f32.vlgmr.msra.gmra.mrb[0].mxu0 %v66_v38 }
  0x3e   :  { %4109 = vmatprep.mubr.msk.f32.mxu0 %vm96_vm0, %v69_v39 }
  0x41   :  { %173 = vmatmul.mubr.f32.gmra.mrb[2].mxu0 %v68_v40 }
  0x42   :  { %4415 = vmatprep.mubr.msk.f32.mxu0 %vm4889_vm2, %v4888_v20 }
 0x110   :  { %v169_v42 = vpop.f32.mrb[0].mxu0 }
 0x111   :  { %v5107_v43 = vadd.f32 %v169_v42, %v94_v41  ;;  %v171_v44 = vpop.f32.mrb[1].mxu0 }
 0x113   :  { %v181_v46 = vsel %vm180_vm1, %v5107_v43, 0.0 }
 0x114   :  { %v174_v47 = vpop.f32.mrb[2].mxu0  ;;  %182 = vadd.xlane.f32.xlu0 %v181_v46 }
 0x115   :  { %v5114_v48 = vadd.f32 %v174_v47, %v95_v45  ;;  %v176_v49 = vpop.f32.mrb[3].mxu0 }
 0x117   :  { %v184_v50 = vsel %vm180_vm1, %v5114_v48, 0.0 }
 0x118   :  { %185 = vadd.xlane.f32.xlu0 %v184_v50 }
 0x1a1   :  { %v183_v51 = vpop.xlane.xlu0 %182 }
 0x1a2   :  { %v188_v52 = vmul.f32 0.03125, %v183_v51 }
 0x1a4   :  { %v190_v53 = vsub.f32 %v5107_v43, %v188_v52 }
 0x1a5   :  { %v186_v54 = vpop.xlane.xlu0 %185 }
 0x1a6   :  { %v189_v55 = vmul.f32 0.03125, %v186_v54  ;;  %v192_v56 = vmul.f32 %v190_v53, %v190_v53 }
 0x1a8   :  { %v191_v57 = vsub.f32 %v5114_v48, %v189_v55  ;;  %v194_v58 = vsel %vm180_vm1, %v192_v56, 0.0 }
 0x1a9   :  { %195 = vadd.xlane.f32.xlu1 %v194_v58 }
 0x1aa   :  { %v193_v59 = vmul.f32 %v191_v57, %v191_v57 }
 0x1ac   :  { %v197_v60 = vsel %vm180_vm1, %v193_v59, 0.0 }
 0x1ad   :  { %198 = vadd.xlane.f32.xlu1 %v197_v60 }
 0x236   :  { %v196_v4 = vpop.xlane.xlu1 %195 }
 0x237   :  { %v200_v5 = vmul.f32 0.03125, %v196_v4 }
 0x239   :  { %v202_v6 = vadd.f32 1e-12, %v200_v5 }
 0x23a   :  { %v199_v7 = vpop.xlane.xlu1 %198 }
 0x23b   :  { %4763 = vrsqrt.f32 %v202_v6  ;;  %v201_v8 = vmul.f32 0.03125, %v199_v7 }
 0x23d   :  { %v203_v9 = vadd.f32 1e-12, %v201_v8 }
 0x23f   :  { %4765 = vrsqrt.f32 %v203_v9 }
 0x245   :  { %v4764_v10 = vpop.eup %4763 }
 0x246   :  { %v206_v12 = vmul.f32 %v4764_v10, %v190_v53 }
 0x248   :  { %v214_v14 = vmul.f32 %v4110_v11, %v206_v12 }
 0x249   :  { %v4766_v15 = vpop.eup %4765 }
 0x24a   :  { %v207_v16 = vmul.f32 %v4766_v15, %v191_v57  ;;  %v222_v17 = vadd.f32 %v4111_v13, %v214_v14 }
 0x24c   :  { %v215_v18 = vmul.f32 %v4110_v11, %v207_v16  ;;  %4355 = vmatprep.mubr.msk.f32.mxu1 %vm180_vm1, %v222_v17 }
 0x24e   :  { %v223_v19 = vadd.f32 %v4111_v13, %v215_v18 }
 0x250   :  { %4356 = vmatmul.mubr.msk.f32.vlgmr.msra.gmra.mrb[0].mxu1 %vm180_vm1, %v223_v19 }
 0x251   :  { %4360 = vmatprep.mubr.msk.f32.mxu1 %vm4889_vm2, %v4888_v20 }
 0x323   :  { %v4357_v22 = vpop.f32.mrb[0].mxu1 }
 0x324   :  { %v5151_v23 = vadd.f32 %v4357_v22, %v4112_v21  ;;  %v307_v24 = vpop.f32.mrb[1].mxu1 }
 0x325   :  { %v5153_v25 = vadd.f32 %v4112_v21, %v307_v24 }
 0x327   :  { %317 = vrot.lane.b32.xlu0 %v5153_v25, %s4890_s22 }
 0x32b   :  { %485 = vrot.lane.b32.xlu0 %v5153_v25, %s4891_s25 }
 0x399   :  { %v318_v26 = vpop.permute.xlu0 %317 }
 0x39a   :  { %4359 = vmatpush3.xpose.msk.msra.mxu1 %vm319_vm3, %v318_v26 }
 0x39b   :  { %4363 = vmatprep.subr.mxu1 %v4888_v20 }
 0x39d   :  { %4361 = vmatmul.mubr.msk.f32.vlgmr.msra.gmra.mrb[2].mxu1 %vm319_vm3, %v5153_v25  ;;  %v486_v44 = vpop.permute.xlu0 %485 }
 0x39e   :  { %4365 = vmatprep.mubr.msk.f32.mxu1 %vm4889_vm2, %v4888_v20 }
 0x470   :  { %v390_v29 = vpop.f32.mrb[2].mxu1 }
 0x471   :  { %v394_v30 = vmul.f32 0.35355338, %v390_v29  ;;  %v4362_v31 = vpop.f32.mrb[3].mxu1 }
 0x473   :  { %v395_v32 = vsel %vm65_vm4, %v394_v30, -1e+30 }
 0x474   :  { %v396_v33 = vsel %vm319_vm3, %v395_v32, -inf }
 0x475   :  { %397 = vmax.xlane.f32.xlu1 %v396_v33 }
 0x486   :  { %407 = vrot.lane.b32.xlu1 %v5153_v25, %s5796_s3 }
 0x502   :  { %v398_v34 = vpop.xlane.xlu1 %397 }
 0x503   :  { %v399_v35 = vsub.f32 %v395_v32, %v398_v34 }
 0x505   :  { %v400_v36 = vmul.f32 1.442695, %v399_v35 }
 0x506   :  { %v408_v37 = vpop.permute.xlu1 %407 }
 0x507   :  { %4767 = vpow2.f32 %v400_v36  ;;  %4364 = vmatpush3.msra.mxu1 %v408_v37 }
 0x508   :  { %4368 = vmatprep.subr.mxu1 %v4888_v20 }
 0x511   :  { %v4768_v38 = vpop.eup %4767 }
 0x512   :  { %v402_v39 = vsel %vm319_vm3, %v4768_v38, 0.0 }
 0x513   :  { %403 = vadd.xlane.f32.xlu1 %v402_v39 }
 0x524   :  { %483 = vrot.lane.b32.xlu1 %v5153_v25, %s4893_s26 }
 0x5a0   :  { %v404_v40 = vpop.xlane.xlu1 %403 }
 0x5a1   :  { %4769 = vrcp.f32 %v404_v40 }
 0x5a4   :  { %v484_v45 = vpop.permute.xlu1 %483 }
 0x5ab   :  { %v4770_v41 = vpop.eup %4769 }
 0x5ac   :  { %v406_v42 = vmul.f32 %v4770_v41, %v4768_v38 }
 0x5ae   :  { %4366 = vmatmul.mubr.msk.f32.vlgmr.msra.gmra.mrb[4].mxu1 %vm319_vm3, %v406_v42 }
 0x5af   :  { %4369 = vmatpush3.xpose.msk.msra.mxu1 %vm319_vm3, %v486_v44  ;;  %4370 = vmatprep.mubr.msk.f32.mxu1 %vm4889_vm2, %v4888_v20 }
 0x5b0   :  { %4373 = vmatprep.subr.mxu1 %v4888_v20 }
 0x5b2   :  { %4371 = vmatmul.mubr.msk.f32.vlgmr.msra.gmra.mrb[6].mxu1 %vm319_vm3, %v484_v45 }
 0x5b3   :  { %4375 = vmatprep.mubr.msk.f32.mxu1 %vm4889_vm2, %v4888_v20 }
 0x681   :  { %v5185_v46 = vpop.f32.mrb[4].mxu1 }
 0x682   :  { %v4367_v47 = vpop.f32.mrb[5].mxu1 }
 0x685   :  { %v557_v49 = vpop.f32.mrb[6].mxu1 }
 0x686   :  { %v561_v50 = vmul.f32 0.35355338, %v557_v49  ;;  %v4372_v51 = vpop.f32.mrb[7].mxu1 }
 0x688   :  { %v562_v52 = vsel %vm65_vm4, %v561_v50, -1e+30 }
 0x689   :  { %v563_v53 = vsel %vm319_vm3, %v562_v52, -inf }
 0x68a   :  { %564 = vmax.xlane.f32.xlu0 %v563_v53 }
 0x6a0   :  { %574 = vrot.lane.b32.xlu0 %v5153_v25, %s5790_s27 }
 0x6a4   :  { %650 = vrot.lane.b32.xlu0 %v5153_v25, %s5804_s28 }
 0x717   :  { %v565_v54 = vpop.xlane.xlu0 %564 }
 0x718   :  { %v566_v55 = vsub.f32 %v562_v52, %v565_v54 }
 0x71a   :  { %v567_v56 = vmul.f32 1.442695, %v566_v55 }
 0x71b   :  { %v575_v57 = vpop.permute.xlu0 %574 }
 0x71c   :  { %4771 = vpow2.f32 %v567_v56  ;;  %4374 = vmatpush3.msra.mxu1 %v575_v57 }
 0x71d   :  { %4378 = vmatprep.subr.mxu1 %v4888_v20 }
 0x71f   :  { %v651_v0 = vpop.permute.xlu0 %650 }
 0x726   :  { %v4772_v58 = vpop.eup %4771 }
 0x727   :  { %v569_v59 = vsel %vm319_vm3, %v4772_v58, 0.0 }
 0x728   :  { %570 = vadd.xlane.f32.xlu1 %v569_v59 }
 0x739   :  { %652 = vrot.lane.b32.xlu1 %v5153_v25, %s5802_s29 }
 0x7b5   :  { %v571_v60 = vpop.xlane.xlu1 %570 }
 0x7b6   :  { %4773 = vrcp.f32 %v571_v60 }
 0x7b9   :  { %v653_v63 = vpop.permute.xlu1 %652 }
 0x7c0   :  { %v4774_v61 = vpop.eup %4773 }
 0x7c1   :  { %v573_v62 = vmul.f32 %v4774_v61, %v4772_v58 }
 0x7c3   :  { %4376 = vmatmul.mubr.msk.f32.vlgmr.msra.gmra.mrb[8].mxu1 %vm319_vm3, %v573_v62 }
 0x7c4   :  { %4379 = vmatpush3.xpose.msk.msra.mxu1 %vm319_vm3, %v653_v63  ;;  %4380 = vmatprep.mubr.msk.f32.mxu1 %vm4889_vm2, %v4888_v20 }
 0x7c5   :  { %4383 = vmatprep.subr.mxu1 %v4888_v20 }
 0x7c7   :  { %4381 = vmatmul.mubr.msk.f32.vlgmr.msra.gmra.mrb[10].mxu1 %vm319_vm3, %v651_v0 }
 0x7c8   :  { %4385 = vmatprep.mubr.msk.f32.mxu1 %vm4889_vm2, %v4888_v20 }
 0x896   :  { %v5206_v1 = vpop.f32.mrb[8].mxu1 }
 0x897   :  { %v4377_v2 = vpop.f32.mrb[9].mxu1 }
 0x89a   :  { %v724_v4 = vpop.f32.mrb[10].mxu1 }
 0x89b   :  { %v728_v5 = vmul.f32 0.35355338, %v724_v4  ;;  %v4382_v6 = vpop.f32.mrb[11].mxu1 }
 0x89d   :  { %v729_v7 = vsel %vm65_vm4, %v728_v5, -1e+30 }
 0x89e   :  { %v730_v8 = vsel %vm319_vm3, %v729_v7, -inf }
 0x89f   :  { %731 = vmax.xlane.f32.xlu1 %v730_v8 }
 0x8b0   :  { %819 = vrot.lane.b32.xlu1 %v5153_v25, %s5798_s0 }
 0x8b4   :  { %817 = vrot.lane.b32.xlu1 %v5153_v25, %s5800_s30 }
 0x92c   :  { %v732_v9 = vpop.xlane.xlu1 %731 }
 0x92d   :  { %v733_v10 = vsub.f32 %v729_v7, %v732_v9 }
 0x92f   :  { %v734_v11 = vmul.f32 1.442695, %v733_v10 }
 0x930   :  { %v820_v17 = vpop.permute.xlu1 %819 }
 0x931   :  { %4775 = vpow2.f32 %v734_v11 }
 0x934   :  { %v818_v19 = vpop.permute.xlu1 %817 }
 0x93b   :  { %v4776_v12 = vpop.eup %4775 }
 0x93c   :  { %v736_v13 = vsel %vm319_vm3, %v4776_v12, 0.0 }
 0x93d   :  { %737 = vadd.xlane.f32.xlu0 %v736_v13 }
 0x953   :  { %741 = vrot.lane.b32.xlu0 %v5153_v25, %s5794_s21 }
 0x9ca   :  { %v738_v14 = vpop.xlane.xlu0 %737 }
 0x9cb   :  { %4777 = vrcp.f32 %v738_v14 }
 0x9ce   :  { %v742_v15 = vpop.permute.xlu0 %741 }
 0x9cf   :  { %4384 = vmatpush3.msra.mxu1 %v742_v15 }
 0x9d0   :  { %4388 = vmatprep.subr.mxu1 %v4888_v20 }
 0x9d5   :  { %v4778_v16 = vpop.eup %4777 }
 0x9d6   :  { %v740_v18 = vmul.f32 %v4778_v16, %v4776_v12 }
 0x9d8   :  { %4386 = vmatmul.mubr.msk.f32.vlgmr.msra.gmra.mrb[12].mxu1 %vm319_vm3, %v740_v18 }
 0x9d9   :  { %4389 = vmatpush3.xpose.msk.msra.mxu1 %vm319_vm3, %v820_v17  ;;  %4390 = vmatprep.mubr.msk.f32.mxu1 %vm4889_vm2, %v4888_v20 }
 0x9da   :  { %4393 = vmatprep.subr.mxu1 %v4888_v20 }
 0x9dc   :  { %4391 = vmatmul.mubr.msk.f32.vlgmr.msra.gmra.mrb[14].mxu1 %vm319_vm3, %v818_v19 }
 0x9dd   :  { %4395 = vmatprep.mubr.msk.f32.mxu1 %vm4889_vm2, %v4888_v20 }
 0xaab   :  { %v5227_v21 = vpop.f32.mrb[12].mxu1 }
 0xaac   :  { %v4387_v22 = vpop.f32.mrb[13].mxu1 }
 0xaaf   :  { %v891_v24 = vpop.f32.mrb[14].mxu1 }
 0xab0   :  { %v895_v26 = vmul.f32 0.35355338, %v891_v24  ;;  %v4392_v27 = vpop.f32.mrb[15].mxu1 }
 0xab2   :  { %v896_v29 = vsel %vm65_vm4, %v895_v26, -1e+30 }
 0xab3   :  { %v897_v30 = vsel %vm319_vm3, %v896_v29, -inf }
 0xab4   :  { %898 = vmax.xlane.f32.xlu0 %v897_v30 }
 0xaca   :  { %908 = vrot.lane.b32.xlu0 %v5153_v25, %s5792_s1 }
 0xb41   :  { %v899_v31 = vpop.xlane.xlu0 %898 }
 0xb42   :  { %v900_v32 = vsub.f32 %v896_v29, %v899_v31 }
 0xb44   :  { %v901_v33 = vmul.f32 1.442695, %v900_v32 }
 0xb45   :  { %v909_v34 = vpop.permute.xlu0 %908 }
 0xb46   :  { %4779 = vpow2.f32 %v901_v33  ;;  %4394 = vmatpush3.msra.mxu1 %v909_v34 }
 0xb47   :  { %4398 = vmatprep.subr.mxu1 %v4888_v20 }
 0xb50   :  { %v4780_v35 = vpop.eup %4779 }
 0xb51   :  { %v903_v36 = vsel %vm319_vm3, %v4780_v35, 0.0 }
 0xb52   :  { %904 = vadd.xlane.f32.xlu1 %v903_v36 }
 0xb63   :  { %1002 = vrot.lane.b32.xlu1 %v5151_v23, %s4890_s22 }
 0xb67   :  { %1169 = vrot.lane.b32.xlu1 %v5151_v23, %s4891_s25 }
 0xb6b   :  { %1336 = vrot.lane.b32.xlu1 %v5151_v23, %s5802_s29 }
 0xbdf   :  { %v905_v25 = vpop.xlane.xlu1 %904 }
 0xbe0   :  { %4781 = vrcp.f32 %v905_v25 }
 0xbe3   :  { %v1003_v39 = vpop.permute.xlu1 %1002 }
 0xbe7   :  { %v1170_v56 = vpop.permute.xlu1 %1169 }
 0xbea   :  { %v4782_v37 = vpop.eup %4781 }
 0xbeb   :  { %v907_v38 = vmul.f32 %v4782_v37, %v4780_v35  ;;  %v1337_v57 = vpop.permute.xlu1 %1336 }
 0xbed   :  { %4396 = vmatmul.mubr.msk.f32.vlgmr.msra.gmra.mrb[16].mxu1 %vm319_vm3, %v907_v38 }
 0xbee   :  { %4399 = vmatpush3.xpose.msk.msra.mxu1 %vm319_vm3, %v1003_v39  ;;  %4400 = vmatprep.mubr.msk.f32.mxu1 %vm4889_vm2, %v4888_v20 }
 0xbef   :  { %4403 = vmatprep.subr.mxu1 %v4888_v20 }
 0xbf1   :  { %4401 = vmatmul.mubr.msk.f32.vlgmr.msra.gmra.mrb[18].mxu1 %vm319_vm3, %v5151_v23 }
 0xbf2   :  { %4405 = vmatprep.mubr.msk.f32.mxu1 %vm4889_vm2, %v4888_v20 }
 0xcc0   :  { %v5251_v40 = vpop.f32.mrb[16].mxu1 }
 0xcc1   :  { %v4397_v41 = vpop.f32.mrb[17].mxu1 }
 0xcc4   :  { %v1074_v42 = vpop.f32.mrb[18].mxu1 }
 0xcc5   :  { %v1078_v44 = vmul.f32 0.35355338, %v1074_v42  ;;  %v4402_v45 = vpop.f32.mrb[19].mxu1 }
 0xcc7   :  { %v1079_v47 = vsel %vm65_vm4, %v1078_v44, -1e+30 }
 0xcc8   :  { %v1080_v49 = vsel %vm319_vm3, %v1079_v47, -inf }
 0xcc9   :  { %1081 = vmax.xlane.f32.xlu0 %v1080_v49 }
 0xcdf   :  { %1091 = vrot.lane.b32.xlu0 %v5151_v23, %s5796_s3  ;;  %s5821_s3 = smov 56  }
 0xce3   :  { %1167 = vrot.lane.b32.xlu0 %v5151_v23, %s4893_s26 }
 0xce7   :  { %1334 = vrot.lane.b32.xlu0 %v5151_v23, %s5804_s28 }
 0xceb   :  { %1501 = vrot.lane.b32.xlu0 %v5151_v23, %s5800_s30 }
 0xd56   :  { %v1082_v50 = vpop.xlane.xlu0 %1081 }
 0xd57   :  { %v1083_v51 = vsub.f32 %v1079_v47, %v1082_v50 }
 0xd59   :  { %v1084_v52 = vmul.f32 1.442695, %v1083_v51 }
 0xd5a   :  { %v1092_v53 = vpop.permute.xlu0 %1091 }
 0xd5b   :  { %4783 = vpow2.f32 %v1084_v52  ;;  %4404 = vmatpush3.msra.mxu1 %v1092_v53 }
 0xd5c   :  { %4408 = vmatprep.subr.mxu1 %v4888_v20 }
 0xd5e   :  { %v1168_v61 = vpop.permute.xlu0 %1167 }
 0xd62   :  { %v1335_v62 = vpop.permute.xlu0 %1334 }
 0xd65   :  { %v4784_v54 = vpop.eup %4783 }
 0xd66   :  { %v1086_v55 = vsel %vm319_vm3, %v4784_v54, 0.0  ;;  %v1502_v0 = vpop.permute.xlu0 %1501 }
 0xd67   :  { %1087 = vadd.xlane.f32.xlu1 %v1086_v55 }
 0xd78   :  { %1503 = vrot.lane.b32.xlu1 %v5151_v23, %s5798_s0 }
 0xdf4   :  { %v1088_v58 = vpop.xlane.xlu1 %1087 }
 0xdf5   :  { %4785 = vrcp.f32 %v1088_v58 }
 0xdf8   :  { %v1504_v63 = vpop.permute.xlu1 %1503 }
 0xdff   :  { %v4786_v59 = vpop.eup %4785 }
 0xe00   :  { %v1090_v60 = vmul.f32 %v4786_v59, %v4784_v54  ;;  %v1685_v59 = vld [vmem:[%s5773_s7 + $0x10] sm:$0xff] }
 0xe02   :  { %4406 = vmatmul.mubr.msk.f32.vlgmr.msra.gmra.mrb[20].mxu1 %vm319_vm3, %v1090_v60  ;;  %v1686_v60 = vld [vmem:[%s5773_s7 + $0x18] sm:$0xff] }
 0xe03   :  { %4409 = vmatpush3.xpose.msk.msra.mxu1 %vm319_vm3, %v1170_v56  ;;  %4410 = vmatprep.mubr.msk.f32.mxu1 %vm4889_vm2, %v4888_v20 }
 0xe04   :  { %4418 = vmatprep.subr.mxu1 %v4888_v20 }
 0xe06   :  { %4411 = vmatmul.mubr.msk.f32.vlgmr.msra.gmra.mrb[22].mxu1 %vm319_vm3, %v1168_v61  ;;  %v4670_v61 = vpack.c.bf16 %v1686_v60, %v1685_v59  ;;  %v1971_v60 = vld [vmem:[%s5779_s13 + $0x20] sm:$0xff] }
 0xe07   :  { %4419 = vmatpush3.xpose.msk.msra.mxu1 %vm319_vm3, %v1337_v57  ;;  %4420 = vmatprep.mubr.msk.f32.mxu1 %vm4889_vm2, %v4888_v20  ;;  %v1683_v57 = vld [vmem:[%s5773_s7] sm:$0xff] }
 0xe08   :  { %4428 = vmatprep.subr.mxu1 %v4888_v20 }
 0xe0a   :  { %4421 = vmatmul.mubr.msk.f32.vlgmr.msra.gmra.mrb[24].mxu1 %vm319_vm3, %v1335_v62 }
 0xe0b   :  { %4429 = vmatpush3.xpose.msk.msra.mxu1 %vm319_vm3, %v1504_v63  ;;  %4430 = vmatprep.mubr.msk.f32.mxu1 %vm4889_vm2, %v4888_v20 }
 0xe0e   :  { %4431 = vmatmul.mubr.msk.f32.vlgmr.msra.gmra.mrb[26].mxu1 %vm319_vm3, %v1502_v0 }
 0xed5   :  { %v5283_v2 = vpop.f32.mrb[20].mxu1 }
 0xed6   :  { %v4407_v4 = vpop.f32.mrb[21].mxu1 }
 0xed9   :  { %v1241_v5 = vpop.f32.mrb[22].mxu1 }
 0xeda   :  { %v1245_v6 = vmul.f32 0.35355338, %v1241_v5  ;;  %v4412_v7 = vpop.f32.mrb[23].mxu1 }
 0xedc   :  { %v1246_v8 = vsel %vm65_vm4, %v1245_v6, -1e+30 }
 0xedd   :  { %v1408_v9 = vpop.f32.mrb[24].mxu1  ;;  %v1247_v10 = vsel %vm319_vm3, %v1246_v8, -inf }
 0xede   :  { %v1412_v11 = vmul.f32 0.35355338, %v1408_v9  ;;  %1248 = vmax.xlane.f32.xlu1 %v1247_v10  ;;  %v4422_v12 = vpop.f32.mrb[25].mxu1 }
 0xee0   :  { %v1413_v13 = vsel %vm65_vm4, %v1412_v11, -1e+30 }
 0xee1   :  { %v1575_v14 = vpop.f32.mrb[26].mxu1  ;;  %v1414_v15 = vsel %vm319_vm3, %v1413_v13, -inf }
 0xee2   :  { %v1579_v16 = vmul.f32 0.35355338, %v1575_v14  ;;  %1415 = vmax.xlane.f32.xlu0 %v1414_v15  ;;  %v4432_v17 = vpop.f32.mrb[27].mxu1 }
 0xee4   :  { %v1580_v18 = vsel %vm65_vm4, %v1579_v16, -1e+30 }
 0xee5   :  { %v1581_v19 = vsel %vm319_vm3, %v1580_v18, -inf }
 0xee6   :  { %1582 = vmax.xlane.f32.xlu0 %v1581_v19 }
 0xeef   :  { %1258 = vrot.lane.b32.xlu1 %v5151_v23, %s5790_s27 }
 0xf6b   :  { %v1249_v22 = vpop.xlane.xlu1 %1248 }
 0xf6c   :  { %v1250_v24 = vsub.f32 %v1246_v8, %v1249_v22 }
 0xf6e   :  { %v1251_v26 = vmul.f32 1.442695, %v1250_v24 }
 0xf6f   :  { %v1259_v27 = vpop.permute.xlu1 %1258  ;;  %v1416_v29 = vpop.xlane.xlu0 %1415 }
 0xf70   :  { %4787 = vpow2.f32 %v1251_v26  ;;  %v1417_v30 = vsub.f32 %v1413_v13, %v1416_v29  ;;  %4414 = vmatpush3.msra.mxu0 %v1259_v27  ;;  %v4139_v13 = vld [vmem:[%s5774_s8] ss:$0 sm:$0xff] }
 0xf71   :  { %4423 = vmatprep.subr.mxu0 %v4888_v20 }
 0xf72   :  { %v1418_v31 = vmul.f32 1.442695, %v1417_v30 }
 0xf73   :  { %v1583_v32 = vpop.xlane.xlu0 %1582 }
 0xf74   :  { %4789 = vpow2.f32 %v1418_v31  ;;  %v1584_v33 = vsub.f32 %v1580_v18, %v1583_v32 }
 0xf76   :  { %v1585_v34 = vmul.f32 1.442695, %v1584_v33 }
 0xf78   :  { %4791 = vpow2.f32 %v1585_v34  ;;  %v1821_v34 = vld [vmem:[%s5777_s11] sm:$0xff] }
 0xf7a   :  { %v4788_v35 = vpop.eup %4787 }
 0xf7b   :  { %v1253_v36 = vsel %vm319_vm3, %v4788_v35, 0.0 }
 0xf7c   :  { %1254 = vadd.xlane.f32.xlu0 %v1253_v36 }
 0xf7e   :  { %v4790_v25 = vpop.eup %4789 }
 0xf7f   :  { %v1420_v37 = vsel %vm319_vm3, %v4790_v25, 0.0 }
 0xf80   :  { %1421 = vadd.xlane.f32.xlu1 %v1420_v37  ;;  %v1824_v37 = vld [vmem:[%s5777_s11 + $0x18] sm:$0xff] }
 0xf82   :  { %v4792_v38 = vpop.eup %4791 }
 0xf83   :  { %v1587_v39 = vsel %vm319_vm3, %v4792_v38, 0.0 }
 0xf84   :  { %1588 = vadd.xlane.f32.xlu0 %v1587_v39 }
 0xf91   :  { %1592 = vrot.lane.b32.xlu1 %v5151_v23, %s5792_s1  ;;  %s5817_s1 = smov 72  }
 0xf95   :  { %985 = vrot.lane.b32.xlu1 %v5206_v1, %s4901_s2 }
 0xf99   :  { %989 = vrot.lane.b32.xlu1 %v5227_v21, %s4902_s23 }
 0xf9a   :  { %1425 = vrot.lane.b32.xlu0 %v5151_v23, %s5794_s21  ;;  %s5815_s21 = smov 80  }
 0xf9d   :  { %993 = vrot.lane.b32.xlu1 %v5251_v40, %s4903_s24 }
0x1009   :  { %v1255_v41 = vpop.xlane.xlu0 %1254 }
0x100a   :  { %4793 = vrcp.f32 %v1255_v41 }
0x100d   :  { %v1422_v42 = vpop.xlane.xlu1 %1421 }
0x100e   :  { %4795 = vrcp.f32 %v1422_v42 }
0x1011   :  { %v1593_v44 = vpop.permute.xlu1 %1592  ;;  %v1589_v45 = vpop.xlane.xlu0 %1588 }
0x1012   :  { %4797 = vrcp.f32 %v1589_v45 }
0x1014   :  { %v4794_v47 = vpop.eup %4793 }
0x1015   :  { %v1257_v1 = vmul.f32 %v4794_v47, %v4788_v35  ;;  %v986_v49 = vpop.permute.xlu1 %985  ;;  %v1426_v50 = vpop.permute.xlu0 %1425  ;;  %v1822_v35 = vld [vmem:[%s5777_s11 + $0x8] sm:$0xff] }
0x1016   :  { %v996_v52 = vsel %vm319_vm3, %v5185_v46, %v986_v49  ;;  %v1684_v46 = vld [vmem:[%s5773_s7 + $0x8] sm:$0xff]  ;;  %v4674_v36 = vpack.c.bf16 %v1822_v35, %v1821_v34  ;;  %v4142_v49 = vld [vmem:[%s5775_s9] ss:$0 sm:$0xff] }
0x1017   :  { %4416 = vmatmul.mubr.msk.f32.vlgmr.msra.gmra.mrb[4].mxu0 %vm319_vm3, %v1257_v1  ;;  %v4666_v58 = vpack.c.bf16 %v1684_v46, %v1683_v57  ;;  %v1969_v46 = vld [vmem:[%s5779_s13 + $0x10] sm:$0xff] }
0x1018   :  { %v4796_v21 = vpop.eup %4795  ;;  %4424 = vmatpush3.msra.mxu0 %v1426_v50  ;;  %4425 = vmatprep.mubr.msk.f32.mxu0 %vm4889_vm2, %v4888_v20 }
0x1019   :  { %v1424_v23 = vmul.f32 %v4796_v21, %v4790_v25  ;;  %v990_v40 = vpop.permute.xlu1 %989  ;;  %4433 = vmatprep.subr.mxu0 %v4888_v20  ;;  %4667 = vmatprep.subr.bf16.mxu1 %v4666_v58  ;;  %v1823_v25 = vld [vmem:[%s5777_s11 + $0x10] sm:$0xff]  ;;  %v4143_v21 = vld [vmem:[%s5776_s10] ss:$0 sm:$0xff] }
0x101a   :  { %v998_v54 = vsel %vm997_vm5, %v996_v52, %v990_v40  ;;  %4669 = vmatpush3.bf16.msra.mxu1 %v4666_v58  ;;  %v1970_v58 = vld [vmem:[%s5779_s13 + $0x18] sm:$0xff] }
0x101b   :  { %4426 = vmatmul.mubr.msk.f32.vlgmr.msra.gmra.mrb[6].mxu0 %vm319_vm3, %v1424_v23  ;;  %4671 = vmatprep.subr.bf16.mxu1 %v4670_v61  ;;  %v4686_v59 = vpack.c.bf16 %v1970_v58, %v1969_v46 }
0x101c   :  { %v4798_v51 = vpop.eup %4797  ;;  %4434 = vmatpush3.msra.mxu0 %v1593_v44  ;;  %4435 = vmatprep.mubr.msk.f32.mxu0 %vm4889_vm2, %v4888_v20 }
0x101d   :  { %v1591_v53 = vmul.f32 %v4798_v51, %v4792_v38  ;;  %v994_v55 = vpop.permute.xlu1 %993  ;;  %4675 = vmatprep.subr.bf16.mxu0 %v4674_v36  ;;  %v4678_v38 = vpack.c.bf16 %v1824_v37, %v1823_v25 }
0x101e   :  { %v1000_v56 = vsel %vm999_vm6, %v998_v54, %v994_v55  ;;  %4673 = vmatpush3.bf16.msra.mxu1 %v4670_v61  ;;  %v1967_v55 = vld [vmem:[%s5779_s13] sm:$0xff]  ;;  %v1972_v61 = vld [vmem:[%s5779_s13 + $0x28] sm:$0xff] }
0x101f   :  { %4436 = vmatmul.mubr.msk.f32.vlgmr.msra.gmra.mrb[8].mxu0 %vm319_vm3, %v1591_v53  ;;  %4446 = vmatprep.mubr.msk.f32.mxu1 %vm180_vm1, %v1000_v56  ;;  %v1968_v56 = vld [vmem:[%s5779_s13 + $0x8] sm:$0xff] }
0x1020   :  { %4677 = vmatpush3.bf16.msra.mxu0 %v4674_v36  ;;  %v4682_v57 = vpack.c.bf16 %v1968_v56, %v1967_v55 }
0x1021   :  { %4679 = vmatprep.subr.bf16.mxu0 %v4678_v38 }
0x1022   :  { %4683 = vmatprep.subr.bf16.mxu1 %v4682_v57 }
0x1024   :  { %4681 = vmatpush3.bf16.msra.mxu0 %v4678_v38 }
0x10ea   :  { %v1330_v62 = vpop.f32.mrb[4].mxu0 }
0x10eb   :  { %1669 = vrot.lane.b32.xlu0 %v1330_v62, %s4901_s2  ;;  %v4417_v63 = vpop.f32.mrb[5].mxu0  ;;  %v4690_v62 = vpack.c.bf16 %v1972_v61, %v1971_v60 }
0x10ec   :  { %v1973_v63 = vld [vmem:[%s5779_s13 + $0x30] sm:$0xff] }
0x10ee   :  { %v1497_v0 = vpop.f32.mrb[6].mxu0 }
0x10ef   :  { %1673 = vrot.lane.b32.xlu0 %v1497_v0, %s4902_s23  ;;  %v4427_v4 = vpop.f32.mrb[7].mxu0  ;;  %v1974_v0 = vld [vmem:[%s5779_s13 + $0x38] sm:$0xff] }
0x10f0   :  { %v4694_v4 = vpack.c.bf16 %v1974_v0, %v1973_v63  ;;  %v4147_v63 = vld [vmem:[%s5780_s14] ss:$0 sm:$0xff] }
0x10f2   :  { %v1664_v5 = vpop.f32.mrb[8].mxu0 }
0x10f3   :  { %1677 = vrot.lane.b32.xlu1 %v1664_v5, %s4903_s24  ;;  %v4437_v6 = vpop.f32.mrb[9].mxu0  ;;  %v4144_v5 = vld [vmem:[%s5778_s12] ss:$0 sm:$0xff] }
0x115d   :  { %v1670_v7 = vpop.permute.xlu0 %1669 }
0x115e   :  { %v1680_v9 = vsel %vm319_vm3, %v5283_v2, %v1670_v7 }
0x1161   :  { %v1674_v8 = vpop.permute.xlu0 %1673 }
0x1162   :  { %v1681_v10 = vsel %vm997_vm5, %v1680_v9, %v1674_v8 }
0x1165   :  { %v1678_v11 = vpop.permute.xlu1 %1677 }
0x1166   :  { %v1682_v12 = vsel %vm999_vm6, %v1681_v10, %v1678_v11 }
0x1167   :  { %4447 = vmatmul.mubr.msk.f32.vlgmr.msra.gmra.mrb[28].mxu1 %vm180_vm1, %v1682_v12 }
0x1168   :  { %4685 = vmatpush3.bf16.msra.mxu1 %v4682_v57 }
0x1169   :  { %4687 = vmatprep.subr.bf16.mxu1 %v4686_v59 }
0x116c   :  { %4689 = vmatpush3.bf16.msra.mxu1 %v4686_v59 }
0x116d   :  { %4691 = vmatprep.subr.bf16.mxu1 %v4690_v62 }
0x1170   :  { %4693 = vmatpush3.bf16.msra.mxu1 %v4690_v62 }
0x1171   :  { %4695 = vmatprep.subr.bf16.mxu1 %v4694_v4 }
0x1174   :  { %4697 = vmatpush3.bf16.msra.mxu1 %v4694_v4 }
0x1175   :  { %4500 = vmatprep.subr.mxu1 %v4888_v20 }
0x123a   :  { %v4448_v14 = vpop.f32.mrb[28].mxu1 }
0x123b   :  { %v1772_v15 = vadd.f32 %v4448_v14, %v4139_v13  ;;  %v1766_v16 = vpop.f32.mrb[29].mxu1 }
0x123c   :  { %v1767_v17 = vadd.f32 %v4139_v13, %v1766_v16 }
0x123d   :  { %v5347_v18 = vadd.f32 %v1772_v15, %v5114_v48 }
0x123e   :  { %v5350_v2 = vadd.f32 %v1767_v17, %v5107_v43 }
0x123f   :  { %v1782_v19 = vsel %vm180_vm1, %v5347_v18, 0.0 }
0x1240   :  { %1783 = vadd.xlane.f32.xlu1 %v1782_v19  ;;  %v1779_v22 = vsel %vm180_vm1, %v5350_v2, 0.0 }
0x1241   :  { %1780 = vadd.xlane.f32.xlu0 %v1779_v22 }
0x12cd   :  { %v1784_v24 = vpop.xlane.xlu1 %1783 }
0x12ce   :  { %v1786_v26 = vmul.f32 0.03125, %v1784_v24  ;;  %v1781_v27 = vpop.xlane.xlu0 %1780 }
0x12cf   :  { %v1785_v29 = vmul.f32 0.03125, %v1781_v27 }
0x12d0   :  { %v1788_v30 = vsub.f32 %v5347_v18, %v1786_v26 }
0x12d1   :  { %v1787_v48 = vsub.f32 %v5350_v2, %v1785_v29 }
0x12d2   :  { %v1790_v32 = vmul.f32 %v1788_v30, %v1788_v30 }
0x12d3   :  { %v1789_v31 = vmul.f32 %v1787_v48, %v1787_v48 }
0x12d4   :  { %v1794_v33 = vsel %vm180_vm1, %v1790_v32, 0.0 }
0x12d5   :  { %v1791_v43 = vsel %vm180_vm1, %v1789_v31, 0.0 }
0x12d6   :  { %1792 = vadd.xlane.f32.xlu0 %v1791_v43 }
0x12da   :  { %1795 = vadd.xlane.f32.xlu0 %v1794_v33 }
0x1363   :  { %v1793_v39 = vpop.xlane.xlu0 %1792 }
0x1364   :  { %v1797_v41 = vmul.f32 0.03125, %v1793_v39 }
0x1366   :  { %v1799_v42 = vadd.f32 1e-12, %v1797_v41 }
0x1367   :  { %v1796_v44 = vpop.xlane.xlu0 %1795 }
0x1368   :  { %4799 = vrsqrt.f32 %v1799_v42  ;;  %v1798_v45 = vmul.f32 0.03125, %v1796_v44 }
0x136a   :  { %v1800_v47 = vadd.f32 1e-12, %v1798_v45 }
0x136c   :  { %4801 = vrsqrt.f32 %v1800_v47 }
0x1372   :  { %v4800_v1 = vpop.eup %4799 }
0x1373   :  { %v1803_v50 = vmul.f32 %v4800_v1, %v1787_v48 }
0x1375   :  { %v1811_v23 = vmul.f32 %v4142_v49, %v1803_v50 }
0x1376   :  { %v4802_v40 = vpop.eup %4801 }
0x1377   :  { %v1804_v51 = vmul.f32 %v4802_v40, %v1788_v30  ;;  %v1819_v52 = vadd.f32 %v4143_v21, %v1811_v23 }
0x1379   :  { %v1812_v53 = vmul.f32 %v4142_v49, %v1804_v51  ;;  %4457 = vmatprep.mubr.msk.f32.mxu0 %vm180_vm1, %v1819_v52  ;;  %v4904_v52 = vmov 1.0  }
0x137b   :  { %v1820_v54 = vadd.f32 %v4143_v21, %v1812_v53 }
0x137d   :  { %4458 = vmatmul.mubr.msk.f32.vlgmr.msra.gmra.mrb[10].mxu0 %vm180_vm1, %v1820_v54 }
0x1450   :  { %v4459_v6 = vpop.f32.mrb[10].mxu0 }
0x1451   :  { %v1910_v7 = vadd.f32 %v4459_v6, %v4144_v5  ;;  %v1904_v8 = vpop.f32.mrb[11].mxu0 }
0x1452   :  { %v1905_v9 = vadd.f32 %v4144_v5, %v1904_v8 }
0x1453   :  { %v1916_v10 = vmul.f32 0.70710677, %v1910_v7  ;;  %v1914_v60 = vmul.f32 0.5, %v1910_v7 }
0x1454   :  { %v1915_v11 = vmul.f32 0.70710677, %v1905_v9  ;;  %v1913_v58 = vmul.f32 0.5, %v1905_v9 }
0x1455   :  { %v1922_v12 = vand.u32 2147483647, %v1916_v10  ;;  %vm1918_vm7 = vcmp.lt.f32.partialorder %v1916_v10, 0.0 }
0x1456   :  { %v1921_v13 = vand.u32 2147483647, %v1915_v11  ;;  %vm1917_vm8 = vcmp.lt.f32.partialorder %v1915_v11, 0.0  ;;  %v1920_v53 = vsel %vm1918_vm7, -1.0, %v4904_v52 }
0x1457   :  { %v1924_v14 = vmul.f32 0.3275911, %v1922_v12  ;;  %v1950_v19 = vsub.f32 0.0, %v1922_v12  ;;  %v1919_v56 = vsel %vm1917_vm8, -1.0, %v4904_v52 }
0x1458   :  { %v1923_v15 = vmul.f32 0.3275911, %v1921_v13  ;;  %v1949_v22 = vsub.f32 0.0, %v1921_v13 }
0x1459   :  { %v1926_v16 = vadd.f32 1.0, %v1924_v14  ;;  %v1952_v26 = vmul.f32 %v1950_v19, %v1922_v12 }
0x145a   :  { %v1925_v17 = vadd.f32 1.0, %v1923_v15  ;;  %v1951_v30 = vmul.f32 %v1949_v22, %v1921_v13  ;;  %v4154_v22 = vld [vmem:[%s5771_s5 + $0x20] sm:$0xff] }
0x145b   :  { %4803 = vrcp.f32 %v1926_v16  ;;  %v1955_v43 = vmul.f32 1.442695, %v1952_v26 }
0x145c   :  { %4805 = vrcp.f32 %v1925_v17  ;;  %v1953_v34 = vmul.f32 1.442695, %v1951_v30 }
0x145d   :  { %4807 = vpow2.f32 %v1955_v43 }
0x145e   :  { %4809 = vpow2.f32 %v1953_v34 }
0x1465   :  { %v4804_v24 = vpop.eup %4803 }
0x1466   :  { %v4806_v27 = vpop.eup %4805  ;;  %v1932_v29 = vmul.f32 1.0614054, %v4804_v24 }
0x1467   :  { %v1931_v48 = vmul.f32 1.0614054, %v4806_v27  ;;  %v4808_v49 = vpop.eup %4807 }
0x1468   :  { %v1934_v31 = vadd.f32 -1.4531521, %v1932_v29  ;;  %v4810_v21 = vpop.eup %4809  ;;  %v4157_v29 = vld [vmem:[%s5771_s5 + $0x38] sm:$0xff] }
0x1469   :  { %v1933_v32 = vadd.f32 -1.4531521, %v1931_v48 }
0x146a   :  { %v1936_v33 = vmul.f32 %v4804_v24, %v1934_v31 }
0x146b   :  { %v1935_v35 = vmul.f32 %v4806_v27, %v1933_v32 }
0x146c   :  { %v1938_v36 = vadd.f32 1.4214138, %v1936_v33 }
0x146d   :  { %v1937_v25 = vadd.f32 1.4214138, %v1935_v35 }
0x146e   :  { %v1940_v37 = vmul.f32 %v4804_v24, %v1938_v36  ;;  %v4152_v36 = vld [vmem:[%s5813_s20 + $0x1] ss:$0 sm:$0xff] }
0x146f   :  { %v1939_v38 = vmul.f32 %v4806_v27, %v1937_v25 }
0x1470   :  { %v1942_v39 = vadd.f32 -0.28449672, %v1940_v37 }
0x1471   :  { %v1941_v41 = vadd.f32 -0.28449672, %v1939_v38 }
0x1472   :  { %v1944_v42 = vmul.f32 %v4804_v24, %v1942_v39  ;;  %v4153_v39 = vld [vmem:[%s5770_s4 + $0x1] ss:$0 sm:$0xff]  ;;  %s5814_s4 = smov 112  }
0x1473   :  { %v1943_v44 = vmul.f32 %v4806_v27, %v1941_v41 }
0x1474   :  { %v1946_v45 = vadd.f32 0.2548296, %v1944_v42 }
0x1475   :  { %v1945_v47 = vadd.f32 0.2548296, %v1943_v44 }
0x1476   :  { %v1948_v1 = vmul.f32 %v4804_v24, %v1946_v45  ;;  %v4155_v24 = vld [vmem:[%s5771_s5 + $0x28] sm:$0xff] }
0x1477   :  { %v1947_v50 = vmul.f32 %v4806_v27, %v1945_v47  ;;  %v4698_v26 = vpack.c.bf16 %v4155_v24, %v4154_v22  ;;  %v4156_v27 = vld [vmem:[%s5771_s5 + $0x30] sm:$0xff]  ;;  %v4159_v47 = vld [vmem:[%s5772_s6 + $0x1] ss:$0 sm:$0xff]  ;;  %s5816_s6 = smov 104  }
0x1478   :  { %v1958_v23 = vmul.f32 %v4808_v49, %v1948_v1  ;;  %v4702_v30 = vpack.c.bf16 %v4157_v29, %v4156_v27 }
0x1479   :  { %v1957_v40 = vmul.f32 %v4810_v21, %v1947_v50  ;;  %4699 = vmatprep.subr.bf16.mxu0 %v4698_v26 }
0x147a   :  { %v1960_v51 = vsub.f32 1.0, %v1958_v23  ;;  %4701 = vmatpush3.bf16.msra.mxu0 %v4698_v26 }
0x147b   :  { %v1959_v54 = vsub.f32 1.0, %v1957_v40  ;;  %4703 = vmatprep.subr.bf16.mxu0 %v4702_v30 }
0x147c   :  { %v1962_v55 = vmul.f32 %v1960_v51, %v1920_v53 }
0x147d   :  { %v1961_v57 = vmul.f32 %v1959_v54, %v1919_v56 }
0x147e   :  { %v1964_v46 = vadd.f32 1.0, %v1962_v55  ;;  %4705 = vmatpush3.bf16.msra.mxu0 %v4702_v30 }
0x147f   :  { %v1963_v59 = vadd.f32 1.0, %v1961_v57  ;;  %4490 = vmatprep.subr.mxu0 %v4888_v20 }
0x1480   :  { %v1966_v62 = vmul.f32 %v1964_v46, %v1914_v60 }
0x1481   :  { %v1965_v61 = vmul.f32 %v1963_v59, %v1913_v58 }
0x1483   :  { %4476 = vmatprep.mubr.msk.f32.mxu1 %vm96_vm0, %v1965_v61 }
0x1484   :  { %4477 = vmatmul.mubr.msk.f32.vlgmr.msra.gmra.mrb[30].mxu1 %vm96_vm0, %v1966_v62 }
0x1485   :  { %4502 = vmatprep.mubr.msk.f32.mxu1 %vm4889_vm2, %v4888_v20 }
0x1557   :  { %v4478_v0 = vpop.f32.mrb[30].mxu1 }
0x1558   :  { %v2060_v4 = vadd.f32 %v4478_v0, %v4147_v63  ;;  %v2054_v5 = vpop.f32.mrb[31].mxu1 }
0x1559   :  { %v2055_v6 = vadd.f32 %v4147_v63, %v2054_v5 }
0x155a   :  { %v5418_v8 = vadd.f32 %v2060_v4, %v5347_v18 }
0x155b   :  { %v5421_v7 = vadd.f32 %v2055_v6, %v5350_v2 }
0x155c   :  { %v2072_v9 = vsel %vm180_vm1, %v5418_v8, 0.0 }
0x155d   :  { %2073 = vadd.xlane.f32.xlu1 %v2072_v9  ;;  %v2069_v10 = vsel %vm180_vm1, %v5421_v7, 0.0 }
0x155e   :  { %2070 = vadd.xlane.f32.xlu0 %v2069_v10 }
0x15ea   :  { %v2074_v11 = vpop.xlane.xlu1 %2073 }
0x15eb   :  { %v2076_v12 = vmul.f32 0.03125, %v2074_v11  ;;  %v2071_v13 = vpop.xlane.xlu0 %2070 }
0x15ec   :  { %v2075_v14 = vmul.f32 0.03125, %v2071_v13 }
0x15ed   :  { %v2078_v15 = vsub.f32 %v5418_v8, %v2076_v12 }
0x15ee   :  { %v2077_v18 = vsub.f32 %v5421_v7, %v2075_v14 }
0x15ef   :  { %v2080_v16 = vmul.f32 %v2078_v15, %v2078_v15 }
0x15f0   :  { %v2079_v17 = vmul.f32 %v2077_v18, %v2077_v18 }
0x15f1   :  { %v2084_v2 = vsel %vm180_vm1, %v2080_v16, 0.0 }
0x15f2   :  { %2085 = vadd.xlane.f32.xlu1 %v2084_v2  ;;  %v2081_v19 = vsel %vm180_vm1, %v2079_v17, 0.0 }
0x15f3   :  { %2082 = vadd.xlane.f32.xlu0 %v2081_v19 }
0x167f   :  { %v2086_v48 = vpop.xlane.xlu1 %2085 }
0x1680   :  { %v2088_v31 = vmul.f32 0.03125, %v2086_v48  ;;  %v2083_v43 = vpop.xlane.xlu0 %2082 }
0x1681   :  { %v2087_v32 = vmul.f32 0.03125, %v2083_v43 }
0x1682   :  { %v2090_v33 = vadd.f32 1e-12, %v2088_v31 }
0x1683   :  { %v2089_v34 = vadd.f32 1e-12, %v2087_v32 }
0x1684   :  { %4811 = vrsqrt.f32 %v2090_v33 }
0x1685   :  { %4813 = vrsqrt.f32 %v2089_v34 }
0x168e   :  { %v4812_v35 = vpop.eup %4811 }
0x168f   :  { %v4814_v25 = vpop.eup %4813  ;;  %v2094_v37 = vmul.f32 %v4812_v35, %v2078_v15 }
0x1690   :  { %v2093_v38 = vmul.f32 %v4814_v25, %v2077_v18 }
0x1691   :  { %v2102_v41 = vmul.f32 %v4152_v36, %v2094_v37 }
0x1692   :  { %v2101_v42 = vmul.f32 %v4152_v36, %v2093_v38 }
0x1693   :  { %v2110_v45 = vadd.f32 %v4153_v39, %v2102_v41 }
0x1694   :  { %v2109_v44 = vadd.f32 %v4153_v39, %v2101_v42 }
0x1696   :  { %4487 = vmatprep.mubr.msk.f32.mxu0 %vm180_vm1, %v2109_v44 }
0x1697   :  { %4488 = vmatmul.mubr.msk.f32.vlgmr.msra.gmra.mrb[12].mxu0 %vm180_vm1, %v2110_v45 }
0x1698   :  { %4492 = vmatprep.mubr.msk.f32.mxu0 %vm4889_vm2, %v4888_v20 }
0x176a   :  { %v4489_v1 = vpop.f32.mrb[12].mxu0 }
0x176b   :  { %v2196_v49 = vpop.f32.mrb[13].mxu0  ;;  %v5471_v21 = vadd.f32 %v4489_v1, %v4159_v47 }
0x176c   :  { %v5457_v50 = vadd.f32 %v4159_v47, %v2196_v49 }
0x176e   :  { %2373 = vrot.lane.b32.xlu1 %v5457_v50, %s4891_s25  ;;  %2206 = vrot.lane.b32.xlu0 %v5457_v50, %s4890_s22 }
0x1772   :  { %2371 = vrot.lane.b32.xlu1 %v5457_v50, %s4893_s26  ;;  %2538 = vrot.lane.b32.xlu0 %v5457_v50, %s5814_s4 }
0x1776   :  { %2540 = vrot.lane.b32.xlu1 %v5457_v50, %s5815_s21  ;;  %2705 = vrot.lane.b32.xlu0 %v5457_v50, %s5816_s6 }
0x177a   :  { %2707 = vrot.lane.b32.xlu1 %v5457_v50, %s5817_s1  ;;  %3055 = vrot.lane.b32.xlu0 %v5471_v21, %s4891_s25  ;;  %s5819_s25 = smov 48  }
0x177e   :  { %2888 = vrot.lane.b32.xlu1 %v5471_v21, %s4890_s22  ;;  %3222 = vrot.lane.b32.xlu0 %v5471_v21, %s5815_s21  ;;  %s5818_s22 = smov 64  }
0x1782   :  { %3053 = vrot.lane.b32.xlu1 %v5471_v21, %s4893_s26  ;;  %3389 = vrot.lane.b32.xlu0 %v5471_v21, %s5817_s1  ;;  %s5820_s26 = smov 40  }
0x1786   :  { %3220 = vrot.lane.b32.xlu1 %v5471_v21, %s5814_s4 }
0x178a   :  { %3387 = vrot.lane.b32.xlu1 %v5471_v21, %s5816_s6 }
0x17e0   :  { %v2374_v23 = vpop.permute.xlu1 %2373  ;;  %v2207_v40 = vpop.permute.xlu0 %2206 }
0x17e1   :  { %4491 = vmatpush3.xpose.msk.msra.mxu0 %vm319_vm3, %v2207_v40  ;;  %4501 = vmatpush3.xpose.msk.msra.mxu1 %vm319_vm3, %v2374_v23 }
0x17e2   :  { %4510 = vmatprep.subr.mxu1 %v4888_v20  ;;  %4495 = vmatprep.subr.mxu0 %v4888_v20 }
0x17e4   :  { %v2372_v51 = vpop.permute.xlu1 %2371  ;;  %4493 = vmatmul.mubr.msk.f32.vlgmr.msra.gmra.mrb[14].mxu0 %vm319_vm3, %v5457_v50  ;;  %v2539_v53 = vpop.permute.xlu0 %2538 }
0x17e5   :  { %4503 = vmatmul.mubr.msk.f32.vlgmr.msra.gmra.mrb[32].mxu1 %vm319_vm3, %v2372_v51  ;;  %4497 = vmatprep.mubr.msk.f32.mxu0 %vm4889_vm2, %v4888_v20 }
0x17e6   :  { %4512 = vmatprep.mubr.msk.f32.mxu1 %vm4889_vm2, %v4888_v20 }
0x17e8   :  { %v2541_v54 = vpop.permute.xlu1 %2540  ;;  %v2706_v55 = vpop.permute.xlu0 %2705 }
0x17e9   :  { %4511 = vmatpush3.xpose.msk.msra.mxu1 %vm319_vm3, %v2541_v54 }
0x17ea   :  { %4520 = vmatprep.subr.mxu1 %v4888_v20 }
0x17ec   :  { %v2708_v56 = vpop.permute.xlu1 %2707  ;;  %4513 = vmatmul.mubr.msk.f32.vlgmr.msra.gmra.mrb[34].mxu1 %vm319_vm3, %v2539_v53  ;;  %v3056_v57 = vpop.permute.xlu0 %3055 }
0x17ed   :  { %4521 = vmatpush3.xpose.msk.msra.mxu1 %vm319_vm3, %v2708_v56  ;;  %4522 = vmatprep.mubr.msk.f32.mxu1 %vm4889_vm2, %v4888_v20 }
0x17ee   :  { %4530 = vmatprep.subr.mxu1 %v4888_v20 }
0x17f0   :  { %v2889_v46 = vpop.permute.xlu1 %2888  ;;  %4523 = vmatmul.mubr.msk.f32.vlgmr.msra.gmra.mrb[36].mxu1 %vm319_vm3, %v2706_v55  ;;  %v3223_v59 = vpop.permute.xlu0 %3222 }
0x17f1   :  { %4531 = vmatpush3.xpose.msk.msra.mxu1 %vm319_vm3, %v2889_v46  ;;  %4532 = vmatprep.mubr.msk.f32.mxu1 %vm4889_vm2, %v4888_v20 }
0x17f2   :  { %4540 = vmatprep.subr.mxu1 %v4888_v20 }
0x17f4   :  { %v3054_v58 = vpop.permute.xlu1 %3053  ;;  %4533 = vmatmul.mubr.msk.f32.vlgmr.msra.gmra.mrb[38].mxu1 %vm319_vm3, %v5471_v21  ;;  %v3390_v61 = vpop.permute.xlu0 %3389 }
0x17f5   :  { %4541 = vmatpush3.xpose.msk.msra.mxu1 %vm319_vm3, %v3056_v57  ;;  %4542 = vmatprep.mubr.msk.f32.mxu1 %vm4889_vm2, %v4888_v20 }
0x17f6   :  { %4550 = vmatprep.subr.mxu1 %v4888_v20 }
0x17f8   :  { %4543 = vmatmul.mubr.msk.f32.vlgmr.msra.gmra.mrb[40].mxu1 %vm319_vm3, %v3054_v58  ;;  %v3221_v60 = vpop.permute.xlu1 %3220 }
0x17f9   :  { %4551 = vmatpush3.xpose.msk.msra.mxu1 %vm319_vm3, %v3223_v59  ;;  %4552 = vmatprep.mubr.msk.f32.mxu1 %vm4889_vm2, %v4888_v20 }
0x17fa   :  { %4560 = vmatprep.subr.mxu1 %v4888_v20 }
0x17fc   :  { %4553 = vmatmul.mubr.msk.f32.vlgmr.msra.gmra.mrb[42].mxu1 %vm319_vm3, %v3221_v60  ;;  %v3388_v62 = vpop.permute.xlu1 %3387 }
0x17fd   :  { %4561 = vmatpush3.xpose.msk.msra.mxu1 %vm319_vm3, %v3390_v61  ;;  %4562 = vmatprep.mubr.msk.f32.mxu1 %vm4889_vm2, %v4888_v20 }
0x1800   :  { %4563 = vmatmul.mubr.msk.f32.vlgmr.msra.gmra.mrb[44].mxu1 %vm319_vm3, %v3388_v62 }
0x18b7   :  { %v2278_v63 = vpop.f32.mrb[14].mxu0 }
0x18b8   :  { %v2282_v0 = vmul.f32 0.35355338, %v2278_v63  ;;  %v4494_v4 = vpop.f32.mrb[15].mxu0  ;;  %v2445_v5 = vpop.f32.mrb[32].mxu1 }
0x18b9   :  { %v2449_v6 = vmul.f32 0.35355338, %v2445_v5  ;;  %v4504_v9 = vpop.f32.mrb[33].mxu1 }
0x18ba   :  { %v2283_v10 = vsel %vm65_vm4, %v2282_v0, -1e+30 }
0x18bb   :  { %v2284_v11 = vsel %vm319_vm3, %v2283_v10, -inf  ;;  %v2450_v12 = vsel %vm65_vm4, %v2449_v6, -1e+30 }
0x18bc   :  { %2285 = vmax.xlane.f32.xlu0 %v2284_v11  ;;  %v2451_v13 = vsel %vm319_vm3, %v2450_v12, -inf }
0x18bd   :  { %2452 = vmax.xlane.f32.xlu1 %v2451_v13 }
0x18bf   :  { %v2612_v14 = vpop.f32.mrb[34].mxu1 }
0x18c0   :  { %v2616_v15 = vmul.f32 0.35355338, %v2612_v14  ;;  %v4514_v18 = vpop.f32.mrb[35].mxu1 }
0x18c2   :  { %v5536_v16 = vsel %vm65_vm4, %v2616_v15, -1e+30 }
0x18c3   :  { %v2779_v17 = vpop.f32.mrb[36].mxu1  ;;  %v2618_v2 = vsel %vm319_vm3, %v5536_v16, -inf }
0x18c4   :  { %v2783_v19 = vmul.f32 0.35355338, %v2779_v17  ;;  %2619 = vmax.xlane.f32.xlu0 %v2618_v2  ;;  %v4524_v22 = vpop.f32.mrb[37].mxu1 }
0x18c6   :  { %v2784_v24 = vsel %vm65_vm4, %v2783_v19, -1e+30 }
0x18c7   :  { %v2960_v26 = vpop.f32.mrb[38].mxu1  ;;  %v2785_v27 = vsel %vm319_vm3, %v2784_v24, -inf }
0x18c8   :  { %v2964_v29 = vmul.f32 0.35355338, %v2960_v26  ;;  %2786 = vmax.xlane.f32.xlu0 %v2785_v27  ;;  %v4534_v30 = vpop.f32.mrb[39].mxu1 }
0x18ca   :  { %v2965_v48 = vsel %vm65_vm4, %v2964_v29, -1e+30 }
0x18cb   :  { %v3127_v31 = vpop.f32.mrb[40].mxu1  ;;  %v2966_v43 = vsel %vm319_vm3, %v2965_v48, -inf }
0x18cc   :  { %v3131_v32 = vmul.f32 0.35355338, %v3127_v31  ;;  %2967 = vmax.xlane.f32.xlu0 %v2966_v43  ;;  %v4544_v33 = vpop.f32.mrb[41].mxu1 }
0x18ce   :  { %v3132_v34 = vsel %vm65_vm4, %v3131_v32, -1e+30 }
0x18cf   :  { %v3294_v35 = vpop.f32.mrb[42].mxu1  ;;  %v3133_v36 = vsel %vm319_vm3, %v3132_v34, -inf }
0x18d0   :  { %v3298_v25 = vmul.f32 0.35355338, %v3294_v35  ;;  %3134 = vmax.xlane.f32.xlu1 %v3133_v36  ;;  %v4554_v37 = vpop.f32.mrb[43].mxu1 }
0x18d2   :  { %v3299_v38 = vsel %vm65_vm4, %v3298_v25, -1e+30 }
0x18d3   :  { %v3461_v39 = vpop.f32.mrb[44].mxu1  ;;  %v3300_v41 = vsel %vm319_vm3, %v3299_v38, -inf }
0x18d4   :  { %3301 = vmax.xlane.f32.xlu0 %v3300_v41  ;;  %v4564_v42 = vpop.f32.mrb[45].mxu1  ;;  %v3465_v44 = vmul.f32 0.35355338, %v3461_v39 }
0x18d6   :  { %v3466_v45 = vsel %vm65_vm4, %v3465_v44, -1e+30 }
0x18d7   :  { %v3467_v47 = vsel %vm319_vm3, %v3466_v45, -inf }
0x18e1   :  { %2295 = vrot.lane.b32.xlu1 %v5457_v50, %s5818_s22 }
0x1905   :  { %3468 = vmax.xlane.f32.xlu1 %v3467_v47 }
0x1916   :  { %2629 = vrot.lane.b32.xlu1 %v5457_v50, %s5819_s25 }
0x191a   :  { %2796 = vrot.lane.b32.xlu1 %v5457_v50, %s5820_s26 }
0x191e   :  { %2977 = vrot.lane.b32.xlu1 %v5471_v21, %s5818_s22 }
0x1949   :  { %v2286_v1 = vpop.xlane.xlu0 %2285 }
0x194a   :  { %v2287_v49 = vsub.f32 %v2283_v10, %v2286_v1  ;;  %v2453_v23 = vpop.xlane.xlu1 %2452 }
0x194b   :  { %v2454_v40 = vsub.f32 %v2450_v12, %v2453_v23 }
0x194c   :  { %v2288_v51 = vmul.f32 1.442695, %v2287_v49 }
0x194d   :  { %v2455_v53 = vmul.f32 1.442695, %v2454_v40 }
0x194e   :  { %4815 = vpow2.f32 %v2288_v51 }
0x194f   :  { %4817 = vpow2.f32 %v2455_v53 }
0x1951   :  { %v2620_v28 = vpop.xlane.xlu0 %2619 }
0x1952   :  { %v2621_v0 = vsub.f32 %v5536_v16, %v2620_v28 }
0x1954   :  { %v2622_v5 = vmul.f32 1.442695, %v2621_v0  ;;  %v4187_v0 = vld [vmem:[%s5773_s7 + $0x28] sm:$0xff] }
0x1955   :  { %v2787_v54 = vpop.xlane.xlu0 %2786 }
0x1956   :  { %v2788_v55 = vsub.f32 %v2784_v24, %v2787_v54 }
0x1958   :  { %v4816_v56 = vpop.eup %4815  ;;  %v2789_v57 = vmul.f32 1.442695, %v2788_v55 }
0x1959   :  { %v5563_v46 = vpop.eup %4817  ;;  %v2290_v58 = vsel %vm319_vm3, %v4816_v56, 0.0  ;;  %v2968_v4 = vpop.xlane.xlu0 %2967 }
0x195a   :  { %4819 = vpow2.f32 %v2789_v57  ;;  %2291 = vadd.xlane.f32.xlu0 %v2290_v58  ;;  %v2457_v59 = vsel %vm319_vm3, %v5563_v46, 0.0  ;;  %v2969_v6 = vsub.f32 %v2965_v48, %v2968_v4 }
0x195b   :  { %2458 = vadd.xlane.f32.xlu1 %v2457_v59  ;;  %4821 = vpow2.f32 %v2622_v5 }
0x195c   :  { %v2970_v10 = vmul.f32 1.442695, %v2969_v6 }
0x195d   :  { %v3135_v60 = vpop.xlane.xlu1 %3134 }
0x195e   :  { %4823 = vpow2.f32 %v2970_v10  ;;  %v3136_v12 = vsub.f32 %v3132_v34, %v3135_v60  ;;  %v4189_v10 = vld [vmem:[%s5773_s7 + $0x38] sm:$0xff] }
0x1960   :  { %v3137_v14 = vmul.f32 1.442695, %v3136_v12 }
0x1961   :  { %v2296_v61 = vpop.permute.xlu1 %2295  ;;  %v3302_v9 = vpop.xlane.xlu0 %3301 }
0x1962   :  { %4496 = vmatpush3.msra.mxu0 %v2296_v61  ;;  %v3303_v11 = vsub.f32 %v3299_v38, %v3302_v9  ;;  %v4188_v9 = vld [vmem:[%s5773_s7 + $0x30] sm:$0xff] }
0x1963   :  { %4505 = vmatprep.subr.mxu0 %v4888_v20  ;;  %v4710_v12 = vpack.c.bf16 %v4189_v10, %v4188_v9 }
0x1964   :  { %v5569_v62 = vpop.eup %4819  ;;  %v3304_v13 = vmul.f32 1.442695, %v3303_v11 }
0x1965   :  { %v2791_v63 = vsel %vm319_vm3, %v5569_v62, 0.0  ;;  %v4822_v15 = vpop.eup %4821 }
0x1966   :  { %2792 = vadd.xlane.f32.xlu1 %v2791_v63  ;;  %4825 = vpow2.f32 %v3304_v13  ;;  %v4186_v63 = vld [vmem:[%s5773_s7 + $0x20] sm:$0xff] }
0x1967   :  { %4827 = vpow2.f32 %v3137_v14  ;;  %v4706_v5 = vpack.c.bf16 %v4187_v0, %v4186_v63  ;;  %v4196_v0 = vld [vmem:[%s5775_s9 + $0x1] ss:$0 sm:$0xff] }
0x1968   :  { %v4824_v18 = vpop.eup %4823 }
0x1969   :  { %v2972_v16 = vsel %vm319_vm3, %v4824_v18, 0.0  ;;  %4707 = vmatprep.subr.bf16.mxu1 %v4706_v5 }
0x196a   :  { %4709 = vmatpush3.bf16.msra.mxu1 %v4706_v5  ;;  %v4197_v5 = vld [vmem:[%s5776_s10 + $0x1] ss:$0 sm:$0xff] }
0x196b   :  { %4711 = vmatprep.subr.bf16.mxu1 %v4710_v12 }
0x196e   :  { %4713 = vmatpush3.bf16.msra.mxu1 %v4710_v12 }
0x1970   :  { %2462 = vrot.lane.b32.xlu0 %v5457_v50, %s5821_s3  ;;  %v2624_v50 = vsel %vm319_vm3, %v4822_v15, 0.0  ;;  %v5580_v2 = vpop.eup %4825 }
0x1971   :  { %v3306_v24 = vsel %vm319_vm3, %v5580_v2, 0.0  ;;  %v4828_v26 = vpop.eup %4827 }
0x1972   :  { %v3139_v27 = vsel %vm319_vm3, %v4828_v26, 0.0 }
0x1977   :  { %3144 = vrot.lane.b32.xlu1 %v5471_v21, %s5821_s3 }
0x198f   :  { %2625 = vadd.xlane.f32.xlu0 %v2624_v50 }
0x1992   :  { %v3469_v17 = vpop.xlane.xlu1 %3468 }
0x1993   :  { %v3470_v19 = vsub.f32 %v3466_v45, %v3469_v17  ;;  %2973 = vadd.xlane.f32.xlu0 %v2972_v16 }
0x1995   :  { %v3471_v22 = vmul.f32 1.442695, %v3470_v19 }
0x1996   :  { %v2630_v48 = vpop.permute.xlu1 %2629 }
0x1997   :  { %4829 = vpow2.f32 %v3471_v22  ;;  %3307 = vadd.xlane.f32.xlu0 %v3306_v24 }
0x199a   :  { %v2797_v31 = vpop.permute.xlu1 %2796 }
0x199b   :  { %3140 = vadd.xlane.f32.xlu1 %v3139_v27 }
0x199e   :  { %v2978_v43 = vpop.permute.xlu1 %2977 }
0x19a1   :  { %v5585_v29 = vpop.eup %4829 }
0x19a2   :  { %v3473_v30 = vsel %vm319_vm3, %v5585_v29, 0.0 }
0x19a3   :  { %3474 = vadd.xlane.f32.xlu0 %v3473_v30 }
0x19ac   :  { %3478 = vrot.lane.b32.xlu1 %v5471_v21, %s5820_s26 }
0x19b9   :  { %3311 = vrot.lane.b32.xlu0 %v5471_v21, %s5819_s25 }
0x19e7   :  { %v2292_v32 = vpop.xlane.xlu0 %2291 }
0x19e8   :  { %4831 = vrcp.f32 %v2292_v32  ;;  %v2459_v33 = vpop.xlane.xlu1 %2458 }
0x19e9   :  { %4833 = vrcp.f32 %v2459_v33 }
0x19eb   :  { %v2463_v25 = vpop.permute.xlu0 %2462 }
0x19f2   :  { %v4832_v34 = vpop.eup %4831 }
0x19f3   :  { %v2294_v35 = vmul.f32 %v4832_v34, %v4816_v56  ;;  %v4834_v36 = vpop.eup %4833  ;;  %v2793_v21 = vpop.xlane.xlu1 %2792 }
0x19f4   :  { %v2461_v37 = vmul.f32 %v4834_v36, %v5563_v46 }
0x19f5   :  { %4498 = vmatmul.mubr.msk.f32.vlgmr.msra.gmra.mrb[16].mxu0 %vm319_vm3, %v2294_v35  ;;  %v4191_v35 = vld [vmem:[%s5774_s8 + $0x1] ss:$0 sm:$0xff] }
0x19f6   :  { %4506 = vmatpush3.msra.mxu0 %v2463_v25  ;;  %4507 = vmatprep.mubr.msk.f32.mxu0 %vm4889_vm2, %v4888_v20 }
0x19f7   :  { %4515 = vmatprep.subr.mxu0 %v4888_v20  ;;  %v3145_v41 = vpop.permute.xlu1 %3144 }
0x19f9   :  { %4508 = vmatmul.mubr.msk.f32.vlgmr.msra.gmra.mrb[18].mxu0 %vm319_vm3, %v2461_v37 }
0x19fa   :  { %4516 = vmatpush3.msra.mxu0 %v2630_v48  ;;  %4517 = vmatprep.mubr.msk.f32.mxu0 %vm4889_vm2, %v4888_v20 }
0x19fb   :  { %4525 = vmatprep.subr.mxu0 %v4888_v20 }
0x1a1c   :  { %v2626_v38 = vpop.xlane.xlu0 %2625 }
0x1a1d   :  { %4835 = vrcp.f32 %v2626_v38 }
0x1a1e   :  { %4837 = vrcp.f32 %v2793_v21 }
0x1a20   :  { %v2974_v39 = vpop.xlane.xlu0 %2973 }
0x1a21   :  { %4839 = vrcp.f32 %v2974_v39 }
0x1a24   :  { %v3308_v45 = vpop.xlane.xlu0 %3307 }
0x1a27   :  { %v4836_v42 = vpop.eup %4835 }
0x1a28   :  { %v2628_v44 = vmul.f32 %v4836_v42, %v4822_v15  ;;  %v3141_v47 = vpop.xlane.xlu1 %3140  ;;  %v4838_v1 = vpop.eup %4837 }
0x1a29   :  { %4841 = vrcp.f32 %v3141_v47  ;;  %v2795_v49 = vmul.f32 %v4838_v1, %v5569_v62 }
0x1a2a   :  { %4518 = vmatmul.mubr.msk.f32.vlgmr.msra.gmra.mrb[20].mxu0 %vm319_vm3, %v2628_v44  ;;  %4843 = vrcp.f32 %v3308_v45 }
0x1a2b   :  { %4526 = vmatpush3.msra.mxu0 %v2797_v31  ;;  %4527 = vmatprep.mubr.msk.f32.mxu0 %vm4889_vm2, %v4888_v20  ;;  %v4840_v23 = vpop.eup %4839 }
0x1a2c   :  { %4535 = vmatprep.subr.mxu0 %v4888_v20  ;;  %v2976_v40 = vmul.f32 %v4840_v23, %v4824_v18  ;;  %v3479_v57 = vpop.permute.xlu1 %3478 }
0x1a2e   :  { %4528 = vmatmul.mubr.msk.f32.vlgmr.msra.gmra.mrb[22].mxu0 %vm319_vm3, %v2795_v49 }
0x1a2f   :  { %4536 = vmatpush3.msra.mxu0 %v2978_v43  ;;  %4537 = vmatprep.mubr.msk.f32.mxu0 %vm4889_vm2, %v4888_v20 }
0x1a30   :  { %v3475_v51 = vpop.xlane.xlu0 %3474  ;;  %4545 = vmatprep.subr.mxu0 %v4888_v20 }
0x1a31   :  { %4845 = vrcp.f32 %v3475_v51 }
0x1a32   :  { %4538 = vmatmul.mubr.msk.f32.vlgmr.msra.gmra.mrb[24].mxu0 %vm319_vm3, %v2976_v40 }
0x1a33   :  { %v4842_v53 = vpop.eup %4841  ;;  %4546 = vmatpush3.msra.mxu0 %v3145_v41  ;;  %4547 = vmatprep.mubr.msk.f32.mxu0 %vm4889_vm2, %v4888_v20 }
0x1a34   :  { %v3143_v28 = vmul.f32 %v4842_v53, %v4828_v26  ;;  %v3312_v54 = vpop.permute.xlu0 %3311  ;;  %4555 = vmatprep.subr.mxu0 %v4888_v20  ;;  %v4844_v55 = vpop.eup %4843  ;;  %v4198_v53 = vld [vmem:[%s5777_s11 + $0x20] sm:$0xff] }
0x1a35   :  { %v3310_v56 = vmul.f32 %v4844_v55, %v5580_v2  ;;  %v4200_v55 = vld [vmem:[%s5777_s11 + $0x30] sm:$0xff] }
0x1a36   :  { %4548 = vmatmul.mubr.msk.f32.vlgmr.msra.gmra.mrb[26].mxu0 %vm319_vm3, %v3143_v28  ;;  %v4199_v28 = vld [vmem:[%s5777_s11 + $0x28] sm:$0xff] }
0x1a37   :  { %4556 = vmatpush3.msra.mxu0 %v3312_v54  ;;  %4557 = vmatprep.mubr.msk.f32.mxu0 %vm4889_vm2, %v4888_v20  ;;  %v4714_v54 = vpack.c.bf16 %v4199_v28, %v4198_v53 }
0x1a38   :  { %4565 = vmatprep.subr.mxu0 %v4888_v20 }
0x1a3a   :  { %4558 = vmatmul.mubr.msk.f32.vlgmr.msra.gmra.mrb[28].mxu0 %vm319_vm3, %v3310_v56  ;;  %v4201_v56 = vld [vmem:[%s5777_s11 + $0x38] sm:$0xff] }
0x1a3b   :  { %v4846_v46 = vpop.eup %4845  ;;  %4566 = vmatpush3.msra.mxu0 %v3479_v57  ;;  %4567 = vmatprep.mubr.msk.f32.mxu0 %vm4889_vm2, %v4888_v20  ;;  %v4718_v57 = vpack.c.bf16 %v4201_v56, %v4200_v55 }
0x1a3c   :  { %v3477_v58 = vmul.f32 %v4846_v46, %v5585_v29  ;;  %4715 = vmatprep.subr.bf16.mxu0 %v4714_v54 }
0x1a3e   :  { %4568 = vmatmul.mubr.msk.f32.vlgmr.msra.gmra.mrb[30].mxu0 %vm319_vm3, %v3477_v58 }
0x1a3f   :  { %4717 = vmatpush3.bf16.msra.mxu0 %v4714_v54 }
0x1a40   :  { %4719 = vmatprep.subr.bf16.mxu0 %v4718_v57 }
0x1a43   :  { %4721 = vmatpush3.bf16.msra.mxu0 %v4718_v57 }
0x1a44   :  { %4738 = vmatprep.subr.bf16.mxu0 %v4887_v3 }
0x1ac8   :  { %v2367_v59 = vpop.f32.mrb[16].mxu0 }
0x1ac9   :  { %v4499_v60 = vpop.f32.mrb[17].mxu0 }
0x1acc   :  { %v2534_v61 = vpop.f32.mrb[18].mxu0 }
0x1acd   :  { %2873 = vrot.lane.b32.xlu0 %v2534_v61, %s4901_s2  ;;  %v4509_v62 = vpop.f32.mrb[19].mxu0 }
0x1afd   :  { %v2701_v4 = vpop.f32.mrb[20].mxu0 }
0x1afe   :  { %2877 = vrot.lane.b32.xlu1 %v2701_v4, %s4902_s23  ;;  %v4519_v6 = vpop.f32.mrb[21].mxu0 }
0x1b01   :  { %v2868_v11 = vpop.f32.mrb[22].mxu0 }
0x1b02   :  { %2881 = vrot.lane.b32.xlu1 %v2868_v11, %s4903_s24  ;;  %v4529_v13 = vpop.f32.mrb[23].mxu0 }
0x1b05   :  { %v3049_v14 = vpop.f32.mrb[24].mxu0 }
0x1b06   :  { %v4539_v15 = vpop.f32.mrb[25].mxu0 }
0x1b07   :  { %v4207_v15 = vld [vmem:[%s5779_s13 + $0x48] sm:$0xff] }
0x1b09   :  { %v3216_v50 = vpop.f32.mrb[26].mxu0 }
0x1b0a   :  { %3555 = vrot.lane.b32.xlu0 %v3216_v50, %s4901_s2  ;;  %v4549_v18 = vpop.f32.mrb[27].mxu0 }
0x1b0b   :  { %v4208_v18 = vld [vmem:[%s5779_s13 + $0x50] sm:$0xff] }
0x1b0d   :  { %v3383_v17 = vpop.f32.mrb[28].mxu0 }
0x1b0e   :  { %3559 = vrot.lane.b32.xlu0 %v3383_v17, %s4902_s23  ;;  %v4559_v16 = vpop.f32.mrb[29].mxu0  ;;  %v4209_v17 = vld [vmem:[%s5779_s13 + $0x58] sm:$0xff] }
0x1b0f   :  { %v4210_v16 = vld [vmem:[%s5779_s13 + $0x60] sm:$0xff] }
0x1b11   :  { %v3550_v2 = vpop.f32.mrb[30].mxu0 }
0x1b12   :  { %3563 = vrot.lane.b32.xlu1 %v3550_v2, %s4903_s24  ;;  %v4569_v19 = vpop.f32.mrb[31].mxu0  ;;  %v4211_v2 = vld [vmem:[%s5779_s13 + $0x68] sm:$0xff] }
0x1b13   :  { %v4730_v19 = vpack.c.bf16 %v4211_v2, %v4210_v16  ;;  %v4215_v2 = vld [vmem:[%s5780_s14 + $0x1] ss:$0 sm:$0xff] }
0x1b3f   :  { %v2874_v22 = vpop.permute.xlu0 %2873 }
0x1b40   :  { %v2884_v26 = vsel %vm319_vm3, %v2367_v59, %v2874_v22  ;;  %v4212_v22 = vld [vmem:[%s5779_s13 + $0x70] sm:$0xff] }
0x1b70   :  { %v2878_v24 = vpop.permute.xlu1 %2877 }
0x1b71   :  { %v2885_v27 = vsel %vm997_vm5, %v2884_v26, %v2878_v24  ;;  %v4213_v24 = vld [vmem:[%s5779_s13 + $0x78] sm:$0xff] }
0x1b72   :  { %v4734_v26 = vpack.c.bf16 %v4213_v24, %v4212_v22 }
0x1b74   :  { %v2882_v29 = vpop.permute.xlu1 %2881 }
0x1b75   :  { %v2886_v30 = vsel %vm999_vm6, %v2885_v27, %v2882_v29  ;;  %v4203_v27 = vld [vmem:[%s5778_s12 + $0x1] ss:$0 sm:$0xff] }
0x1b76   :  { %4578 = vmatprep.mubr.msk.f32.mxu1 %vm180_vm1, %v2886_v30 }
0x1b7c   :  { %v3556_v48 = vpop.permute.xlu0 %3555 }
0x1b7d   :  { %v3566_v43 = vsel %vm319_vm3, %v3049_v14, %v3556_v48  ;;  %v4206_v14 = vld [vmem:[%s5779_s13 + $0x40] sm:$0xff] }
0x1b7e   :  { %v4722_v50 = vpack.c.bf16 %v4207_v15, %v4206_v14 }
0x1b80   :  { %v3560_v31 = vpop.permute.xlu0 %3559  ;;  %4723 = vmatprep.subr.bf16.mxu1 %v4722_v50 }
0x1b81   :  { %v3567_v32 = vsel %vm997_vm5, %v3566_v43, %v3560_v31 }
0x1b84   :  { %v3564_v33 = vpop.permute.xlu1 %3563 }
0x1b85   :  { %v3568_v34 = vsel %vm999_vm6, %v3567_v32, %v3564_v33 }
0x1b86   :  { %4579 = vmatmul.mubr.msk.f32.vlgmr.msra.gmra.mrb[46].mxu1 %vm180_vm1, %v3568_v34 }
0x1b87   :  { %4725 = vmatpush3.bf16.msra.mxu1 %v4722_v50 }
0x1c59   :  { %v4580_v36 = vpop.f32.mrb[46].mxu1 }
0x1c5a   :  { %v3660_v25 = vadd.f32 %v4580_v36, %v4191_v35  ;;  %v3654_v37 = vpop.f32.mrb[47].mxu1 }
0x1c5b   :  { %v3655_v21 = vadd.f32 %v4191_v35, %v3654_v37 }
0x1c5c   :  { %v5655_v38 = vadd.f32 %v3660_v25, %v5418_v8 }
0x1c5d   :  { %v5658_v39 = vadd.f32 %v3655_v21, %v5421_v7 }
0x1c5e   :  { %v3672_v41 = vsel %vm180_vm1, %v5655_v38, 0.0 }
0x1c5f   :  { %3673 = vadd.xlane.f32.xlu1 %v3672_v41  ;;  %v3669_v42 = vsel %vm180_vm1, %v5658_v39, 0.0 }
0x1c60   :  { %3670 = vadd.xlane.f32.xlu0 %v3669_v42 }
0x1cec   :  { %v3674_v44 = vpop.xlane.xlu1 %3673 }
0x1ced   :  { %v3676_v45 = vmul.f32 0.03125, %v3674_v44  ;;  %v3671_v47 = vpop.xlane.xlu0 %3670 }
0x1cee   :  { %v3675_v1 = vmul.f32 0.03125, %v3671_v47 }
0x1cef   :  { %v3678_v49 = vsub.f32 %v5655_v38, %v3676_v45 }
0x1cf0   :  { %v3677_v8 = vsub.f32 %v5658_v39, %v3675_v1 }
0x1cf1   :  { %v3680_v40 = vmul.f32 %v3678_v49, %v3678_v49 }
0x1cf2   :  { %v3679_v23 = vmul.f32 %v3677_v8, %v3677_v8 }
0x1cf3   :  { %v3684_v51 = vsel %vm180_vm1, %v3680_v40, 0.0 }
0x1cf4   :  { %v3681_v7 = vsel %vm180_vm1, %v3679_v23, 0.0 }
0x1cf5   :  { %3682 = vadd.xlane.f32.xlu0 %v3681_v7 }
0x1cf9   :  { %3685 = vadd.xlane.f32.xlu0 %v3684_v51 }
0x1d82   :  { %v3683_v46 = vpop.xlane.xlu0 %3682 }
0x1d83   :  { %v3687_v58 = vmul.f32 0.03125, %v3683_v46 }
0x1d85   :  { %v3689_v59 = vadd.f32 1e-12, %v3687_v58 }
0x1d86   :  { %v3686_v60 = vpop.xlane.xlu0 %3685 }
0x1d87   :  { %4847 = vrsqrt.f32 %v3689_v59  ;;  %v3688_v61 = vmul.f32 0.03125, %v3686_v60 }
0x1d89   :  { %v3690_v62 = vadd.f32 1e-12, %v3688_v61 }
0x1d8b   :  { %4849 = vrsqrt.f32 %v3690_v62 }
0x1d91   :  { %v4848_v63 = vpop.eup %4847 }
0x1d92   :  { %v3693_v4 = vmul.f32 %v4848_v63, %v3677_v8 }
0x1d94   :  { %v3701_v6 = vmul.f32 %v4196_v0, %v3693_v4 }
0x1d95   :  { %v4850_v9 = vpop.eup %4849 }
0x1d96   :  { %v3694_v10 = vmul.f32 %v4850_v9, %v3678_v49  ;;  %v3709_v11 = vadd.f32 %v4197_v5, %v3701_v6 }
0x1d98   :  { %v3702_v12 = vmul.f32 %v4196_v0, %v3694_v10  ;;  %4589 = vmatprep.mubr.msk.f32.mxu0 %vm180_vm1, %v3709_v11 }
0x1d9a   :  { %v3710_v13 = vadd.f32 %v4197_v5, %v3702_v12 }
0x1d9c   :  { %4590 = vmatmul.mubr.msk.f32.vlgmr.msra.gmra.mrb[32].mxu0 %vm180_vm1, %v3710_v13 }
0x1d9d   :  { %4619 = vmatprep.mubr.msk.f32.mxu0 %vm4889_vm2, %v4888_v20  ;;  %v4726_v20 = vpack.c.bf16 %v4209_v17, %v4208_v18 }
0x1d9f   :  { %4727 = vmatprep.subr.bf16.mxu1 %v4726_v20 }
0x1da0   :  { %4729 = vmatpush3.bf16.msra.mxu1 %v4726_v20 }
0x1da1   :  { %4731 = vmatprep.subr.bf16.mxu1 %v4730_v19 }
0x1da4   :  { %4733 = vmatpush3.bf16.msra.mxu1 %v4730_v19 }
0x1da5   :  { %4735 = vmatprep.subr.bf16.mxu1 %v4734_v26 }
0x1da8   :  { %4737 = vmatpush3.bf16.msra.mxu1 %v4734_v26 }
0x1e6f   :  { %v4591_v29 = vpop.f32.mrb[32].mxu0 }
0x1e70   :  { %v3802_v30 = vadd.f32 %v4591_v29, %v4203_v27  ;;  %v3796_v48 = vpop.f32.mrb[33].mxu0 }
0x1e71   :  { %v3797_v31 = vadd.f32 %v4203_v27, %v3796_v48 }
0x1e72   :  { %v3808_v43 = vmul.f32 0.70710677, %v3802_v30  ;;  %v3806_v17 = vmul.f32 0.5, %v3802_v30 }
0x1e73   :  { %v3807_v32 = vmul.f32 0.70710677, %v3797_v31  ;;  %v3805_v50 = vmul.f32 0.5, %v3797_v31 }
0x1e74   :  { %v3814_v33 = vand.u32 2147483647, %v3808_v43  ;;  %vm3810_vm9 = vcmp.lt.f32.partialorder %v3808_v43, 0.0 }
0x1e75   :  { %v3813_v34 = vand.u32 2147483647, %v3807_v32  ;;  %vm3809_vm10 = vcmp.lt.f32.partialorder %v3807_v32, 0.0  ;;  %v3812_v10 = vsel %vm3810_vm9, -1.0, %v4904_v52 }
0x1e76   :  { %v3816_v35 = vmul.f32 0.3275911, %v3814_v33  ;;  %v3842_v21 = vsub.f32 0.0, %v3814_v33  ;;  %v3811_v13 = vsel %vm3809_vm10, -1.0, %v4904_v52 }
0x1e77   :  { %v3815_v36 = vmul.f32 0.3275911, %v3813_v34  ;;  %v3841_v41 = vsub.f32 0.0, %v3813_v34 }
0x1e78   :  { %v3818_v25 = vadd.f32 1.0, %v3816_v35  ;;  %v3844_v44 = vmul.f32 %v3842_v21, %v3814_v33 }
0x1e79   :  { %v3817_v37 = vadd.f32 1.0, %v3815_v36  ;;  %v3843_v1 = vmul.f32 %v3841_v41, %v3813_v34  ;;  %v4010_v41 = vld [vmem:[%s5783_s17 + $0x10] sm:$0xff] }
0x1e7a   :  { %4851 = vrcp.f32 %v3818_v25  ;;  %v3847_v23 = vmul.f32 1.442695, %v3844_v44 }
0x1e7b   :  { %4853 = vrcp.f32 %v3817_v37  ;;  %v3845_v51 = vmul.f32 1.442695, %v3843_v1  ;;  %v4009_v37 = vld [vmem:[%s5783_s17 + $0x8] sm:$0xff] }
0x1e7c   :  { %4855 = vpow2.f32 %v3847_v23 }
0x1e7d   :  { %4857 = vpow2.f32 %v3845_v51 }
0x1e84   :  { %v4852_v42 = vpop.eup %4851 }
0x1e85   :  { %v4854_v45 = vpop.eup %4853  ;;  %v3824_v47 = vmul.f32 1.0614054, %v4852_v42 }
0x1e86   :  { %v3823_v49 = vmul.f32 1.0614054, %v4854_v45  ;;  %v4856_v63 = vpop.eup %4855 }
0x1e87   :  { %v3826_v8 = vadd.f32 -1.4531521, %v3824_v47  ;;  %v4858_v4 = vpop.eup %4857 }
0x1e88   :  { %v3825_v7 = vadd.f32 -1.4531521, %v3823_v49 }
0x1e89   :  { %v3828_v40 = vmul.f32 %v4852_v42, %v3826_v8 }
0x1e8a   :  { %v3827_v53 = vmul.f32 %v4854_v45, %v3825_v7 }
0x1e8b   :  { %v3830_v28 = vadd.f32 1.4214138, %v3828_v40  ;;  %v4218_v40 = vld [vmem:[%s5781_s15] ss:$0 sm:$0xff]  ;;  %s4905_s15 = smov [#allocation2]  }
0x1e8c   :  { %v3829_v54 = vadd.f32 1.4214138, %v3827_v53  ;;  %s4100_s20 = sshll.u32 %s4905_s15, 4  ;;  %s4101_s20 = int_to_ptr.vmem [resolvable:$true] %s4100_s20 }
0x1e8d   :  { %v3832_v55 = vmul.f32 %v4852_v42, %v3830_v28  ;;  %p4868_p1 = scmp.lt.s32.totalorder %s4101_s20, %s4101_s20 }
0x1e8e   :  { %v3831_v56 = vmul.f32 %v4854_v45, %v3829_v54 }
0x1e8f   :  { %v3834_v57 = vadd.f32 -0.28449672, %v3832_v55 }
0x1e90   :  { %v3833_v46 = vadd.f32 -0.28449672, %v3831_v56 }
0x1e91   :  { %v3836_v58 = vmul.f32 %v4852_v42, %v3834_v57 }
0x1e92   :  { %v3835_v59 = vmul.f32 %v4854_v45, %v3833_v46 }
0x1e93   :  { %v3838_v60 = vadd.f32 0.2548296, %v3836_v58 }
0x1e94   :  { %v3837_v61 = vadd.f32 0.2548296, %v3835_v59  ;;  %v4220_v59 = vld [vmem:[%s5784_s18] ss:$0 sm:$0xff] }
0x1e95   :  { %v3840_v62 = vmul.f32 %v4852_v42, %v3838_v60  ;;  %v4011_v42 = vld [vmem:[%s5783_s17 + $0x18] sm:$0xff] }
0x1e96   :  { %v3839_v0 = vmul.f32 %v4854_v45, %v3837_v61  ;;  %v4742_v44 = vpack.c.bf16 %v4011_v42, %v4010_v41 }
0x1e97   :  { %v3850_v5 = vmul.f32 %v4856_v63, %v3840_v62 }
0x1e98   :  { %v3849_v6 = vmul.f32 %v4858_v4, %v3839_v0 }
0x1e99   :  { %v3852_v9 = vsub.f32 1.0, %v3850_v5 }
0x1e9a   :  { %v3851_v11 = vsub.f32 1.0, %v3849_v6 }
0x1e9b   :  { %v3854_v12 = vmul.f32 %v3852_v9, %v3812_v10 }
0x1e9c   :  { %v3853_v14 = vmul.f32 %v3851_v11, %v3811_v13 }
0x1e9d   :  { %v3856_v15 = vadd.f32 1.0, %v3854_v12 }
0x1e9e   :  { %v3855_v18 = vadd.f32 1.0, %v3853_v14 }
0x1e9f   :  { %v3858_v16 = vmul.f32 %v3856_v15, %v3806_v17 }
0x1ea0   :  { %v3857_v20 = vmul.f32 %v3855_v18, %v3805_v50 }
0x1ea2   :  { %4608 = vmatprep.mubr.msk.f32.mxu1 %vm96_vm0, %v3857_v20 }
0x1ea3   :  { %4609 = vmatmul.mubr.msk.f32.vlgmr.msra.gmra.mrb[48].mxu1 %vm96_vm0, %v3858_v16 }
0x1f76   :  { %v4610_v19 = vpop.f32.mrb[48].mxu1 }
0x1f77   :  { %v3954_v22 = vadd.f32 %v4610_v19, %v4215_v2  ;;  %v3948_v24 = vpop.f32.mrb[49].mxu1 }
0x1f78   :  { %v3949_v26 = vadd.f32 %v4215_v2, %v3948_v24 }
0x1f79   :  { %v3958_v52 = vadd.f32 %v3954_v22, %v5655_v38 }
0x1f7a   :  { %v3957_v27 = vadd.f32 %v3949_v26, %v5658_v39  ;;  %v4008_v39 = vld [vmem:[%s5783_s17] sm:$0xff] }
0x1f7b   :  { %v3964_v29 = vsel %vm180_vm1, %v3958_v52, 0.0  ;;  %v4739_v21 = vpack.c.bf16 %v4009_v37, %v4008_v39 }
0x1f7c   :  { %3965 = vadd.xlane.f32.xlu0 %v3964_v29  ;;  %v3961_v30 = vsel %vm180_vm1, %v3957_v27, 0.0 }
0x1f7d   :  { %3962 = vadd.xlane.f32.xlu1 %v3961_v30  ;;  %4740 = vmatpush3.bf16.msra.mxu0 %v4739_v21 }
0x1f7e   :  { %4741 = vmatprep.subr.bf16.mxu0 %v4887_v3  ;;  %v4219_v3 = vld [vmem:[%s5782_s16] ss:$0 sm:$0xff]  ;;  %s4863_s16 = scalar_lea.vmem %s4101_s20, 32 }
0x1f7f   :  { %p4864_p0 = scmp.ne.s32.totalorder %s4101_s20, %s4863_s16  ;;  %p4869_p2 = scmp.lt.s32.totalorder %s4863_s16, %s4863_s16 }
0x1f81   :  { %4743 = vmatpush3.bf16.msra.mxu0 %v4742_v44  ;;  %p4870_p3 = por %p4869_p2, %p4868_p1 }
0x1f83   :  { %p4871_p4 = pnand %p4870_p3, %p4864_p0 }
0x2009   :  { %v3966_v48 = vpop.xlane.xlu0 %3965 }
0x200a   :  { %v3968_v31 = vmul.f32 0.03125, %v3966_v48  ;;  %v3963_v43 = vpop.xlane.xlu1 %3962 }
0x200b   :  { %v3967_v32 = vmul.f32 0.03125, %v3963_v43 }
0x200c   :  { %v3970_v33 = vsub.f32 %v3958_v52, %v3968_v31 }
0x200d   :  { %v3969_v34 = vsub.f32 %v3957_v27, %v3967_v32 }
0x200e   :  { %v3972_v35 = vmul.f32 %v3970_v33, %v3970_v33 }
0x200f   :  { %v3971_v36 = vmul.f32 %v3969_v34, %v3969_v34 }
0x2010   :  { %v3976_v25 = vsel %vm180_vm1, %v3972_v35, 0.0 }
0x2011   :  { %3977 = vadd.xlane.f32.xlu0 %v3976_v25  ;;  %v3973_v38 = vsel %vm180_vm1, %v3971_v36, 0.0 }
0x2012   :  { %3974 = vadd.xlane.f32.xlu1 %v3973_v38 }
0x209e   :  { %v3978_v45 = vpop.xlane.xlu0 %3977 }
0x209f   :  { %v3980_v47 = vmul.f32 0.03125, %v3978_v45  ;;  %v3975_v1 = vpop.xlane.xlu1 %3974 }
0x20a0   :  { %v3979_v49 = vmul.f32 0.03125, %v3975_v1 }
0x20a1   :  { %v3982_v8 = vadd.f32 1e-12, %v3980_v47 }
0x20a2   :  { %v3981_v23 = vadd.f32 1e-12, %v3979_v49 }
0x20a3   :  { %4859 = vrsqrt.f32 %v3982_v8 }
0x20a4   :  { %4861 = vrsqrt.f32 %v3981_v23 }
0x20ad   :  { %v4860_v7 = vpop.eup %4859 }
0x20ae   :  { %v4862_v51 = vpop.eup %4861  ;;  %v3986_v53 = vmul.f32 %v4860_v7, %v3970_v33 }
0x20af   :  { %v3985_v28 = vmul.f32 %v4862_v51, %v3969_v34 }
0x20b0   :  { %v3994_v54 = vmul.f32 %v4218_v40, %v3986_v53 }
0x20b1   :  { %v3993_v55 = vmul.f32 %v4218_v40, %v3985_v28 }
0x20b2   :  { %v4002_v56 = vadd.f32 %v4219_v3, %v3994_v54 }
0x20b3   :  { %v4001_v57 = vadd.f32 %v4219_v3, %v3993_v55 }
0x20b4   :  { %v4004_v46 = vrot.slane %v4002_v56, 7 }
0x20b6   :  { %v4007_v58 = vsel %vm4006_vm11, %v4001_v57, %v4004_v46 }
0x20b7   :  { %4620 = vmatmul.mubr.msk.f32.vlgmr.msra.gmra.mrb[34].mxu0 %vm180_vm1, %v4007_v58 }
0x218a   :  { %v4088_v60 = vpop.f32.mrb[34].mxu0 }
0x218b   :  { %v4089_v61 = vadd.f32 %v4220_v59, %v4088_v60  ;;  %v4621_v62 = vpop.f32.mrb[35].mxu0 }
0x218d   :  { %4093 = vst.msk [vmem:[#allocation2] sm:$0x3] %vm4092_vm12, %v4089_v61 }
0x218e   :  { %4874 = shalt.err (!%p4871_p4)
}
0x218f   :  { %s4875_s2 = scalar_lea.hbm %s5785_s19, 32 }
0x2190   :  { %p4876_p5 = scmp.ne.s32.totalorder %s5785_s19, %s4875_s2  ;;  %p4879_p6 = scmp.lt.u32.totalorder %s4875_s2, %s5785_s19 }
0x2192   :  { %p4881_p7 = pnand %p4879_p6, %p4876_p5 }
0x2194   :  { %4884 = shalt.err (!%p4881_p7)
}
0x2195   :  { %4103 = dma.vmem_to_hbm [thread:$0]  %s4101_s20, 32, %s5785_s19, [#allocation3]  }
0x2196   :  { %4885 = dma.done.wait [#allocation3], 32  }
0x2197   :  { %4886 = vsyncadd [#allocation3], 4294967264 }
0x2198   :  { %4107 = vsyncpa [#allocation3], 1 }

</bundles_post_ra>
